<compile_context>
chip_gen: v6e
topology: v6e:2x2x1
jax: 0.10.0
libtpu: 0.0.40
codegen_flags: <defaults>
</compile_context>

<pallas_src>
import jax
import jax.numpy as jnp
from jax.experimental import pallas as pl
from jax.experimental.pallas import tpu as pltpu


_SPATIAL = (32, 16, 8, 4, 2)     # conv input spatial size (H == W) per block
_CPAD = 128                      # channel padding -> lane-dense activations
_K1 = 32                         # layer-1 im2col K (9*3 = 27 real, padded)
_OUT_DIM = 80                    # Linear(32, 80)
_NPIX = _SPATIAL[0] * _SPATIAL[0]


def _wt(s):
    # stored conv-output width (>= 8 so f32 reshapes stay layout-trivial)
    return max(8, s)


def _conv_shape(s):
    # per-image conv-output scratch for a block whose conv spatial is s
    return (1, s, _wt(s), _CPAD)


def _ap_shape(s):
    # per-image zero-halo NHWC activation scratch feeding a block of spatial s
    return (1, s + 2, _wt(s) + 2, _CPAD)


def _vmem_spec():
    return pl.BlockSpec(memory_space=pltpu.MemorySpace.VMEM)


# ---------------------------------------------------------------------------
# The single fused kernel (runs once per image; grid=(batch,))
# ---------------------------------------------------------------------------
def _fcn_kernel(x_ref,                                   # (1, 1024, 32) bf16
                w1_ref, w2_ref, w3_ref, w4_ref, w5_ref,  # packed conv weights
                b1_ref, b2_ref, b3_ref, b4_ref, b5_ref,  # (1, 128) f32 biases
                wfc_ref, bfc_ref,                        # (128,128) bf16,(1,128)
                o_ref,                                   # (1, 1, 128) f32
                c1, c2, c3, c4, c5,                      # conv-output scratch
                ap2, ap3, ap4, ap5):                     # activation scratch
    nb = x_ref.shape[0]
    w_refs = (w1_ref, w2_ref, w3_ref, w4_ref, w5_ref)
    b_refs = (b1_ref, b2_ref, b3_ref, b4_ref, b5_ref)
    conv_refs = (c1, c2, c3, c4, c5)
    ap_refs = (None, ap2, ap3, ap4, ap5)

    for l, s in enumerate(_SPATIAL):
        h = s
        wt = _wt(s)
        ho = wo = s // 2
        cref = conv_refs[l]

        # ---- conv3x3('same') as ONE matmul (K accumulated inside the MXU) --
        if l == 0:
            # layer-1 im2col was built lane-dense (bf16) in the wrapper.
            lhs = x_ref[...].reshape(nb * _NPIX, _K1)
        else:
            src = ap_refs[l]
            taps = []
            for a in range(3):
                for c in range(3):
                    t = src[:, a:a + h, c:c + wt, :]      # (nb, h, wt, 128) f32
                    taps.append(t.reshape(nb * h * wt, _CPAD))
            # lane-aligned concat (9 x 128 lanes) -> (n, 1152); one bf16 cast
            lhs = jnp.concatenate(taps, axis=-1).astype(jnp.bfloat16)
        res = jnp.dot(lhs, w_refs[l][...], preferred_element_type=jnp.float32)
        cref[...] = res.reshape(nb, h, wt, _CPAD)

        # ---- 2x2 max-pool via 4 strided phase reads (no selection matmuls) -
        p00 = cref[:, pl.ds(0, ho, stride=2), pl.ds(0, wo, stride=2), :]
        p01 = cref[:, pl.ds(0, ho, stride=2), pl.ds(1, wo, stride=2), :]
        p10 = cref[:, pl.ds(1, ho, stride=2), pl.ds(0, wo, stride=2), :]
        p11 = cref[:, pl.ds(1, ho, stride=2), pl.ds(1, wo, stride=2), :]
        pooled = jnp.maximum(jnp.maximum(p00, p01), jnp.maximum(p10, p11))
        # bias + ReLU hoisted AFTER the pool (both commute with max)
        pooled = jnp.maximum(pooled + b_refs[l][...], 0.0)  # (nb, ho, wo, 128)

        if l + 1 < len(_SPATIAL):
            # ---- write into the next layer's zero-halo activation scratch --
            # Only the 1-pixel halo is zeroed; junk tail columns (width padded
            # up to _wt) only ever feed junk conv outputs that are never
            # selected by the strided pooling reads, so they stay untouched.
            dst = ap_refs[l + 1]
            wst = dst.shape[2]
            zrow = jnp.zeros((nb, 1, wst, _CPAD), jnp.float32)
            zcol = jnp.zeros((nb, ho, 1, _CPAD), jnp.float32)
            dst[:, 0:1, :, :] = zrow                       # top halo row
            dst[:, ho + 1:ho + 2, :, :] = zrow             # bottom halo row
            dst[:, 1:1 + ho, 0:1, :] = zcol                # left halo column
            dst[:, 1:1 + ho, 1 + wo:2 + wo, :] = zcol      # right halo column
            dst[:, 1:1 + ho, 1:1 + wo, :] = pooled
        else:
            # ---- 1x1x32 features -> fully connected, one lane-dense matmul -
            feat = pooled.reshape(nb, _CPAD).astype(jnp.bfloat16)
            logits = jnp.dot(feat, wfc_ref[...],
                             preferred_element_type=jnp.float32) + bfc_ref[...]
            o_ref[...] = logits.reshape(nb, 1, _CPAD)


# ---------------------------------------------------------------------------
# Parameter layout prep (done ONCE, outside the forward) + forward wrapper
# ---------------------------------------------------------------------------
def prepare_params(params):
    """One-time conversion of PyTorch-layout params into kernel layout."""
    blocks = []
    for i, (w, b) in enumerate(params["blocks"]):
        cout, cin = int(w.shape[0]), int(w.shape[1])
        wk = jnp.transpose(w, (2, 3, 1, 0))                 # (3, 3, cin, cout)
        cin_tgt = cin if i == 0 else _CPAD
        wk = jnp.pad(wk, ((0, 0), (0, 0),
                          (0, cin_tgt - cin), (0, _CPAD - cout)))
        wk = wk.reshape(9 * cin_tgt, _CPAD)                 # im2col-K packing
        if i == 0:
            wk = jnp.pad(wk, ((0, _K1 - 9 * cin), (0, 0)))  # (32, 128)
        bk = jnp.pad(b, (0, _CPAD - cout)).reshape(1, _CPAD).astype(jnp.float32)
        blocks.append((wk.astype(jnp.bfloat16), bk))
    w_fc, b_fc = params["fc"]                               # (80, 32), (80,)
    wfc = jnp.pad(w_fc.T, ((0, _CPAD - int(w_fc.shape[1])),
                           (0, _CPAD - int(w_fc.shape[0]))))
    wfc = wfc.astype(jnp.bfloat16)                          # (128, 128)
    bfc = jnp.pad(b_fc, (0, _CPAD - int(b_fc.shape[0])))
    bfc = bfc.reshape(1, _CPAD).astype(jnp.float32)
    return {"blocks": tuple(blocks), "fc": (wfc, bfc)}


def fcn_forward(x_nchw, prepared):
    """Forward pass matching FCN.forward (input is PyTorch NCHW)."""
    batch, _, hh, ww = x_nchw.shape
    assert (hh, ww) == (_SPATIAL[0], _SPATIAL[0])
    # Layer-1 im2col built once on the wrapper (XLA) side: lane-dense bf16
    # (B, 1024, 27->32) so layer 1 is a single K=32 matmul in the kernel.
    x = jnp.transpose(x_nchw, (0, 2, 3, 1))                 # NCHW -> NHWC
    xp = jnp.pad(x, ((0, 0), (1, 1), (1, 1), (0, 0)))       # 'same' zero halo
    cols = [xp[:, a:a + hh, c:c + ww, :] for a in range(3) for c in range(3)]
    im2col = jnp.concatenate(cols, axis=-1).reshape(batch, _NPIX, 9 * x.shape[-1])
    im2col = jnp.pad(im2col, ((0, 0), (0, 0), (0, _K1 - im2col.shape[-1])))
    im2col = im2col.astype(jnp.bfloat16)

    ws = [wk for (wk, _) in prepared["blocks"]]
    bs = [bk for (_, bk) in prepared["blocks"]]
    wfc, bfc = prepared["fc"]

    out = pl.pallas_call(
        _fcn_kernel,
        out_shape=jax.ShapeDtypeStruct((batch, 1, _CPAD), jnp.float32),
        grid=(batch,),                                      # one image / step
        in_specs=[pl.BlockSpec((1, _NPIX, _K1), lambda b: (b, 0, 0))]
                 + [_vmem_spec() for _ in range(12)],       # weights / biases
        out_specs=pl.BlockSpec((1, 1, _CPAD), lambda b: (b, 0, 0)),
        scratch_shapes=[pltpu.VMEM(_conv_shape(s), jnp.float32)
                        for s in _SPATIAL]
                       + [pltpu.VMEM(_ap_shape(s), jnp.float32)
                          for s in _SPATIAL[1:]],
        compiler_params=pltpu.CompilerParams(
            dimension_semantics=("parallel",)),             # 2 TCs on v7x
    )(im2col, *ws, *bs, wfc, bfc)
    return out.reshape(batch, _CPAD)[:, :_OUT_DIM]


# ---------------------------------------------------------------------------
# Deterministic parameter init (PyTorch layout, shapes from FCN.__init__)
# ---------------------------------------------------------------------------
def init_params(key, in_ch=3, filters=(32, 32, 32, 32, 32),
                ksize=(3, 3), out_dim=_OUT_DIM):
    blocks = []
    cin = in_ch
    for f in filters:
        key, k1, k2 = jax.random.split(key, 3)
        w = jax.random.normal(k1, (f, cin, *ksize), jnp.float32) * 0.1
        b = jax.random.normal(k2, (f,), jnp.float32) * 0.1
        blocks.append((w, b))
        cin = f
    key, k1, k2 = jax.random.split(key, 3)
    w_fc = jax.random.normal(k1, (out_dim, cin), jnp.float32) * 0.1
    b_fc = jax.random.normal(k2, (out_dim,), jnp.float32) * 0.1
    return {"blocks": blocks, "fc": (w_fc, b_fc)}


if __name__ == "__main__":
    key = jax.random.PRNGKey(0)
    key, kx, kp = jax.random.split(key, 3)
    # Input must be 3-channel and 32x32 spatial so that 5x (2,2) pooling
    # reaches 1x1 and the Linear(32, 80) in_features match.
    x = jax.random.normal(kx, (2, 3, 32, 32), jnp.float32)
    params = init_params(kp)
    prepared = prepare_params(params)

    out = jax.jit(fcn_forward)(x, prepared)
    out = jax.block_until_ready(out)
    assert out.shape == (2, _OUT_DIM), out.shape
    assert out.dtype == jnp.float32
    assert bool(jnp.all(jnp.isfinite(out)))
    print("KERNEL_OK")
</pallas_src>

<mosaic_0001>
module attributes {stable_mosaic.version = 11 : i64} {
  func.func @_fcn_kernel(%arg0: i32, %arg1: memref<1x1024x32xbf16, #tpu.memory_space<vmem>>, %arg2: memref<32x128xbf16, #tpu.memory_space<vmem>>, %arg3: memref<1152x128xbf16, #tpu.memory_space<vmem>>, %arg4: memref<1152x128xbf16, #tpu.memory_space<vmem>>, %arg5: memref<1152x128xbf16, #tpu.memory_space<vmem>>, %arg6: memref<1152x128xbf16, #tpu.memory_space<vmem>>, %arg7: memref<1x128xf32, #tpu.memory_space<vmem>>, %arg8: memref<1x128xf32, #tpu.memory_space<vmem>>, %arg9: memref<1x128xf32, #tpu.memory_space<vmem>>, %arg10: memref<1x128xf32, #tpu.memory_space<vmem>>, %arg11: memref<1x128xf32, #tpu.memory_space<vmem>>, %arg12: memref<128x128xbf16, #tpu.memory_space<vmem>>, %arg13: memref<1x128xf32, #tpu.memory_space<vmem>>, %arg14: memref<1x1x128xf32, #tpu.memory_space<vmem>>, %arg15: memref<1x32x32x128xf32, #tpu.memory_space<vmem>>, %arg16: memref<1x16x16x128xf32, #tpu.memory_space<vmem>>, %arg17: memref<1x8x8x128xf32, #tpu.memory_space<vmem>>, %arg18: memref<1x4x8x128xf32, #tpu.memory_space<vmem>>, %arg19: memref<1x2x8x128xf32, #tpu.memory_space<vmem>>, %arg20: memref<1x18x18x128xf32, #tpu.memory_space<vmem>>, %arg21: memref<1x10x10x128xf32, #tpu.memory_space<vmem>>, %arg22: memref<1x6x10x128xf32, #tpu.memory_space<vmem>>, %arg23: memref<1x4x10x128xf32, #tpu.memory_space<vmem>>) attributes {dimension_semantics = [#tpu.dimension_semantics<parallel>], iteration_bounds = array<i64: 2>, scalar_prefetch = 0 : i64, scratch_operands = 9 : i64, tpu.core_type = #tpu.core_type<tc>, window_params = [{transform_indices = @transform_0, window_bounds = array<i64: 1, 1024, 32>}, {pipeline_mode = #tpu.pipeline_mode<synchronous>, transform_indices = @transform_1, window_bounds = array<i64: 32, 128>}, {pipeline_mode = #tpu.pipeline_mode<synchronous>, transform_indices = @transform_2, window_bounds = array<i64: 1152, 128>}, {pipeline_mode = #tpu.pipeline_mode<synchronous>, transform_indices = @transform_3, window_bounds = array<i64: 1152, 128>}, {pipeline_mode = #tpu.pipeline_mode<synchronous>, transform_indices = @transform_4, window_bounds = array<i64: 1152, 128>}, {pipeline_mode = #tpu.pipeline_mode<synchronous>, transform_indices = @transform_5, window_bounds = array<i64: 1152, 128>}, {pipeline_mode = #tpu.pipeline_mode<synchronous>, transform_indices = @transform_6, window_bounds = array<i64: 1, 128>}, {pipeline_mode = #tpu.pipeline_mode<synchronous>, transform_indices = @transform_7, window_bounds = array<i64: 1, 128>}, {pipeline_mode = #tpu.pipeline_mode<synchronous>, transform_indices = @transform_8, window_bounds = array<i64: 1, 128>}, {pipeline_mode = #tpu.pipeline_mode<synchronous>, transform_indices = @transform_9, window_bounds = array<i64: 1, 128>}, {pipeline_mode = #tpu.pipeline_mode<synchronous>, transform_indices = @transform_10, window_bounds = array<i64: 1, 128>}, {pipeline_mode = #tpu.pipeline_mode<synchronous>, transform_indices = @transform_11, window_bounds = array<i64: 128, 128>}, {pipeline_mode = #tpu.pipeline_mode<synchronous>, transform_indices = @transform_12, window_bounds = array<i64: 1, 128>}, {transform_indices = @transform_13, window_bounds = array<i64: 1, 1, 128>}]} {
    %c0 = arith.constant 0 : index
    %c0_0 = arith.constant 0 : index
    %c0_1 = arith.constant 0 : index
    %0 = vector.load %arg1[%c0, %c0_0, %c0_1] : memref<1x1024x32xbf16, #tpu.memory_space<vmem>>, vector<1x1024x32xbf16>
    %1 = vector.shape_cast %0 : vector<1x1024x32xbf16> to vector<1024x32xbf16>
    %c0_2 = arith.constant 0 : index
    %c0_3 = arith.constant 0 : index
    %2 = vector.load %arg2[%c0_2, %c0_3] : memref<32x128xbf16, #tpu.memory_space<vmem>>, vector<32x128xbf16>
    %cst = arith.constant dense<0.000000e+00> : vector<1024x128xf32>
    %3 = tpu.matmul %1, %2, %cst {dimension_numbers = #tpu.dot_dimension_numbers<[1], [0], [0], [1], [0, 0, 1, 1], [], []>} : vector<1024x32xbf16>, vector<32x128xbf16>, vector<1024x128xf32> -> vector<1024x128xf32>
    %4 = vector.shape_cast %3 : vector<1024x128xf32> to vector<1x32x32x128xf32>
    %c0_4 = arith.constant 0 : index
    %c0_5 = arith.constant 0 : index
    %c0_6 = arith.constant 0 : index
    %c0_7 = arith.constant 0 : index
    %5 = vector.load %arg15[%c0_4, %c0_5, %c0_6, %c0_7] : memref<1x32x32x128xf32, #tpu.memory_space<vmem>>, vector<1x32x32x128xf32>
    tpu.vector_store %arg15[%c0_4, %c0_5, %c0_6, %c0_7], %4 {strides = array<i32>} : memref<1x32x32x128xf32, #tpu.memory_space<vmem>>, vector<1x32x32x128xf32>,
    %c0_8 = arith.constant 0 : index
    %c0_9 = arith.constant 0 : index
    %c0_10 = arith.constant 0 : index
    %c0_11 = arith.constant 0 : index
    %6 = tpu.strided_load %arg15[%c0_8, %c0_9, %c0_10, %c0_11] {strides = array<i32: 1, 2, 2, 1>} : memref<1x32x32x128xf32, #tpu.memory_space<vmem>>, vector<1x16x16x128xf32>
    %c0_12 = arith.constant 0 : index
    %c0_13 = arith.constant 0 : index
    %c1 = arith.constant 1 : index
    %c0_14 = arith.constant 0 : index
    %7 = tpu.strided_load %arg15[%c0_12, %c0_13, %c1, %c0_14] {strides = array<i32: 1, 2, 2, 1>} : memref<1x32x32x128xf32, #tpu.memory_space<vmem>>, vector<1x16x16x128xf32>
    %c0_15 = arith.constant 0 : index
    %c1_16 = arith.constant 1 : index
    %c0_17 = arith.constant 0 : index
    %c0_18 = arith.constant 0 : index
    %8 = tpu.strided_load %arg15[%c0_15, %c1_16, %c0_17, %c0_18] {strides = array<i32: 1, 2, 2, 1>} : memref<1x32x32x128xf32, #tpu.memory_space<vmem>>, vector<1x16x16x128xf32>
    %c0_19 = arith.constant 0 : index
    %c1_20 = arith.constant 1 : index
    %c1_21 = arith.constant 1 : index
    %c0_22 = arith.constant 0 : index
    %9 = tpu.strided_load %arg15[%c0_19, %c1_20, %c1_21, %c0_22] {strides = array<i32: 1, 2, 2, 1>} : memref<1x32x32x128xf32, #tpu.memory_space<vmem>>, vector<1x16x16x128xf32>
    %10 = arith.maximumf %6, %7 : vector<1x16x16x128xf32>
    %11 = arith.maximumf %8, %9 : vector<1x16x16x128xf32>
    %12 = arith.maximumf %10, %11 : vector<1x16x16x128xf32>
    %c0_23 = arith.constant 0 : index
    %c0_24 = arith.constant 0 : index
    %13 = vector.load %arg7[%c0_23, %c0_24] : memref<1x128xf32, #tpu.memory_space<vmem>>, vector<1x128xf32>
    %14 = vector.shape_cast %13 : vector<1x128xf32> to vector<1x1x1x128xf32>
    %15 = vector.broadcast %14 : vector<1x1x1x128xf32> to vector<1x16x16x128xf32>
    %16 = arith.addf %12, %15 : vector<1x16x16x128xf32>
    %cst_25 = arith.constant 0.000000e+00 : f32
    %17 = vector.broadcast %cst_25 : f32 to vector<1x16x16x128xf32>
    %18 = arith.maximumf %16, %17 : vector<1x16x16x128xf32>
    %cst_26 = arith.constant 0.000000e+00 : f32
    %19 = vector.broadcast %cst_26 : f32 to vector<1x1x18x128xf32>
    %cst_27 = arith.constant 0.000000e+00 : f32
    %20 = vector.broadcast %cst_27 : f32 to vector<1x16x1x128xf32>
    %c0_28 = arith.constant 0 : index
    %c0_29 = arith.constant 0 : index
    %c0_30 = arith.constant 0 : index
    %c0_31 = arith.constant 0 : index
    %21 = vector.load %arg20[%c0_28, %c0_29, %c0_30, %c0_31] : memref<1x18x18x128xf32, #tpu.memory_space<vmem>>, vector<1x1x18x128xf32>
    tpu.vector_store %arg20[%c0_28, %c0_29, %c0_30, %c0_31], %19 {strides = array<i32>} : memref<1x18x18x128xf32, #tpu.memory_space<vmem>>, vector<1x1x18x128xf32>,
    %c0_32 = arith.constant 0 : index
    %c17 = arith.constant 17 : index
    %c0_33 = arith.constant 0 : index
    %c0_34 = arith.constant 0 : index
    %22 = vector.load %arg20[%c0_32, %c17, %c0_33, %c0_34] : memref<1x18x18x128xf32, #tpu.memory_space<vmem>>, vector<1x1x18x128xf32>
    tpu.vector_store %arg20[%c0_32, %c17, %c0_33, %c0_34], %19 {strides = array<i32>} : memref<1x18x18x128xf32, #tpu.memory_space<vmem>>, vector<1x1x18x128xf32>,
    %c0_35 = arith.constant 0 : index
    %c1_36 = arith.constant 1 : index
    %c0_37 = arith.constant 0 : index
    %c0_38 = arith.constant 0 : index
    %23 = vector.load %arg20[%c0_35, %c1_36, %c0_37, %c0_38] : memref<1x18x18x128xf32, #tpu.memory_space<vmem>>, vector<1x16x1x128xf32>
    tpu.vector_store %arg20[%c0_35, %c1_36, %c0_37, %c0_38], %20 {strides = array<i32>} : memref<1x18x18x128xf32, #tpu.memory_space<vmem>>, vector<1x16x1x128xf32>,
    %c0_39 = arith.constant 0 : index
    %c1_40 = arith.constant 1 : index
    %c17_41 = arith.constant 17 : index
    %c0_42 = arith.constant 0 : index
    %24 = vector.load %arg20[%c0_39, %c1_40, %c17_41, %c0_42] : memref<1x18x18x128xf32, #tpu.memory_space<vmem>>, vector<1x16x1x128xf32>
    tpu.vector_store %arg20[%c0_39, %c1_40, %c17_41, %c0_42], %20 {strides = array<i32>} : memref<1x18x18x128xf32, #tpu.memory_space<vmem>>, vector<1x16x1x128xf32>,
    %c0_43 = arith.constant 0 : index
    %c1_44 = arith.constant 1 : index
    %c1_45 = arith.constant 1 : index
    %c0_46 = arith.constant 0 : index
    %25 = vector.load %arg20[%c0_43, %c1_44, %c1_45, %c0_46] : memref<1x18x18x128xf32, #tpu.memory_space<vmem>>, vector<1x16x16x128xf32>
    tpu.vector_store %arg20[%c0_43, %c1_44, %c1_45, %c0_46], %18 {strides = array<i32>} : memref<1x18x18x128xf32, #tpu.memory_space<vmem>>, vector<1x16x16x128xf32>,
    %c0_47 = arith.constant 0 : index
    %c0_48 = arith.constant 0 : index
    %c0_49 = arith.constant 0 : index
    %c0_50 = arith.constant 0 : index
    %26 = vector.load %arg20[%c0_47, %c0_48, %c0_49, %c0_50] : memref<1x18x18x128xf32, #tpu.memory_space<vmem>>, vector<1x16x16x128xf32>
    %27 = vector.shape_cast %26 : vector<1x16x16x128xf32> to vector<256x128xf32>
    %c0_51 = arith.constant 0 : index
    %c0_52 = arith.constant 0 : index
    %c1_53 = arith.constant 1 : index
    %c0_54 = arith.constant 0 : index
    %28 = vector.load %arg20[%c0_51, %c0_52, %c1_53, %c0_54] : memref<1x18x18x128xf32, #tpu.memory_space<vmem>>, vector<1x16x16x128xf32>
    %29 = vector.shape_cast %28 : vector<1x16x16x128xf32> to vector<256x128xf32>
    %c0_55 = arith.constant 0 : index
    %c0_56 = arith.constant 0 : index
    %c2 = arith.constant 2 : index
    %c0_57 = arith.constant 0 : index
    %30 = vector.load %arg20[%c0_55, %c0_56, %c2, %c0_57] : memref<1x18x18x128xf32, #tpu.memory_space<vmem>>, vector<1x16x16x128xf32>
    %31 = vector.shape_cast %30 : vector<1x16x16x128xf32> to vector<256x128xf32>
    %c0_58 = arith.constant 0 : index
    %c1_59 = arith.constant 1 : index
    %c0_60 = arith.constant 0 : index
    %c0_61 = arith.constant 0 : index
    %32 = vector.load %arg20[%c0_58, %c1_59, %c0_60, %c0_61] : memref<1x18x18x128xf32, #tpu.memory_space<vmem>>, vector<1x16x16x128xf32>
    %33 = vector.shape_cast %32 : vector<1x16x16x128xf32> to vector<256x128xf32>
    %c0_62 = arith.constant 0 : index
    %c1_63 = arith.constant 1 : index
    %c1_64 = arith.constant 1 : index
    %c0_65 = arith.constant 0 : index
    %34 = vector.load %arg20[%c0_62, %c1_63, %c1_64, %c0_65] : memref<1x18x18x128xf32, #tpu.memory_space<vmem>>, vector<1x16x16x128xf32>
    %35 = vector.shape_cast %34 : vector<1x16x16x128xf32> to vector<256x128xf32>
    %c0_66 = arith.constant 0 : index
    %c1_67 = arith.constant 1 : index
    %c2_68 = arith.constant 2 : index
    %c0_69 = arith.constant 0 : index
    %36 = vector.load %arg20[%c0_66, %c1_67, %c2_68, %c0_69] : memref<1x18x18x128xf32, #tpu.memory_space<vmem>>, vector<1x16x16x128xf32>
    %37 = vector.shape_cast %36 : vector<1x16x16x128xf32> to vector<256x128xf32>
    %c0_70 = arith.constant 0 : index
    %c2_71 = arith.constant 2 : index
    %c0_72 = arith.constant 0 : index
    %c0_73 = arith.constant 0 : index
    %38 = vector.load %arg20[%c0_70, %c2_71, %c0_72, %c0_73] : memref<1x18x18x128xf32, #tpu.memory_space<vmem>>, vector<1x16x16x128xf32>
    %39 = vector.shape_cast %38 : vector<1x16x16x128xf32> to vector<256x128xf32>
    %c0_74 = arith.constant 0 : index
    %c2_75 = arith.constant 2 : index
    %c1_76 = arith.constant 1 : index
    %c0_77 = arith.constant 0 : index
    %40 = vector.load %arg20[%c0_74, %c2_75, %c1_76, %c0_77] : memref<1x18x18x128xf32, #tpu.memory_space<vmem>>, vector<1x16x16x128xf32>
    %41 = vector.shape_cast %40 : vector<1x16x16x128xf32> to vector<256x128xf32>
    %c0_78 = arith.constant 0 : index
    %c2_79 = arith.constant 2 : index
    %c2_80 = arith.constant 2 : index
    %c0_81 = arith.constant 0 : index
    %42 = vector.load %arg20[%c0_78, %c2_79, %c2_80, %c0_81] : memref<1x18x18x128xf32, #tpu.memory_space<vmem>>, vector<1x16x16x128xf32>
    %43 = vector.shape_cast %42 : vector<1x16x16x128xf32> to vector<256x128xf32>
    %44 = tpu.concatenate %27, %29, %31, %33, %35, %37, %39, %41, %43 in 1 : vector<256x128xf32>, vector<256x128xf32>, vector<256x128xf32>, vector<256x128xf32>, vector<256x128xf32>, vector<256x128xf32>, vector<256x128xf32>, vector<256x128xf32>, vector<256x128xf32> -> vector<256x1152xf32>
    %45 = arith.truncf %44 : vector<256x1152xf32> to vector<256x1152xbf16>
    %c0_82 = arith.constant 0 : index
    %c0_83 = arith.constant 0 : index
    %46 = vector.load %arg3[%c0_82, %c0_83] : memref<1152x128xbf16, #tpu.memory_space<vmem>>, vector<1152x128xbf16>
    %cst_84 = arith.constant dense<0.000000e+00> : vector<256x128xf32>
    %47 = tpu.matmul %45, %46, %cst_84 {dimension_numbers = #tpu.dot_dimension_numbers<[1], [0], [0], [1], [0, 0, 1, 1], [], []>} : vector<256x1152xbf16>, vector<1152x128xbf16>, vector<256x128xf32> -> vector<256x128xf32>
    %48 = vector.shape_cast %47 : vector<256x128xf32> to vector<1x16x16x128xf32>
    %c0_85 = arith.constant 0 : index
    %c0_86 = arith.constant 0 : index
    %c0_87 = arith.constant 0 : index
    %c0_88 = arith.constant 0 : index
    %49 = vector.load %arg16[%c0_85, %c0_86, %c0_87, %c0_88] : memref<1x16x16x128xf32, #tpu.memory_space<vmem>>, vector<1x16x16x128xf32>
    tpu.vector_store %arg16[%c0_85, %c0_86, %c0_87, %c0_88], %48 {strides = array<i32>} : memref<1x16x16x128xf32, #tpu.memory_space<vmem>>, vector<1x16x16x128xf32>,
    %c0_89 = arith.constant 0 : index
    %c0_90 = arith.constant 0 : index
    %c0_91 = arith.constant 0 : index
    %c0_92 = arith.constant 0 : index
    %50 = tpu.strided_load %arg16[%c0_89, %c0_90, %c0_91, %c0_92] {strides = array<i32: 1, 2, 2, 1>} : memref<1x16x16x128xf32, #tpu.memory_space<vmem>>, vector<1x8x8x128xf32>
    %c0_93 = arith.constant 0 : index
    %c0_94 = arith.constant 0 : index
    %c1_95 = arith.constant 1 : index
    %c0_96 = arith.constant 0 : index
    %51 = tpu.strided_load %arg16[%c0_93, %c0_94, %c1_95, %c0_96] {strides = array<i32: 1, 2, 2, 1>} : memref<1x16x16x128xf32, #tpu.memory_space<vmem>>, vector<1x8x8x128xf32>
    %c0_97 = arith.constant 0 : index
    %c1_98 = arith.constant 1 : index
    %c0_99 = arith.constant 0 : index
    %c0_100 = arith.constant 0 : index
    %52 = tpu.strided_load %arg16[%c0_97, %c1_98, %c0_99, %c0_100] {strides = array<i32: 1, 2, 2, 1>} : memref<1x16x16x128xf32, #tpu.memory_space<vmem>>, vector<1x8x8x128xf32>
    %c0_101 = arith.constant 0 : index
    %c1_102 = arith.constant 1 : index
    %c1_103 = arith.constant 1 : index
    %c0_104 = arith.constant 0 : index
    %53 = tpu.strided_load %arg16[%c0_101, %c1_102, %c1_103, %c0_104] {strides = array<i32: 1, 2, 2, 1>} : memref<1x16x16x128xf32, #tpu.memory_space<vmem>>, vector<1x8x8x128xf32>
    %54 = arith.maximumf %50, %51 : vector<1x8x8x128xf32>
    %55 = arith.maximumf %52, %53 : vector<1x8x8x128xf32>
    %56 = arith.maximumf %54, %55 : vector<1x8x8x128xf32>
    %c0_105 = arith.constant 0 : index
    %c0_106 = arith.constant 0 : index
    %57 = vector.load %arg8[%c0_105, %c0_106] : memref<1x128xf32, #tpu.memory_space<vmem>>, vector<1x128xf32>
    %58 = vector.shape_cast %57 : vector<1x128xf32> to vector<1x1x1x128xf32>
    %59 = vector.broadcast %58 : vector<1x1x1x128xf32> to vector<1x8x8x128xf32>
    %60 = arith.addf %56, %59 : vector<1x8x8x128xf32>
    %cst_107 = arith.constant 0.000000e+00 : f32
    %61 = vector.broadcast %cst_107 : f32 to vector<1x8x8x128xf32>
    %62 = arith.maximumf %60, %61 : vector<1x8x8x128xf32>
    %cst_108 = arith.constant 0.000000e+00 : f32
    %63 = vector.broadcast %cst_108 : f32 to vector<1x1x10x128xf32>
    %cst_109 = arith.constant 0.000000e+00 : f32
    %64 = vector.broadcast %cst_109 : f32 to vector<1x8x1x128xf32>
    %c0_110 = arith.constant 0 : index
    %c0_111 = arith.constant 0 : index
    %c0_112 = arith.constant 0 : index
    %c0_113 = arith.constant 0 : index
    %65 = vector.load %arg21[%c0_110, %c0_111, %c0_112, %c0_113] : memref<1x10x10x128xf32, #tpu.memory_space<vmem>>, vector<1x1x10x128xf32>
    tpu.vector_store %arg21[%c0_110, %c0_111, %c0_112, %c0_113], %63 {strides = array<i32>} : memref<1x10x10x128xf32, #tpu.memory_space<vmem>>, vector<1x1x10x128xf32>,
    %c0_114 = arith.constant 0 : index
    %c9 = arith.constant 9 : index
    %c0_115 = arith.constant 0 : index
    %c0_116 = arith.constant 0 : index
    %66 = vector.load %arg21[%c0_114, %c9, %c0_115, %c0_116] : memref<1x10x10x128xf32, #tpu.memory_space<vmem>>, vector<1x1x10x128xf32>
    tpu.vector_store %arg21[%c0_114, %c9, %c0_115, %c0_116], %63 {strides = array<i32>} : memref<1x10x10x128xf32, #tpu.memory_space<vmem>>, vector<1x1x10x128xf32>,
    %c0_117 = arith.constant 0 : index
    %c1_118 = arith.constant 1 : index
    %c0_119 = arith.constant 0 : index
    %c0_120 = arith.constant 0 : index
    %67 = vector.load %arg21[%c0_117, %c1_118, %c0_119, %c0_120] : memref<1x10x10x128xf32, #tpu.memory_space<vmem>>, vector<1x8x1x128xf32>
    tpu.vector_store %arg21[%c0_117, %c1_118, %c0_119, %c0_120], %64 {strides = array<i32>} : memref<1x10x10x128xf32, #tpu.memory_space<vmem>>, vector<1x8x1x128xf32>,
    %c0_121 = arith.constant 0 : index
    %c1_122 = arith.constant 1 : index
    %c9_123 = arith.constant 9 : index
    %c0_124 = arith.constant 0 : index
    %68 = vector.load %arg21[%c0_121, %c1_122, %c9_123, %c0_124] : memref<1x10x10x128xf32, #tpu.memory_space<vmem>>, vector<1x8x1x128xf32>
    tpu.vector_store %arg21[%c0_121, %c1_122, %c9_123, %c0_124], %64 {strides = array<i32>} : memref<1x10x10x128xf32, #tpu.memory_space<vmem>>, vector<1x8x1x128xf32>,
    %c0_125 = arith.constant 0 : index
    %c1_126 = arith.constant 1 : index
    %c1_127 = arith.constant 1 : index
    %c0_128 = arith.constant 0 : index
    %69 = vector.load %arg21[%c0_125, %c1_126, %c1_127, %c0_128] : memref<1x10x10x128xf32, #tpu.memory_space<vmem>>, vector<1x8x8x128xf32>
    tpu.vector_store %arg21[%c0_125, %c1_126, %c1_127, %c0_128], %62 {strides = array<i32>} : memref<1x10x10x128xf32, #tpu.memory_space<vmem>>, vector<1x8x8x128xf32>,
    %c0_129 = arith.constant 0 : index
    %c0_130 = arith.constant 0 : index
    %c0_131 = arith.constant 0 : index
    %c0_132 = arith.constant 0 : index
    %70 = vector.load %arg21[%c0_129, %c0_130, %c0_131, %c0_132] : memref<1x10x10x128xf32, #tpu.memory_space<vmem>>, vector<1x8x8x128xf32>
    %71 = vector.shape_cast %70 : vector<1x8x8x128xf32> to vector<64x128xf32>
    %c0_133 = arith.constant 0 : index
    %c0_134 = arith.constant 0 : index
    %c1_135 = arith.constant 1 : index
    %c0_136 = arith.constant 0 : index
    %72 = vector.load %arg21[%c0_133, %c0_134, %c1_135, %c0_136] : memref<1x10x10x128xf32, #tpu.memory_space<vmem>>, vector<1x8x8x128xf32>
    %73 = vector.shape_cast %72 : vector<1x8x8x128xf32> to vector<64x128xf32>
    %c0_137 = arith.constant 0 : index
    %c0_138 = arith.constant 0 : index
    %c2_139 = arith.constant 2 : index
    %c0_140 = arith.constant 0 : index
    %74 = vector.load %arg21[%c0_137, %c0_138, %c2_139, %c0_140] : memref<1x10x10x128xf32, #tpu.memory_space<vmem>>, vector<1x8x8x128xf32>
    %75 = vector.shape_cast %74 : vector<1x8x8x128xf32> to vector<64x128xf32>
    %c0_141 = arith.constant 0 : index
    %c1_142 = arith.constant 1 : index
    %c0_143 = arith.constant 0 : index
    %c0_144 = arith.constant 0 : index
    %76 = vector.load %arg21[%c0_141, %c1_142, %c0_143, %c0_144] : memref<1x10x10x128xf32, #tpu.memory_space<vmem>>, vector<1x8x8x128xf32>
    %77 = vector.shape_cast %76 : vector<1x8x8x128xf32> to vector<64x128xf32>
    %c0_145 = arith.constant 0 : index
    %c1_146 = arith.constant 1 : index
    %c1_147 = arith.constant 1 : index
    %c0_148 = arith.constant 0 : index
    %78 = vector.load %arg21[%c0_145, %c1_146, %c1_147, %c0_148] : memref<1x10x10x128xf32, #tpu.memory_space<vmem>>, vector<1x8x8x128xf32>
    %79 = vector.shape_cast %78 : vector<1x8x8x128xf32> to vector<64x128xf32>
    %c0_149 = arith.constant 0 : index
    %c1_150 = arith.constant 1 : index
    %c2_151 = arith.constant 2 : index
    %c0_152 = arith.constant 0 : index
    %80 = vector.load %arg21[%c0_149, %c1_150, %c2_151, %c0_152] : memref<1x10x10x128xf32, #tpu.memory_space<vmem>>, vector<1x8x8x128xf32>
    %81 = vector.shape_cast %80 : vector<1x8x8x128xf32> to vector<64x128xf32>
    %c0_153 = arith.constant 0 : index
    %c2_154 = arith.constant 2 : index
    %c0_155 = arith.constant 0 : index
    %c0_156 = arith.constant 0 : index
    %82 = vector.load %arg21[%c0_153, %c2_154, %c0_155, %c0_156] : memref<1x10x10x128xf32, #tpu.memory_space<vmem>>, vector<1x8x8x128xf32>
    %83 = vector.shape_cast %82 : vector<1x8x8x128xf32> to vector<64x128xf32>
    %c0_157 = arith.constant 0 : index
    %c2_158 = arith.constant 2 : index
    %c1_159 = arith.constant 1 : index
    %c0_160 = arith.constant 0 : index
    %84 = vector.load %arg21[%c0_157, %c2_158, %c1_159, %c0_160] : memref<1x10x10x128xf32, #tpu.memory_space<vmem>>, vector<1x8x8x128xf32>
    %85 = vector.shape_cast %84 : vector<1x8x8x128xf32> to vector<64x128xf32>
    %c0_161 = arith.constant 0 : index
    %c2_162 = arith.constant 2 : index
    %c2_163 = arith.constant 2 : index
    %c0_164 = arith.constant 0 : index
    %86 = vector.load %arg21[%c0_161, %c2_162, %c2_163, %c0_164] : memref<1x10x10x128xf32, #tpu.memory_space<vmem>>, vector<1x8x8x128xf32>
    %87 = vector.shape_cast %86 : vector<1x8x8x128xf32> to vector<64x128xf32>
    %88 = tpu.concatenate %71, %73, %75, %77, %79, %81, %83, %85, %87 in 1 : vector<64x128xf32>, vector<64x128xf32>, vector<64x128xf32>, vector<64x128xf32>, vector<64x128xf32>, vector<64x128xf32>, vector<64x128xf32>, vector<64x128xf32>, vector<64x128xf32> -> vector<64x1152xf32>
    %89 = arith.truncf %88 : vector<64x1152xf32> to vector<64x1152xbf16>
    %c0_165 = arith.constant 0 : index
    %c0_166 = arith.constant 0 : index
    %90 = vector.load %arg4[%c0_165, %c0_166] : memref<1152x128xbf16, #tpu.memory_space<vmem>>, vector<1152x128xbf16>
    %cst_167 = arith.constant dense<0.000000e+00> : vector<64x128xf32>
    %91 = tpu.matmul %89, %90, %cst_167 {dimension_numbers = #tpu.dot_dimension_numbers<[1], [0], [0], [1], [0, 0, 1, 1], [], []>} : vector<64x1152xbf16>, vector<1152x128xbf16>, vector<64x128xf32> -> vector<64x128xf32>
    %92 = vector.shape_cast %91 : vector<64x128xf32> to vector<1x8x8x128xf32>
    %c0_168 = arith.constant 0 : index
    %c0_169 = arith.constant 0 : index
    %c0_170 = arith.constant 0 : index
    %c0_171 = arith.constant 0 : index
    %93 = vector.load %arg17[%c0_168, %c0_169, %c0_170, %c0_171] : memref<1x8x8x128xf32, #tpu.memory_space<vmem>>, vector<1x8x8x128xf32>
    tpu.vector_store %arg17[%c0_168, %c0_169, %c0_170, %c0_171], %92 {strides = array<i32>} : memref<1x8x8x128xf32, #tpu.memory_space<vmem>>, vector<1x8x8x128xf32>,
    %c0_172 = arith.constant 0 : index
    %c0_173 = arith.constant 0 : index
    %c0_174 = arith.constant 0 : index
    %c0_175 = arith.constant 0 : index
    %94 = tpu.strided_load %arg17[%c0_172, %c0_173, %c0_174, %c0_175] {strides = array<i32: 1, 2, 2, 1>} : memref<1x8x8x128xf32, #tpu.memory_space<vmem>>, vector<1x4x4x128xf32>
    %c0_176 = arith.constant 0 : index
    %c0_177 = arith.constant 0 : index
    %c1_178 = arith.constant 1 : index
    %c0_179 = arith.constant 0 : index
    %95 = tpu.strided_load %arg17[%c0_176, %c0_177, %c1_178, %c0_179] {strides = array<i32: 1, 2, 2, 1>} : memref<1x8x8x128xf32, #tpu.memory_space<vmem>>, vector<1x4x4x128xf32>
    %c0_180 = arith.constant 0 : index
    %c1_181 = arith.constant 1 : index
    %c0_182 = arith.constant 0 : index
    %c0_183 = arith.constant 0 : index
    %96 = tpu.strided_load %arg17[%c0_180, %c1_181, %c0_182, %c0_183] {strides = array<i32: 1, 2, 2, 1>} : memref<1x8x8x128xf32, #tpu.memory_space<vmem>>, vector<1x4x4x128xf32>
    %c0_184 = arith.constant 0 : index
    %c1_185 = arith.constant 1 : index
    %c1_186 = arith.constant 1 : index
    %c0_187 = arith.constant 0 : index
    %97 = tpu.strided_load %arg17[%c0_184, %c1_185, %c1_186, %c0_187] {strides = array<i32: 1, 2, 2, 1>} : memref<1x8x8x128xf32, #tpu.memory_space<vmem>>, vector<1x4x4x128xf32>
    %98 = arith.maximumf %94, %95 : vector<1x4x4x128xf32>
    %99 = arith.maximumf %96, %97 : vector<1x4x4x128xf32>
    %100 = arith.maximumf %98, %99 : vector<1x4x4x128xf32>
    %c0_188 = arith.constant 0 : index
    %c0_189 = arith.constant 0 : index
    %101 = vector.load %arg9[%c0_188, %c0_189] : memref<1x128xf32, #tpu.memory_space<vmem>>, vector<1x128xf32>
    %102 = vector.shape_cast %101 : vector<1x128xf32> to vector<1x1x1x128xf32>
    %103 = vector.broadcast %102 : vector<1x1x1x128xf32> to vector<1x4x4x128xf32>
    %104 = arith.addf %100, %103 : vector<1x4x4x128xf32>
    %cst_190 = arith.constant 0.000000e+00 : f32
    %105 = vector.broadcast %cst_190 : f32 to vector<1x4x4x128xf32>
    %106 = arith.maximumf %104, %105 : vector<1x4x4x128xf32>
    %cst_191 = arith.constant 0.000000e+00 : f32
    %107 = vector.broadcast %cst_191 : f32 to vector<1x1x10x128xf32>
    %cst_192 = arith.constant 0.000000e+00 : f32
    %108 = vector.broadcast %cst_192 : f32 to vector<1x4x1x128xf32>
    %c0_193 = arith.constant 0 : index
    %c0_194 = arith.constant 0 : index
    %c0_195 = arith.constant 0 : index
    %c0_196 = arith.constant 0 : index
    %109 = vector.load %arg22[%c0_193, %c0_194, %c0_195, %c0_196] : memref<1x6x10x128xf32, #tpu.memory_space<vmem>>, vector<1x1x10x128xf32>
    tpu.vector_store %arg22[%c0_193, %c0_194, %c0_195, %c0_196], %107 {strides = array<i32>} : memref<1x6x10x128xf32, #tpu.memory_space<vmem>>, vector<1x1x10x128xf32>,
    %c0_197 = arith.constant 0 : index
    %c5 = arith.constant 5 : index
    %c0_198 = arith.constant 0 : index
    %c0_199 = arith.constant 0 : index
    %110 = vector.load %arg22[%c0_197, %c5, %c0_198, %c0_199] : memref<1x6x10x128xf32, #tpu.memory_space<vmem>>, vector<1x1x10x128xf32>
    tpu.vector_store %arg22[%c0_197, %c5, %c0_198, %c0_199], %107 {strides = array<i32>} : memref<1x6x10x128xf32, #tpu.memory_space<vmem>>, vector<1x1x10x128xf32>,
    %c0_200 = arith.constant 0 : index
    %c1_201 = arith.constant 1 : index
    %c0_202 = arith.constant 0 : index
    %c0_203 = arith.constant 0 : index
    %111 = vector.load %arg22[%c0_200, %c1_201, %c0_202, %c0_203] : memref<1x6x10x128xf32, #tpu.memory_space<vmem>>, vector<1x4x1x128xf32>
    tpu.vector_store %arg22[%c0_200, %c1_201, %c0_202, %c0_203], %108 {strides = array<i32>} : memref<1x6x10x128xf32, #tpu.memory_space<vmem>>, vector<1x4x1x128xf32>,
    %c0_204 = arith.constant 0 : index
    %c1_205 = arith.constant 1 : index
    %c5_206 = arith.constant 5 : index
    %c0_207 = arith.constant 0 : index
    %112 = vector.load %arg22[%c0_204, %c1_205, %c5_206, %c0_207] : memref<1x6x10x128xf32, #tpu.memory_space<vmem>>, vector<1x4x1x128xf32>
    tpu.vector_store %arg22[%c0_204, %c1_205, %c5_206, %c0_207], %108 {strides = array<i32>} : memref<1x6x10x128xf32, #tpu.memory_space<vmem>>, vector<1x4x1x128xf32>,
    %c0_208 = arith.constant 0 : index
    %c1_209 = arith.constant 1 : index
    %c1_210 = arith.constant 1 : index
    %c0_211 = arith.constant 0 : index
    %113 = vector.load %arg22[%c0_208, %c1_209, %c1_210, %c0_211] : memref<1x6x10x128xf32, #tpu.memory_space<vmem>>, vector<1x4x4x128xf32>
    tpu.vector_store %arg22[%c0_208, %c1_209, %c1_210, %c0_211], %106 {strides = array<i32>} : memref<1x6x10x128xf32, #tpu.memory_space<vmem>>, vector<1x4x4x128xf32>,
    %c0_212 = arith.constant 0 : index
    %c0_213 = arith.constant 0 : index
    %c0_214 = arith.constant 0 : index
    %c0_215 = arith.constant 0 : index
    %114 = vector.load %arg22[%c0_212, %c0_213, %c0_214, %c0_215] : memref<1x6x10x128xf32, #tpu.memory_space<vmem>>, vector<1x4x8x128xf32>
    %115 = vector.shape_cast %114 : vector<1x4x8x128xf32> to vector<32x128xf32>
    %c0_216 = arith.constant 0 : index
    %c0_217 = arith.constant 0 : index
    %c1_218 = arith.constant 1 : index
    %c0_219 = arith.constant 0 : index
    %116 = vector.load %arg22[%c0_216, %c0_217, %c1_218, %c0_219] : memref<1x6x10x128xf32, #tpu.memory_space<vmem>>, vector<1x4x8x128xf32>
    %117 = vector.shape_cast %116 : vector<1x4x8x128xf32> to vector<32x128xf32>
    %c0_220 = arith.constant 0 : index
    %c0_221 = arith.constant 0 : index
    %c2_222 = arith.constant 2 : index
    %c0_223 = arith.constant 0 : index
    %118 = vector.load %arg22[%c0_220, %c0_221, %c2_222, %c0_223] : memref<1x6x10x128xf32, #tpu.memory_space<vmem>>, vector<1x4x8x128xf32>
    %119 = vector.shape_cast %118 : vector<1x4x8x128xf32> to vector<32x128xf32>
    %c0_224 = arith.constant 0 : index
    %c1_225 = arith.constant 1 : index
    %c0_226 = arith.constant 0 : index
    %c0_227 = arith.constant 0 : index
    %120 = vector.load %arg22[%c0_224, %c1_225, %c0_226, %c0_227] : memref<1x6x10x128xf32, #tpu.memory_space<vmem>>, vector<1x4x8x128xf32>
    %121 = vector.shape_cast %120 : vector<1x4x8x128xf32> to vector<32x128xf32>
    %c0_228 = arith.constant 0 : index
    %c1_229 = arith.constant 1 : index
    %c1_230 = arith.constant 1 : index
    %c0_231 = arith.constant 0 : index
    %122 = vector.load %arg22[%c0_228, %c1_229, %c1_230, %c0_231] : memref<1x6x10x128xf32, #tpu.memory_space<vmem>>, vector<1x4x8x128xf32>
    %123 = vector.shape_cast %122 : vector<1x4x8x128xf32> to vector<32x128xf32>
    %c0_232 = arith.constant 0 : index
    %c1_233 = arith.constant 1 : index
    %c2_234 = arith.constant 2 : index
    %c0_235 = arith.constant 0 : index
    %124 = vector.load %arg22[%c0_232, %c1_233, %c2_234, %c0_235] : memref<1x6x10x128xf32, #tpu.memory_space<vmem>>, vector<1x4x8x128xf32>
    %125 = vector.shape_cast %124 : vector<1x4x8x128xf32> to vector<32x128xf32>
    %c0_236 = arith.constant 0 : index
    %c2_237 = arith.constant 2 : index
    %c0_238 = arith.constant 0 : index
    %c0_239 = arith.constant 0 : index
    %126 = vector.load %arg22[%c0_236, %c2_237, %c0_238, %c0_239] : memref<1x6x10x128xf32, #tpu.memory_space<vmem>>, vector<1x4x8x128xf32>
    %127 = vector.shape_cast %126 : vector<1x4x8x128xf32> to vector<32x128xf32>
    %c0_240 = arith.constant 0 : index
    %c2_241 = arith.constant 2 : index
    %c1_242 = arith.constant 1 : index
    %c0_243 = arith.constant 0 : index
    %128 = vector.load %arg22[%c0_240, %c2_241, %c1_242, %c0_243] : memref<1x6x10x128xf32, #tpu.memory_space<vmem>>, vector<1x4x8x128xf32>
    %129 = vector.shape_cast %128 : vector<1x4x8x128xf32> to vector<32x128xf32>
    %c0_244 = arith.constant 0 : index
    %c2_245 = arith.constant 2 : index
    %c2_246 = arith.constant 2 : index
    %c0_247 = arith.constant 0 : index
    %130 = vector.load %arg22[%c0_244, %c2_245, %c2_246, %c0_247] : memref<1x6x10x128xf32, #tpu.memory_space<vmem>>, vector<1x4x8x128xf32>
    %131 = vector.shape_cast %130 : vector<1x4x8x128xf32> to vector<32x128xf32>
    %132 = tpu.concatenate %115, %117, %119, %121, %123, %125, %127, %129, %131 in 1 : vector<32x128xf32>, vector<32x128xf32>, vector<32x128xf32>, vector<32x128xf32>, vector<32x128xf32>, vector<32x128xf32>, vector<32x128xf32>, vector<32x128xf32>, vector<32x128xf32> -> vector<32x1152xf32>
    %133 = arith.truncf %132 : vector<32x1152xf32> to vector<32x1152xbf16>
    %c0_248 = arith.constant 0 : index
    %c0_249 = arith.constant 0 : index
    %134 = vector.load %arg5[%c0_248, %c0_249] : memref<1152x128xbf16, #tpu.memory_space<vmem>>, vector<1152x128xbf16>
    %cst_250 = arith.constant dense<0.000000e+00> : vector<32x128xf32>
    %135 = tpu.matmul %133, %134, %cst_250 {dimension_numbers = #tpu.dot_dimension_numbers<[1], [0], [0], [1], [0, 0, 1, 1], [], []>} : vector<32x1152xbf16>, vector<1152x128xbf16>, vector<32x128xf32> -> vector<32x128xf32>
    %136 = vector.shape_cast %135 : vector<32x128xf32> to vector<1x4x8x128xf32>
    %c0_251 = arith.constant 0 : index
    %c0_252 = arith.constant 0 : index
    %c0_253 = arith.constant 0 : index
    %c0_254 = arith.constant 0 : index
    %137 = vector.load %arg18[%c0_251, %c0_252, %c0_253, %c0_254] : memref<1x4x8x128xf32, #tpu.memory_space<vmem>>, vector<1x4x8x128xf32>
    tpu.vector_store %arg18[%c0_251, %c0_252, %c0_253, %c0_254], %136 {strides = array<i32>} : memref<1x4x8x128xf32, #tpu.memory_space<vmem>>, vector<1x4x8x128xf32>,
    %c0_255 = arith.constant 0 : index
    %c0_256 = arith.constant 0 : index
    %c0_257 = arith.constant 0 : index
    %c0_258 = arith.constant 0 : index
    %138 = tpu.strided_load %arg18[%c0_255, %c0_256, %c0_257, %c0_258] {strides = array<i32: 1, 2, 2, 1>} : memref<1x4x8x128xf32, #tpu.memory_space<vmem>>, vector<1x2x2x128xf32>
    %c0_259 = arith.constant 0 : index
    %c0_260 = arith.constant 0 : index
    %c1_261 = arith.constant 1 : index
    %c0_262 = arith.constant 0 : index
    %139 = tpu.strided_load %arg18[%c0_259, %c0_260, %c1_261, %c0_262] {strides = array<i32: 1, 2, 2, 1>} : memref<1x4x8x128xf32, #tpu.memory_space<vmem>>, vector<1x2x2x128xf32>
    %c0_263 = arith.constant 0 : index
    %c1_264 = arith.constant 1 : index
    %c0_265 = arith.constant 0 : index
    %c0_266 = arith.constant 0 : index
    %140 = tpu.strided_load %arg18[%c0_263, %c1_264, %c0_265, %c0_266] {strides = array<i32: 1, 2, 2, 1>} : memref<1x4x8x128xf32, #tpu.memory_space<vmem>>, vector<1x2x2x128xf32>
    %c0_267 = arith.constant 0 : index
    %c1_268 = arith.constant 1 : index
    %c1_269 = arith.constant 1 : index
    %c0_270 = arith.constant 0 : index
    %141 = tpu.strided_load %arg18[%c0_267, %c1_268, %c1_269, %c0_270] {strides = array<i32: 1, 2, 2, 1>} : memref<1x4x8x128xf32, #tpu.memory_space<vmem>>, vector<1x2x2x128xf32>
    %142 = arith.maximumf %138, %139 : vector<1x2x2x128xf32>
    %143 = arith.maximumf %140, %141 : vector<1x2x2x128xf32>
    %144 = arith.maximumf %142, %143 : vector<1x2x2x128xf32>
    %c0_271 = arith.constant 0 : index
    %c0_272 = arith.constant 0 : index
    %145 = vector.load %arg10[%c0_271, %c0_272] : memref<1x128xf32, #tpu.memory_space<vmem>>, vector<1x128xf32>
    %146 = vector.shape_cast %145 : vector<1x128xf32> to vector<1x1x1x128xf32>
    %147 = vector.broadcast %146 : vector<1x1x1x128xf32> to vector<1x2x2x128xf32>
    %148 = arith.addf %144, %147 : vector<1x2x2x128xf32>
    %cst_273 = arith.constant 0.000000e+00 : f32
    %149 = vector.broadcast %cst_273 : f32 to vector<1x2x2x128xf32>
    %150 = arith.maximumf %148, %149 : vector<1x2x2x128xf32>
    %cst_274 = arith.constant 0.000000e+00 : f32
    %151 = vector.broadcast %cst_274 : f32 to vector<1x1x10x128xf32>
    %cst_275 = arith.constant 0.000000e+00 : f32
    %152 = vector.broadcast %cst_275 : f32 to vector<1x2x1x128xf32>
    %c0_276 = arith.constant 0 : index
    %c0_277 = arith.constant 0 : index
    %c0_278 = arith.constant 0 : index
    %c0_279 = arith.constant 0 : index
    %153 = vector.load %arg23[%c0_276, %c0_277, %c0_278, %c0_279] : memref<1x4x10x128xf32, #tpu.memory_space<vmem>>, vector<1x1x10x128xf32>
    tpu.vector_store %arg23[%c0_276, %c0_277, %c0_278, %c0_279], %151 {strides = array<i32>} : memref<1x4x10x128xf32, #tpu.memory_space<vmem>>, vector<1x1x10x128xf32>,
    %c0_280 = arith.constant 0 : index
    %c3 = arith.constant 3 : index
    %c0_281 = arith.constant 0 : index
    %c0_282 = arith.constant 0 : index
    %154 = vector.load %arg23[%c0_280, %c3, %c0_281, %c0_282] : memref<1x4x10x128xf32, #tpu.memory_space<vmem>>, vector<1x1x10x128xf32>
    tpu.vector_store %arg23[%c0_280, %c3, %c0_281, %c0_282], %151 {strides = array<i32>} : memref<1x4x10x128xf32, #tpu.memory_space<vmem>>, vector<1x1x10x128xf32>,
    %c0_283 = arith.constant 0 : index
    %c1_284 = arith.constant 1 : index
    %c0_285 = arith.constant 0 : index
    %c0_286 = arith.constant 0 : index
    %155 = vector.load %arg23[%c0_283, %c1_284, %c0_285, %c0_286] : memref<1x4x10x128xf32, #tpu.memory_space<vmem>>, vector<1x2x1x128xf32>
    tpu.vector_store %arg23[%c0_283, %c1_284, %c0_285, %c0_286], %152 {strides = array<i32>} : memref<1x4x10x128xf32, #tpu.memory_space<vmem>>, vector<1x2x1x128xf32>,
    %c0_287 = arith.constant 0 : index
    %c1_288 = arith.constant 1 : index
    %c3_289 = arith.constant 3 : index
    %c0_290 = arith.constant 0 : index
    %156 = vector.load %arg23[%c0_287, %c1_288, %c3_289, %c0_290] : memref<1x4x10x128xf32, #tpu.memory_space<vmem>>, vector<1x2x1x128xf32>
    tpu.vector_store %arg23[%c0_287, %c1_288, %c3_289, %c0_290], %152 {strides = array<i32>} : memref<1x4x10x128xf32, #tpu.memory_space<vmem>>, vector<1x2x1x128xf32>,
    %c0_291 = arith.constant 0 : index
    %c1_292 = arith.constant 1 : index
    %c1_293 = arith.constant 1 : index
    %c0_294 = arith.constant 0 : index
    %157 = vector.load %arg23[%c0_291, %c1_292, %c1_293, %c0_294] : memref<1x4x10x128xf32, #tpu.memory_space<vmem>>, vector<1x2x2x128xf32>
    tpu.vector_store %arg23[%c0_291, %c1_292, %c1_293, %c0_294], %150 {strides = array<i32>} : memref<1x4x10x128xf32, #tpu.memory_space<vmem>>, vector<1x2x2x128xf32>,
    %c0_295 = arith.constant 0 : index
    %c0_296 = arith.constant 0 : index
    %c0_297 = arith.constant 0 : index
    %c0_298 = arith.constant 0 : index
    %158 = vector.load %arg23[%c0_295, %c0_296, %c0_297, %c0_298] : memref<1x4x10x128xf32, #tpu.memory_space<vmem>>, vector<1x2x8x128xf32>
    %159 = vector.shape_cast %158 : vector<1x2x8x128xf32> to vector<16x128xf32>
    %c0_299 = arith.constant 0 : index
    %c0_300 = arith.constant 0 : index
    %c1_301 = arith.constant 1 : index
    %c0_302 = arith.constant 0 : index
    %160 = vector.load %arg23[%c0_299, %c0_300, %c1_301, %c0_302] : memref<1x4x10x128xf32, #tpu.memory_space<vmem>>, vector<1x2x8x128xf32>
    %161 = vector.shape_cast %160 : vector<1x2x8x128xf32> to vector<16x128xf32>
    %c0_303 = arith.constant 0 : index
    %c0_304 = arith.constant 0 : index
    %c2_305 = arith.constant 2 : index
    %c0_306 = arith.constant 0 : index
    %162 = vector.load %arg23[%c0_303, %c0_304, %c2_305, %c0_306] : memref<1x4x10x128xf32, #tpu.memory_space<vmem>>, vector<1x2x8x128xf32>
    %163 = vector.shape_cast %162 : vector<1x2x8x128xf32> to vector<16x128xf32>
    %c0_307 = arith.constant 0 : index
    %c1_308 = arith.constant 1 : index
    %c0_309 = arith.constant 0 : index
    %c0_310 = arith.constant 0 : index
    %164 = vector.load %arg23[%c0_307, %c1_308, %c0_309, %c0_310] : memref<1x4x10x128xf32, #tpu.memory_space<vmem>>, vector<1x2x8x128xf32>
    %165 = vector.shape_cast %164 : vector<1x2x8x128xf32> to vector<16x128xf32>
    %c0_311 = arith.constant 0 : index
    %c1_312 = arith.constant 1 : index
    %c1_313 = arith.constant 1 : index
    %c0_314 = arith.constant 0 : index
    %166 = vector.load %arg23[%c0_311, %c1_312, %c1_313, %c0_314] : memref<1x4x10x128xf32, #tpu.memory_space<vmem>>, vector<1x2x8x128xf32>
    %167 = vector.shape_cast %166 : vector<1x2x8x128xf32> to vector<16x128xf32>
    %c0_315 = arith.constant 0 : index
    %c1_316 = arith.constant 1 : index
    %c2_317 = arith.constant 2 : index
    %c0_318 = arith.constant 0 : index
    %168 = vector.load %arg23[%c0_315, %c1_316, %c2_317, %c0_318] : memref<1x4x10x128xf32, #tpu.memory_space<vmem>>, vector<1x2x8x128xf32>
    %169 = vector.shape_cast %168 : vector<1x2x8x128xf32> to vector<16x128xf32>
    %c0_319 = arith.constant 0 : index
    %c2_320 = arith.constant 2 : index
    %c0_321 = arith.constant 0 : index
    %c0_322 = arith.constant 0 : index
    %170 = vector.load %arg23[%c0_319, %c2_320, %c0_321, %c0_322] : memref<1x4x10x128xf32, #tpu.memory_space<vmem>>, vector<1x2x8x128xf32>
    %171 = vector.shape_cast %170 : vector<1x2x8x128xf32> to vector<16x128xf32>
    %c0_323 = arith.constant 0 : index
    %c2_324 = arith.constant 2 : index
    %c1_325 = arith.constant 1 : index
    %c0_326 = arith.constant 0 : index
    %172 = vector.load %arg23[%c0_323, %c2_324, %c1_325, %c0_326] : memref<1x4x10x128xf32, #tpu.memory_space<vmem>>, vector<1x2x8x128xf32>
    %173 = vector.shape_cast %172 : vector<1x2x8x128xf32> to vector<16x128xf32>
    %c0_327 = arith.constant 0 : index
    %c2_328 = arith.constant 2 : index
    %c2_329 = arith.constant 2 : index
    %c0_330 = arith.constant 0 : index
    %174 = vector.load %arg23[%c0_327, %c2_328, %c2_329, %c0_330] : memref<1x4x10x128xf32, #tpu.memory_space<vmem>>, vector<1x2x8x128xf32>
    %175 = vector.shape_cast %174 : vector<1x2x8x128xf32> to vector<16x128xf32>
    %176 = tpu.concatenate %159, %161, %163, %165, %167, %169, %171, %173, %175 in 1 : vector<16x128xf32>, vector<16x128xf32>, vector<16x128xf32>, vector<16x128xf32>, vector<16x128xf32>, vector<16x128xf32>, vector<16x128xf32>, vector<16x128xf32>, vector<16x128xf32> -> vector<16x1152xf32>
    %177 = arith.truncf %176 : vector<16x1152xf32> to vector<16x1152xbf16>
    %c0_331 = arith.constant 0 : index
    %c0_332 = arith.constant 0 : index
    %178 = vector.load %arg6[%c0_331, %c0_332] : memref<1152x128xbf16, #tpu.memory_space<vmem>>, vector<1152x128xbf16>
    %cst_333 = arith.constant dense<0.000000e+00> : vector<16x128xf32>
    %179 = tpu.matmul %177, %178, %cst_333 {dimension_numbers = #tpu.dot_dimension_numbers<[1], [0], [0], [1], [0, 0, 1, 1], [], []>} : vector<16x1152xbf16>, vector<1152x128xbf16>, vector<16x128xf32> -> vector<16x128xf32>
    %180 = vector.shape_cast %179 : vector<16x128xf32> to vector<1x2x8x128xf32>
    %c0_334 = arith.constant 0 : index
    %c0_335 = arith.constant 0 : index
    %c0_336 = arith.constant 0 : index
    %c0_337 = arith.constant 0 : index
    %181 = vector.load %arg19[%c0_334, %c0_335, %c0_336, %c0_337] : memref<1x2x8x128xf32, #tpu.memory_space<vmem>>, vector<1x2x8x128xf32>
    tpu.vector_store %arg19[%c0_334, %c0_335, %c0_336, %c0_337], %180 {strides = array<i32>} : memref<1x2x8x128xf32, #tpu.memory_space<vmem>>, vector<1x2x8x128xf32>,
    %c0_338 = arith.constant 0 : index
    %c0_339 = arith.constant 0 : index
    %c0_340 = arith.constant 0 : index
    %c0_341 = arith.constant 0 : index
    %182 = tpu.strided_load %arg19[%c0_338, %c0_339, %c0_340, %c0_341] {strides = array<i32: 1, 2, 2, 1>} : memref<1x2x8x128xf32, #tpu.memory_space<vmem>>, vector<1x1x1x128xf32>
    %c0_342 = arith.constant 0 : index
    %c0_343 = arith.constant 0 : index
    %c1_344 = arith.constant 1 : index
    %c0_345 = arith.constant 0 : index
    %183 = tpu.strided_load %arg19[%c0_342, %c0_343, %c1_344, %c0_345] {strides = array<i32: 1, 2, 2, 1>} : memref<1x2x8x128xf32, #tpu.memory_space<vmem>>, vector<1x1x1x128xf32>
    %c0_346 = arith.constant 0 : index
    %c1_347 = arith.constant 1 : index
    %c0_348 = arith.constant 0 : index
    %c0_349 = arith.constant 0 : index
    %184 = tpu.strided_load %arg19[%c0_346, %c1_347, %c0_348, %c0_349] {strides = array<i32: 1, 2, 2, 1>} : memref<1x2x8x128xf32, #tpu.memory_space<vmem>>, vector<1x1x1x128xf32>
    %c0_350 = arith.constant 0 : index
    %c1_351 = arith.constant 1 : index
    %c1_352 = arith.constant 1 : index
    %c0_353 = arith.constant 0 : index
    %185 = tpu.strided_load %arg19[%c0_350, %c1_351, %c1_352, %c0_353] {strides = array<i32: 1, 2, 2, 1>} : memref<1x2x8x128xf32, #tpu.memory_space<vmem>>, vector<1x1x1x128xf32>
    %186 = arith.maximumf %182, %183 : vector<1x1x1x128xf32>
    %187 = arith.maximumf %184, %185 : vector<1x1x1x128xf32>
    %188 = arith.maximumf %186, %187 : vector<1x1x1x128xf32>
    %c0_354 = arith.constant 0 : index
    %c0_355 = arith.constant 0 : index
    %189 = vector.load %arg11[%c0_354, %c0_355] : memref<1x128xf32, #tpu.memory_space<vmem>>, vector<1x128xf32>
    %190 = vector.shape_cast %189 : vector<1x128xf32> to vector<1x1x1x128xf32>
    %191 = arith.addf %188, %190 : vector<1x1x1x128xf32>
    %cst_356 = arith.constant 0.000000e+00 : f32
    %192 = vector.broadcast %cst_356 : f32 to vector<1x1x1x128xf32>
    %193 = arith.maximumf %191, %192 : vector<1x1x1x128xf32>
    %194 = vector.shape_cast %193 : vector<1x1x1x128xf32> to vector<1x128xf32>
    %195 = arith.truncf %194 : vector<1x128xf32> to vector<1x128xbf16>
    %c0_357 = arith.constant 0 : index
    %c0_358 = arith.constant 0 : index
    %196 = vector.load %arg12[%c0_357, %c0_358] : memref<128x128xbf16, #tpu.memory_space<vmem>>, vector<128x128xbf16>
    %cst_359 = arith.constant dense<0.000000e+00> : vector<1x128xf32>
    %197 = tpu.matmul %195, %196, %cst_359 {dimension_numbers = #tpu.dot_dimension_numbers<[1], [0], [0], [1], [0, 0, 1, 1], [], []>} : vector<1x128xbf16>, vector<128x128xbf16>, vector<1x128xf32> -> vector<1x128xf32>
    %c0_360 = arith.constant 0 : index
    %c0_361 = arith.constant 0 : index
    %198 = vector.load %arg13[%c0_360, %c0_361] : memref<1x128xf32, #tpu.memory_space<vmem>>, vector<1x128xf32>
    %199 = arith.addf %197, %198 : vector<1x128xf32>
    %200 = vector.shape_cast %199 : vector<1x128xf32> to vector<1x1x128xf32>
    %c0_362 = arith.constant 0 : index
    %c0_363 = arith.constant 0 : index
    %c0_364 = arith.constant 0 : index
    %201 = vector.load %arg14[%c0_362, %c0_363, %c0_364] : memref<1x1x128xf32, #tpu.memory_space<vmem>>, vector<1x1x128xf32>
    tpu.vector_store %arg14[%c0_362, %c0_363, %c0_364], %200 {strides = array<i32>} : memref<1x1x128xf32, #tpu.memory_space<vmem>>, vector<1x1x128xf32>,
    return
  }
  func.func @transform_0(%arg0: i32) -> (i32, i32, i32) {
    %c0_i32 = arith.constant 0 : i32
    %c0_i32_0 = arith.constant 0 : i32
    %c0_i32_1 = arith.constant 0 : i32
    return %arg0, %c0_i32, %c0_i32_0 : i32, i32, i32
  }
  func.func @transform_1(%arg0: i32) -> (i32, i32) {
    %c0_i32 = arith.constant 0 : i32
    %c0_i32_0 = arith.constant 0 : i32
    %c0_i32_1 = arith.constant 0 : i32
    return %c0_i32, %c0_i32_0 : i32, i32
  }
  func.func @transform_2(%arg0: i32) -> (i32, i32) {
    %c0_i32 = arith.constant 0 : i32
    %c0_i32_0 = arith.constant 0 : i32
    %c0_i32_1 = arith.constant 0 : i32
    return %c0_i32, %c0_i32_0 : i32, i32
  }
  func.func @transform_3(%arg0: i32) -> (i32, i32) {
    %c0_i32 = arith.constant 0 : i32
    %c0_i32_0 = arith.constant 0 : i32
    %c0_i32_1 = arith.constant 0 : i32
    return %c0_i32, %c0_i32_0 : i32, i32
  }
  func.func @transform_4(%arg0: i32) -> (i32, i32) {
    %c0_i32 = arith.constant 0 : i32
    %c0_i32_0 = arith.constant 0 : i32
    %c0_i32_1 = arith.constant 0 : i32
    return %c0_i32, %c0_i32_0 : i32, i32
  }
  func.func @transform_5(%arg0: i32) -> (i32, i32) {
    %c0_i32 = arith.constant 0 : i32
    %c0_i32_0 = arith.constant 0 : i32
    %c0_i32_1 = arith.constant 0 : i32
    return %c0_i32, %c0_i32_0 : i32, i32
  }
  func.func @transform_6(%arg0: i32) -> (i32, i32) {
    %c0_i32 = arith.constant 0 : i32
    %c0_i32_0 = arith.constant 0 : i32
    %c0_i32_1 = arith.constant 0 : i32
    return %c0_i32, %c0_i32_0 : i32, i32
  }
  func.func @transform_7(%arg0: i32) -> (i32, i32) {
    %c0_i32 = arith.constant 0 : i32
    %c0_i32_0 = arith.constant 0 : i32
    %c0_i32_1 = arith.constant 0 : i32
    return %c0_i32, %c0_i32_0 : i32, i32
  }
  func.func @transform_8(%arg0: i32) -> (i32, i32) {
    %c0_i32 = arith.constant 0 : i32
    %c0_i32_0 = arith.constant 0 : i32
    %c0_i32_1 = arith.constant 0 : i32
    return %c0_i32, %c0_i32_0 : i32, i32
  }
  func.func @transform_9(%arg0: i32) -> (i32, i32) {
    %c0_i32 = arith.constant 0 : i32
    %c0_i32_0 = arith.constant 0 : i32
    %c0_i32_1 = arith.constant 0 : i32
    return %c0_i32, %c0_i32_0 : i32, i32
  }
  func.func @transform_10(%arg0: i32) -> (i32, i32) {
    %c0_i32 = arith.constant 0 : i32
    %c0_i32_0 = arith.constant 0 : i32
    %c0_i32_1 = arith.constant 0 : i32
    return %c0_i32, %c0_i32_0 : i32, i32
  }
  func.func @transform_11(%arg0: i32) -> (i32, i32) {
    %c0_i32 = arith.constant 0 : i32
    %c0_i32_0 = arith.constant 0 : i32
    %c0_i32_1 = arith.constant 0 : i32
    return %c0_i32, %c0_i32_0 : i32, i32
  }
  func.func @transform_12(%arg0: i32) -> (i32, i32) {
    %c0_i32 = arith.constant 0 : i32
    %c0_i32_0 = arith.constant 0 : i32
    %c0_i32_1 = arith.constant 0 : i32
    return %c0_i32, %c0_i32_0 : i32, i32
  }
  func.func @transform_13(%arg0: i32) -> (i32, i32, i32) {
    %c0_i32 = arith.constant 0 : i32
    %c0_i32_0 = arith.constant 0 : i32
    %c0_i32_1 = arith.constant 0 : i32
    return %arg0, %c0_i32, %c0_i32_0 : i32, i32, i32
  }
}

</mosaic_0001>

<bundles_post_ra>
// kernel: fcn_forward.1
= control target key start
LH: loop header
LB: loop body
LE: loop exit
PB: predicated region body
PF: predicated region fallthrough
CT: control target
= control target key end

     0   :  { %s11502_s0 = inlined_call_operand.vmem [shape: bf16[2,1024,32], index: 0, kind: input, shape index: {}]   ;;  %s11503_s1 = inlined_call_operand.vmem [shape: bf16[32,128], index: 1, kind: input, shape index: {}]   ;;  %s11504_s2 = inlined_call_operand.vmem [shape: bf16[1152,128], index: 2, kind: input, shape index: {}]   ;;  %s11505_s3 = inlined_call_operand.vmem [shape: bf16[1152,128], index: 3, kind: input, shape index: {}]   ;;  %s11506_s4 = inlined_call_operand.vmem [shape: bf16[1152,128], index: 4, kind: input, shape index: {}]   ;;  %s11507_s5 = inlined_call_operand.vmem [shape: bf16[1152,128], index: 5, kind: input, shape index: {}]   ;;  %s11508_s6 = inlined_call_operand.vmem [shape: f32[1,128], index: 6, kind: input, shape index: {}]   ;;  %s11509_s7 = inlined_call_operand.vmem [shape: f32[1,128], index: 7, kind: input, shape index: {}]   ;;  %s11510_s8 = inlined_call_operand.vmem [shape: f32[1,128], index: 8, kind: input, shape index: {}]   ;;  %s11511_s9 = inlined_call_operand.vmem [shape: f32[1,128], index: 9, kind: input, shape index: {}]   ;;  %s11512_s10 = inlined_call_operand.vmem [shape: f32[1,128], index: 10, kind: input, shape index: {}]   ;;  %s11513_s11 = inlined_call_operand.vmem [shape: bf16[128,128], index: 11, kind: input, shape index: {}]   ;;  %s11514_s12 = inlined_call_operand.vmem [shape: f32[1,128], index: 12, kind: input, shape index: {}]   ;;  %s11515_s13 = inlined_call_operand.hbm [shape: f32[2,1,128], index: 13, kind: output, shape index: {}]  }
   0x1   :  { %11518 = sst [smem:[#allocation53_spill]] %s11502_s0 }
   0x2   :  { %11519 = sst [smem:[#allocation54_spill]] %s11503_s1 }
   0x3   :  { %18 = vsyncpa [#allocation12], 0 }
   0x4   :  { %20 = vsyncpa [#allocation12 + $0x1], 0  ;;  %s9540_s25 = smov 0   ;;  %s9542_s26 = smov 0  }
   0x5   :  { %s9544_s27 = smov 0   ;;  %s9546_s28 = smov 0  }
   0x6 LB: > { %s9561_s29 = sadd.s32 4294967295, %s9464_s28   ;;  %s7355_s30 = sadd.s32 4294967294, %s9464_s28   ;;  %s9464_s28 = sphi %s9546_s28, %s11613_s28   ;;  %s9460_s27 = sphi %s9544_s27, %s11612_s27   ;;  %s9456_s26 = sphi %s9542_s26, %s11611_s26   ;;  %s9452_s25 = sphi %s9540_s25, %s11610_s25  }
   0x7   : > { %s9565_s14 = sadd.s32 1, %s9464_s28   ;;  %s311_s15 = sadd.s32 1, %s9460_s27 }
   0x8   : > { %s308_s16 = ssub.s32 %s9464_s28, %s9565_s14  ;;  %p321_p0 = scmp.ne.s32.totalorder %s9460_s27, %s9456_s26 }
   0x9   : > { %p309_p1 = scmp.eq.s32.totalorder %s308_s16, 0  ;;  %p322_p2 = scmp.eq.s32.totalorder %s9561_s29, 1 }
   0xa   : > { %p327_p3 = scmp.ne.s32.totalorder %s9456_s26, %s9452_s25  ;;  %p328_p4 = scmp.eq.s32.totalorder %s7355_s30, 1 }
   0xb   : > { %s9576_s17 = scalar_select %p309_p1, %s9460_s27, %s311_s15  }
   0xc   : > { %p9578_p5 = por %p322_p2, %p321_p0  ;;  %p9582_p6 = por %p328_p4, %p327_p3 }
   0xd   : > { %11520 = sst [smem:[#allocation14_spill]] %s9576_s17  ;;  %p7358_p7 = scmp.ge.s32.totalorder %s9464_s28, 1 }
   0xe   : > { %p390_p8 = scmp.lt.s32.totalorder %s9464_s28, 3 }
  0x10   : > { %p391_p9 = pnand %p7358_p7, %p390_p8 }
  0x12   : > { %394 = sbr.rel (%p391_p9) target bundleno = 2025 (0x7e9), region = 72 }
  0x17   : > { %s11523_s1 = sld [smem:[#allocation54_spill]]  ;;  %p433_p10 = scmp.lt.s32.totalorder %s9561_s29, 1  ;;  %vm903_vm0 = vcmask 261120   ;;  %v9090_v21 = vld [vmem:[%s11504_s2 + $0x78] sm:$0xff]   ;;  %v9092_v24 = vld [vmem:[%s11504_s2 + $0x70] sm:$0xff]   ;;  %v9096_v27 = vld [vmem:[%s11504_s2 + $0x68] sm:$0xff]  }
  0x18   : > { %s11524_s0 = sld [smem:[#allocation53_spill]]  ;;  %v9091_v22 = vld [vmem:[%s11504_s2 + $0x38] sm:$0xff]   ;;  %7861 = vmatprep.subr.bf16.mxu1 %v9090_v21  ;;  %v9094_v25 = vld [vmem:[%s11504_s2 + $0x30] sm:$0xff]   ;;  %v9097_v28 = vld [vmem:[%s11504_s2 + $0x28] sm:$0xff]   ;;  %v9466_v39 = vmov 0.0   ;;  %v9467_v52 = vmov 0.0|0.0  }
  0x19   : > { %s434_s24 = scalar_select %p433_p10, %s9561_s29, 1  ;;  %7862 = vmatpush3.bf16.msra.mxu1 %v9091_v22  ;;  %v9098_v30 = vld [vmem:[%s11504_s2 + $0x60] sm:$0xff]   ;;  %v9102_v33 = vld [vmem:[%s11504_s2 + $0x58] sm:$0xff]   ;;  %v9104_v35 = vld [vmem:[%s11504_s2 + $0x50] sm:$0xff]   ;;  %2191 = vst [vmem:[#allocation7] sm:$0xff] %v9466_v39  ;;  %vm9468_vm1 = vmmov 0  }
  0x1a   : > { %7863 = vmatprep.subr.bf16.mxu1 %v9092_v24  ;;  %v9100_v31 = vld [vmem:[%s11504_s2 + $0x20] sm:$0xff]   ;;  %v9103_v34 = vld [vmem:[%s11504_s2 + $0x18] sm:$0xff]   ;;  %v9106_v36 = vld [vmem:[%s11504_s2 + $0x10] sm:$0xff]   ;;  %2192 = vst [vmem:[#allocation7 + $0x8] sm:$0xff] %v9466_v39  ;;  %s7791_s20 = sshll.u32 %s9561_s29, 4  ;;  %s9469_s29 = smov [#allocation11]  }
  0x1b   : > { %s7794_s30 = sshll.u32 %s434_s24, 9  ;;  %2193 = vst [vmem:[#allocation7 + $0x10] sm:$0x3] %v9466_v39  ;;  %2195 = vst [vmem:[#allocation7 + $0x198] sm:$0xff] %v9466_v39  ;;  %v9108_v40 = vld [vmem:[%s11504_s2 + $0x48] sm:$0xff]   ;;  %v9110_v43 = vld [vmem:[%s11504_s2 + $0x40] sm:$0xff]  }
  0x1c   : > { %2196 = vst [vmem:[#allocation7 + $0x1a0] sm:$0xff] %v9466_v39  ;;  %2197 = vst [vmem:[#allocation7 + $0x1a8] sm:$0x3] %v9466_v39  ;;  %v9109_v41 = vld [vmem:[%s11504_s2 + $0x8] sm:$0xff]   ;;  %v9112_v44 = vld [vmem:[%s11504_s2] sm:$0xff]   ;;  %s9408_s16 = sshll.u32 %s9469_s29, 4  ;;  %s9409_s16 = int_to_ptr.vmem [resolvable:$false] %s9408_s16 }
  0x1d   : > { %v9038_v0 = vld [vmem:[%s11523_s1 + $0x8] sm:$0xff]   ;;  %v9039_v1 = vld [vmem:[%s11523_s1] sm:$0xff]   ;;  %7864 = vmatpush3.bf16.msra.mxu1 %v9094_v25  ;;  %2199 = vst [vmem:[#allocation7 + $0x18] sm:$0x1] %v9466_v39  ;;  %2200 = vst [vmem:[#allocation7 + $0x30] sm:$0x1] %v9466_v39 }
  0x1e   : > { %8733 = vmatprep.subr.bf16.mxu0 %v9038_v0  ;;  %s9599_s17 = scalar_lea.vmem %s11524_s0, %s7794_s30  ;;  %7865 = vmatprep.subr.bf16.mxu1 %v9096_v27  ;;  %2201 = vst [vmem:[#allocation7 + $0x48] sm:$0x1] %v9466_v39  ;;  %2202 = vst [vmem:[#allocation7 + $0x60] sm:$0x1] %v9466_v39  ;;  %v9114_v49 = vld [vmem:[%s11504_s2 + $0x178] sm:$0xff]   ;;  %v9116_v53 = vld [vmem:[%s11504_s2 + $0x170] sm:$0xff]   ;;  %s11461_s0 = scalar_lea.hbm %s11515_s13, %s7791_s20 }
  0x1f   : > { %8734 = vmatpush3.bf16.msra.mxu0 %v9038_v0  ;;  %v9040_v2 = vld [vmem:[%s9599_s17] sm:$0xff]   ;;  %v9041_v3 = vld [vmem:[%s9599_s17 + $0x8] sm:$0xff]   ;;  %v9042_v4 = vld [vmem:[%s9599_s17 + $0x10] sm:$0xff]   ;;  %2203 = vst [vmem:[#allocation7 + $0x78] sm:$0x1] %v9466_v39  ;;  %s431_s30 = sand.u32 1, %s9456_s26  }
  0x20   : > { %8735 = vmatprep.subr.bf16.mxu0 %v9039_v1  ;;  %8737 = vmatprep.mubr.msk.bf16.mxu0 %vm903_vm0, %v9040_v2  ;;  %v9043_v5 = vld [vmem:[%s9599_s17 + $0x18] sm:$0xff]   ;;  %v9044_v6 = vld [vmem:[%s9599_s17 + $0x20] sm:$0xff]   ;;  %v9045_v7 = vld [vmem:[%s9599_s17 + $0x28] sm:$0xff]   ;;  %2204 = vst [vmem:[#allocation7 + $0x90] sm:$0x1] %v9466_v39  ;;  %s432_s21 = scalar_lea.vmem [#allocation11], %s431_s30 }
  0x21   : > { %v9046_v8 = vld [vmem:[%s9599_s17 + $0x30] sm:$0xff]   ;;  %v9047_v9 = vld [vmem:[%s9599_s17 + $0x38] sm:$0xff]   ;;  %v9048_v10 = vld [vmem:[%s9599_s17 + $0x40] sm:$0xff]   ;;  %7866 = vmatpush3.bf16.msra.mxu1 %v9097_v28  ;;  %2205 = vst [vmem:[#allocation7 + $0xa8] sm:$0x1] %v9466_v39  ;;  %s7199_s24 = scalar_lea.sflag [#allocation12], %s431_s30 }
  0x22   : > { %v9049_v11 = vld [vmem:[%s9599_s17 + $0x48] sm:$0xff]   ;;  %v9050_v12 = vld [vmem:[%s9599_s17 + $0x50] sm:$0xff]   ;;  %v9051_v13 = vld [vmem:[%s9599_s17 + $0x58] sm:$0xff]   ;;  %7867 = vmatprep.subr.bf16.mxu1 %v9098_v30  ;;  %2206 = vst [vmem:[#allocation7 + $0xc0] sm:$0x1] %v9466_v39  ;;  %s9410_s22 = scalar_lea.vmem %s9409_s16, 32 }
  0x23   : > { %8736 = vmatpush3.bf16.msra.mxu0 %v9039_v1  ;;  %v9052_v14 = vld [vmem:[%s9599_s17 + $0x60] sm:$0xff]   ;;  %v9053_v15 = vld [vmem:[%s9599_s17 + $0x68] sm:$0xff]   ;;  %v9054_v16 = vld [vmem:[%s9599_s17 + $0x70] sm:$0xff]   ;;  %2207 = vst [vmem:[#allocation7 + $0xd8] sm:$0x1] %v9466_v39 }
  0x24   : > { %v9055_v17 = vld [vmem:[%s9599_s17 + $0x78] sm:$0xff]   ;;  %v9056_v18 = vld [vmem:[%s9599_s17 + $0x80] sm:$0xff]   ;;  %v9057_v19 = vld [vmem:[%s9599_s17 + $0x88] sm:$0xff]   ;;  %2208 = vst [vmem:[#allocation7 + $0xf0] sm:$0x1] %v9466_v39  ;;  %8085 = vmatprep.subr.bf16.mxu0 %v9114_v49 }
  0x25   : > { %v9058_v20 = vld [vmem:[%s9599_s17 + $0x90] sm:$0xff]   ;;  %v9059_v23 = vld [vmem:[%s9599_s17 + $0x98] sm:$0xff]   ;;  %v9060_v26 = vld [vmem:[%s9599_s17 + $0xa0] sm:$0xff]   ;;  %7868 = vmatpush3.bf16.msra.mxu1 %v9100_v31  ;;  %2209 = vst [vmem:[#allocation7 + $0x108] sm:$0x1] %v9466_v39 }
  0x26   : > { %8738 = vmatmul.mubr.msk.bf16.vlgmr.msra.gmra.mxu0 %vm903_vm0, %v9041_v3  ;;  %v9061_v29 = vld [vmem:[%s9599_s17 + $0xa8] sm:$0xff]   ;;  %v9062_v32 = vld [vmem:[%s9599_s17 + $0xb0] sm:$0xff]   ;;  %7869 = vmatprep.subr.bf16.mxu1 %v9102_v33  ;;  %v9684_v37 = vld [vmem:[%s9599_s17 + $0xb8] sm:$0xff]   ;;  %2210 = vst [vmem:[#allocation7 + $0x120] sm:$0x1] %v9466_v39 }
  0x27   : > { %8741 = vmatprep.mubr.msk.bf16.mxu0 %vm903_vm0, %v9042_v4  ;;  %v9687_v38 = vld [vmem:[%s9599_s17 + $0xc0] sm:$0xff]   ;;  %2211 = vst [vmem:[#allocation7 + $0x138] sm:$0x1] %v9466_v39  ;;  %2212 = vst [vmem:[#allocation7 + $0x150] sm:$0x1] %v9466_v39  ;;  %v9065_v42 = vld [vmem:[%s9599_s17 + $0xc8] sm:$0xff]  }
  0x28   : > { %2213 = vst [vmem:[#allocation7 + $0x168] sm:$0x1] %v9466_v39  ;;  %2214 = vst [vmem:[#allocation7 + $0x180] sm:$0x1] %v9466_v39  ;;  %v2295_v45 = vld [vmem:[#allocation7 + $0x1] sm:$0xff]  ;;  %v2296_v46 = vld [vmem:[#allocation7 + $0x9] sm:$0xff] }
  0x29   : > { %7870 = vmatpush3.bf16.msra.mxu1 %v9103_v34  ;;  %2215 = vst [vmem:[#allocation7 + $0x29] sm:$0x1] %v9466_v39  ;;  %2216 = vst [vmem:[#allocation7 + $0x41] sm:$0x1] %v9466_v39  ;;  %v9066_v47 = vld [vmem:[%s9599_s17 + $0xd0] sm:$0xff]   ;;  %v2553_v48 = vpack.c.bf16 %v2296_v46, %v2295_v45  ;;  %v9115_v50 = vld [vmem:[%s11504_s2 + $0x138] sm:$0xff]  }
  0x2a   : > { %7871 = vmatprep.subr.bf16.mxu1 %v9104_v35  ;;  %2217 = vst [vmem:[#allocation7 + $0x59] sm:$0x1] %v9466_v39  ;;  %2218 = vst [vmem:[#allocation7 + $0x71] sm:$0x1] %v9466_v39  ;;  %8086 = vmatpush3.bf16.msra.mxu0 %v9115_v50  ;;  %v9067_v51 = vld [vmem:[%s9599_s17 + $0xd8] sm:$0xff]   ;;  %v9117_v54 = vld [vmem:[%s11504_s2 + $0x130] sm:$0xff]  }
  0x2b   : > { %2219 = vst [vmem:[#allocation7 + $0x89] sm:$0x1] %v9466_v39  ;;  %2220 = vst [vmem:[#allocation7 + $0xa1] sm:$0x1] %v9466_v39  ;;  %3304 = vmatprep.mubr.bf16.mxu1 %v2553_v48  ;;  %8087 = vmatprep.subr.bf16.mxu0 %v9116_v53  ;;  %v9068_v55 = vld [vmem:[%s9599_s17 + $0xe0] sm:$0xff]   ;;  %v9120_v56 = vld [vmem:[%s11504_s2 + $0x168] sm:$0xff]  }
  0x2c   : > { %2221 = vst [vmem:[#allocation7 + $0xb9] sm:$0x1] %v9466_v39  ;;  %2222 = vst [vmem:[#allocation7 + $0xd1] sm:$0x1] %v9466_v39  ;;  %v9121_v57 = vld [vmem:[%s11504_s2 + $0x128] sm:$0xff]   ;;  %v9070_v59 = vld [vmem:[%s9599_s17 + $0xf0] sm:$0xff]  }
  0x2d   : > { %7872 = vmatpush3.bf16.msra.mxu1 %v9106_v36  ;;  %2223 = vst [vmem:[#allocation7 + $0xe9] sm:$0x1] %v9466_v39  ;;  %2224 = vst [vmem:[#allocation7 + $0x101] sm:$0x1] %v9466_v39  ;;  %v9069_v58 = vld [vmem:[%s9599_s17 + $0xe8] sm:$0xff]   ;;  %v9122_v60 = vld [vmem:[%s11504_s2 + $0x160] sm:$0xff]  }
  0x2e   : > { %8742 = vmatmul.mubr.msk.bf16.gmra.mxu0 %vm903_vm0, %v9043_v5  ;;  %2225 = vst [vmem:[#allocation7 + $0x119] sm:$0x1] %v9466_v39  ;;  %2226 = vst [vmem:[#allocation7 + $0x131] sm:$0x1] %v9466_v39  ;;  %7873 = vmatprep.subr.bf16.mxu1 %v9108_v40  ;;  %v9123_v61 = vld [vmem:[%s11504_s2 + $0x120] sm:$0xff]   ;;  %v9126_v62 = vld [vmem:[%s11504_s2 + $0x158] sm:$0xff]  }
  0x2f   : > { %8745 = vmatprep.mubr.msk.bf16.mxu0 %vm903_vm0, %v9044_v6  ;;  %2227 = vst [vmem:[#allocation7 + $0x149] sm:$0x1] %v9466_v39  ;;  %2228 = vst [vmem:[#allocation7 + $0x161] sm:$0x1] %v9466_v39  ;;  %8088 = vmatpush3.bf16.msra.mxu0 %v9117_v54  ;;  %v9127_v63 = vld [vmem:[%s11504_s2 + $0x118] sm:$0xff]   ;;  %v9072_v1 = vld [vmem:[%s9599_s17 + $0x100] sm:$0xff]  }
  0x30   : > { %2229 = vst [vmem:[#allocation7 + $0x179] sm:$0x1] %v9466_v39  ;;  %2230 = vst [vmem:[#allocation7 + $0x191] sm:$0x1] %v9466_v39  ;;  %8089 = vmatprep.subr.bf16.mxu0 %v9120_v56  ;;  %v9071_v0 = vld [vmem:[%s9599_s17 + $0xf8] sm:$0xff]   ;;  %v9128_v2 = vld [vmem:[%s11504_s2 + $0x150] sm:$0xff]  }
  0x31   : > { %4219 = vst [vmem:[#allocation8] sm:$0xff] %v9466_v39  ;;  %4220 = vst [vmem:[#allocation8 + $0x8] sm:$0x3] %v9466_v39  ;;  %7874 = vmatpush3.bf16.msra.mxu1 %v9109_v41  ;;  %v9129_v3 = vld [vmem:[%s11504_s2 + $0x110] sm:$0xff]   ;;  %v9132_v4 = vld [vmem:[%s11504_s2 + $0x148] sm:$0xff]  }
  0x32   : > { %4222 = vst [vmem:[#allocation8 + $0x90] sm:$0xff] %v9466_v39  ;;  %4223 = vst [vmem:[#allocation8 + $0x98] sm:$0x3] %v9466_v39  ;;  %7875 = vmatprep.subr.bf16.mxu1 %v9110_v43  ;;  %v9133_v5 = vld [vmem:[%s11504_s2 + $0x108] sm:$0xff]   ;;  %v9086_v21 = vld [vmem:[%s9599_s17 + $0x170] sm:$0xff]  }
  0x33   : > { %4225 = vst [vmem:[#allocation8 + $0x10] sm:$0x1] %v9466_v39  ;;  %4226 = vst [vmem:[#allocation8 + $0x20] sm:$0x1] %v9466_v39  ;;  %8090 = vmatpush3.bf16.msra.mxu0 %v9121_v57  ;;  %v9073_v6 = vld [vmem:[%s9599_s17 + $0x108] sm:$0xff]   ;;  %v9087_v22 = vld [vmem:[%s9599_s17 + $0x178] sm:$0xff]  }
  0x34   : > { %4227 = vst [vmem:[#allocation8 + $0x30] sm:$0x1] %v9466_v39  ;;  %4228 = vst [vmem:[#allocation8 + $0x40] sm:$0x1] %v9466_v39  ;;  %8091 = vmatprep.subr.bf16.mxu0 %v9122_v60  ;;  %v9089_v24 = vld [vmem:[%s9599_s17 + $0x188] sm:$0xff]   ;;  %v9093_v25 = vld [vmem:[%s9599_s17 + $0x190] sm:$0xff]  }
  0x35   : > { %4229 = vst [vmem:[#allocation8 + $0x50] sm:$0x1] %v9466_v39  ;;  %4230 = vst [vmem:[#allocation8 + $0x60] sm:$0x1] %v9466_v39  ;;  %7876 = vmatpush3.bf16.msra.mxu1 %v9112_v44  ;;  %v9095_v28 = vld [vmem:[%s9599_s17 + $0x198] sm:$0xff]   ;;  %v9101_v35 = vld [vmem:[%s9599_s17 + $0x1a8] sm:$0xff]  }
  0x36   : > { %8746 = vmatmul.mubr.msk.bf16.gmra.mxu0 %vm903_vm0, %v9045_v7  ;;  %4231 = vst [vmem:[#allocation8 + $0x70] sm:$0x1] %v9466_v39  ;;  %4232 = vst [vmem:[#allocation8 + $0x80] sm:$0x1] %v9466_v39  ;;  %v9074_v7 = vld [vmem:[%s9599_s17 + $0x110] sm:$0xff]   ;;  %v9107_v44 = vld [vmem:[%s9599_s17 + $0x1b8] sm:$0xff]  }
  0x37   : > { %8749 = vmatprep.mubr.msk.bf16.mxu0 %vm903_vm0, %v9046_v8  ;;  %4233 = vst [vmem:[#allocation8 + $0x19] sm:$0x1] %v9466_v39  ;;  %4234 = vst [vmem:[#allocation8 + $0x29] sm:$0x1] %v9466_v39  ;;  %8092 = vmatpush3.bf16.msra.mxu0 %v9123_v61  ;;  %v9134_v8 = vld [vmem:[%s11504_s2 + $0x140] sm:$0xff]   ;;  %v9105_v36 = vld [vmem:[%s9599_s17 + $0x1b0] sm:$0xff]  }
  0x38   : > { %4235 = vst [vmem:[#allocation8 + $0x39] sm:$0x1] %v9466_v39  ;;  %4236 = vst [vmem:[#allocation8 + $0x49] sm:$0x1] %v9466_v39  ;;  %3305 = vmatmul.mubr.bf16.vlgmr.msra.gmra.mxu1 %v9467_v52  ;;  %8093 = vmatprep.subr.bf16.mxu0 %v9126_v62  ;;  %v9111_v45 = vld [vmem:[%s9599_s17 + $0x1c0] sm:$0xff]   ;;  %v9136_v61 = vld [vmem:[%s11504_s2 + $0xf8] sm:$0xff]  }
  0x39   : > { %4237 = vst [vmem:[#allocation8 + $0x59] sm:$0x1] %v9466_v39  ;;  %4238 = vst [vmem:[#allocation8 + $0x69] sm:$0x1] %v9466_v39  ;;  %v9896_v48 = vld [vmem:[%s11508_s6] ss:$0 sm:$0xff]  ;;  %7973 = vmatprep.subr.bf16.mxu1 %v9136_v61 }
  0x3a   : > { %4239 = vst [vmem:[#allocation8 + $0x79] sm:$0x1] %v9466_v39  ;;  %4240 = vst [vmem:[#allocation8 + $0x89] sm:$0x1] %v9466_v39  ;;  %v9137_v62 = vld [vmem:[%s11504_s2 + $0xb8] sm:$0xff]  }
  0x3b   : > { %5325 = vst [vmem:[#allocation9] sm:$0xff] %v9466_v39  ;;  %5326 = vst [vmem:[#allocation9 + $0x8] sm:$0x3] %v9466_v39  ;;  %8094 = vmatpush3.bf16.msra.mxu0 %v9127_v63  ;;  %7974 = vmatpush3.bf16.msra.mxu1 %v9137_v62 }
  0x3c   : > { %5328 = vst [vmem:[#allocation9 + $0x50] sm:$0xff] %v9466_v39  ;;  %5329 = vst [vmem:[#allocation9 + $0x58] sm:$0x3] %v9466_v39  ;;  %8095 = vmatprep.subr.bf16.mxu0 %v9128_v2 }
  0x3d   : > { %5331 = vst [vmem:[#allocation9 + $0x10] sm:$0x1] %v9466_v39  ;;  %5332 = vst [vmem:[#allocation9 + $0x20] sm:$0x1] %v9466_v39 }
  0x3e   : > { %8750 = vmatmul.mubr.msk.bf16.gmra.mxu0 %vm903_vm0, %v9047_v9  ;;  %5333 = vst [vmem:[#allocation9 + $0x30] sm:$0x1] %v9466_v39  ;;  %5334 = vst [vmem:[#allocation9 + $0x40] sm:$0x1] %v9466_v39  ;;  %v9135_v9 = vld [vmem:[%s11504_s2 + $0x100] sm:$0xff]  }
  0x3f   : > { %8753 = vmatprep.mubr.msk.bf16.mxu0 %vm903_vm0, %v9048_v10  ;;  %5335 = vst [vmem:[#allocation9 + $0x15] sm:$0x1] %v9466_v39  ;;  %5336 = vst [vmem:[#allocation9 + $0x25] sm:$0x1] %v9466_v39  ;;  %8096 = vmatpush3.bf16.msra.mxu0 %v9129_v3  ;;  %v9075_v10 = vld [vmem:[%s9599_s17 + $0x118] sm:$0xff]   ;;  %v9113_v3 = vld [vmem:[%s9599_s17 + $0x1c8] sm:$0xff]  }
  0x40   : > { %5337 = vst [vmem:[#allocation9 + $0x35] sm:$0x1] %v9466_v39  ;;  %5338 = vst [vmem:[#allocation9 + $0x45] sm:$0x1] %v9466_v39  ;;  %8097 = vmatprep.subr.bf16.mxu0 %v9132_v4  ;;  %v9118_v4 = vld [vmem:[%s9599_s17 + $0x1d0] sm:$0xff]  }
  0x41   : > { %6255 = vst [vmem:[#allocation10] sm:$0xff] %v9466_v39  ;;  %6256 = vst [vmem:[#allocation10 + $0x8] sm:$0x3] %v9466_v39 }
  0x42   : > { %6258 = vst [vmem:[#allocation10 + $0x30] sm:$0xff] %v9466_v39  ;;  %6259 = vst [vmem:[#allocation10 + $0x38] sm:$0x3] %v9466_v39 }
  0x43   : > { %6261 = vst [vmem:[#allocation10 + $0x10] sm:$0x1] %v9466_v39  ;;  %6262 = vst [vmem:[#allocation10 + $0x20] sm:$0x1] %v9466_v39  ;;  %8098 = vmatpush3.bf16.msra.mxu0 %v9133_v5 }
  0x44   : > { %6263 = vst [vmem:[#allocation10 + $0x13] sm:$0x1] %v9466_v39  ;;  %6264 = vst [vmem:[#allocation10 + $0x23] sm:$0x1] %v9466_v39  ;;  %8099 = vmatprep.subr.bf16.mxu0 %v9134_v8 }
  0x46   : > { %8754 = vmatmul.mubr.msk.bf16.gmra.mxu0 %vm903_vm0, %v9049_v11  ;;  %v9076_v11 = vld [vmem:[%s9599_s17 + $0x120] sm:$0xff]  }
  0x47   : > { %8757 = vmatprep.mubr.msk.bf16.mxu0 %vm903_vm0, %v9050_v12  ;;  %8100 = vmatpush3.bf16.msra.mxu0 %v9135_v9  ;;  %v9077_v12 = vld [vmem:[%s9599_s17 + $0x128] sm:$0xff]  }
  0x4e   : > { %8758 = vmatmul.mubr.msk.bf16.gmra.mxu0 %vm903_vm0, %v9051_v13  ;;  %v9078_v13 = vld [vmem:[%s9599_s17 + $0x130] sm:$0xff]  }
  0x4f   : > { %8761 = vmatprep.mubr.msk.bf16.mxu0 %vm903_vm0, %v9052_v14  ;;  %v9079_v14 = vld [vmem:[%s9599_s17 + $0x138] sm:$0xff]  }
  0x56   : > { %8762 = vmatmul.mubr.msk.bf16.gmra.mxu0 %vm903_vm0, %v9053_v15  ;;  %v9080_v15 = vld [vmem:[%s9599_s17 + $0x140] sm:$0xff]  }
  0x57   : > { %8765 = vmatprep.mubr.msk.bf16.mxu0 %vm903_vm0, %v9054_v16  ;;  %v9081_v16 = vld [vmem:[%s9599_s17 + $0x148] sm:$0xff]  }
  0x5e   : > { %8766 = vmatmul.mubr.msk.bf16.gmra.mxu0 %vm903_vm0, %v9055_v17  ;;  %v9082_v17 = vld [vmem:[%s9599_s17 + $0x150] sm:$0xff]  }
  0x5f   : > { %8769 = vmatprep.mubr.msk.bf16.mxu0 %vm903_vm0, %v9056_v18  ;;  %v9083_v18 = vld [vmem:[%s9599_s17 + $0x158] sm:$0xff]  }
  0x66   : > { %8770 = vmatmul.mubr.msk.bf16.gmra.mxu0 %vm903_vm0, %v9057_v19  ;;  %v9084_v19 = vld [vmem:[%s9599_s17 + $0x160] sm:$0xff]  }
  0x67   : > { %8773 = vmatprep.mubr.msk.bf16.mxu0 %vm903_vm0, %v9058_v20  ;;  %v9085_v20 = vld [vmem:[%s9599_s17 + $0x168] sm:$0xff]  }
  0x6e   : > { %8774 = vmatmul.mubr.msk.bf16.gmra.mxu0 %vm903_vm0, %v9059_v23  ;;  %v9088_v23 = vld [vmem:[%s9599_s17 + $0x180] sm:$0xff]  }
  0x6f   : > { %8777 = vmatprep.mubr.msk.bf16.mxu0 %vm903_vm0, %v9060_v26 }
  0x76   : > { %8778 = vmatmul.mubr.msk.bf16.gmra.mxu0 %vm903_vm0, %v9061_v29  ;;  %v9099_v29 = vld [vmem:[%s9599_s17 + $0x1a0] sm:$0xff]  }
  0x77   : > { %8781 = vmatprep.mubr.msk.bf16.mxu0 %vm903_vm0, %v9062_v32 }
  0x7e   : > { %8782 = vmatmul.mubr.msk.bf16.gmra.mxu0 %vm903_vm0, %v9684_v37 }
  0x7f   : > { %8785 = vmatprep.mubr.msk.bf16.mxu0 %vm903_vm0, %v9687_v38 }
  0x86   : > { %8786 = vmatmul.mubr.msk.bf16.gmra.mxu0 %vm903_vm0, %v9065_v42 }
  0x87   : > { %8789 = vmatprep.mubr.msk.bf16.mxu0 %vm903_vm0, %v9066_v47 }
  0x8e   : > { %8790 = vmatmul.mubr.msk.bf16.gmra.mxu0 %vm903_vm0, %v9067_v51 }
  0x8f   : > { %8793 = vmatprep.mubr.msk.bf16.mxu0 %vm903_vm0, %v9068_v55 }
  0x96   : > { %8794 = vmatmul.mubr.msk.bf16.gmra.mxu0 %vm903_vm0, %v9069_v58 }
  0x97   : > { %8797 = vmatprep.mubr.msk.bf16.mxu0 %vm903_vm0, %v9070_v59 }
  0x9e   : > { %8798 = vmatmul.mubr.msk.bf16.gmra.mxu0 %vm903_vm0, %v9071_v0 }
  0x9f   : > { %8801 = vmatprep.mubr.msk.bf16.mxu0 %vm903_vm0, %v9072_v1 }
  0xa6   : > { %8802 = vmatmul.mubr.msk.bf16.gmra.mxu0 %vm903_vm0, %v9073_v6 }
  0xa7   : > { %8805 = vmatprep.mubr.msk.bf16.mxu0 %vm903_vm0, %v9074_v7 }
  0xae   : > { %8806 = vmatmul.mubr.msk.bf16.gmra.mxu0 %vm903_vm0, %v9075_v10 }
  0xaf   : > { %8809 = vmatprep.mubr.msk.bf16.mxu0 %vm903_vm0, %v9076_v11 }
  0xb6   : > { %8810 = vmatmul.mubr.msk.bf16.gmra.mxu0 %vm903_vm0, %v9077_v12 }
  0xb7   : > { %8813 = vmatprep.mubr.msk.bf16.mxu0 %vm903_vm0, %v9078_v13  ;;  %v9119_v13 = vld [vmem:[%s9599_s17 + $0x1d8] sm:$0xff]  }
  0xbe   : > { %8814 = vmatmul.mubr.msk.bf16.gmra.mxu0 %vm903_vm0, %v9079_v14 }
  0xbf   : > { %8817 = vmatprep.mubr.msk.bf16.mxu0 %vm903_vm0, %v9080_v15 }
  0xc6   : > { %8818 = vmatmul.mubr.msk.bf16.gmra.mxu0 %vm903_vm0, %v9081_v16 }
  0xc7   : > { %8821 = vmatprep.mubr.msk.bf16.mxu0 %vm903_vm0, %v9082_v17 }
  0xce   : > { %8822 = vmatmul.mubr.msk.bf16.gmra.mxu0 %vm903_vm0, %v9083_v18 }
  0xcf   : > { %8825 = vmatprep.mubr.msk.bf16.mxu0 %vm903_vm0, %v9084_v19 }
  0xd6   : > { %8826 = vmatmul.mubr.msk.bf16.gmra.mxu0 %vm903_vm0, %v9085_v20  ;;  %v9124_v20 = vld [vmem:[%s9599_s17 + $0x1e0] sm:$0xff]  }
  0xd7   : > { %8829 = vmatprep.mubr.msk.bf16.mxu0 %vm903_vm0, %v9086_v21 }
  0xde   : > { %8830 = vmatmul.mubr.msk.bf16.gmra.mxu0 %vm903_vm0, %v9087_v22 }
  0xdf   : > { %8833 = vmatprep.mubr.msk.bf16.mxu0 %vm903_vm0, %v9088_v23 }
  0xe6   : > { %v8739_v26 = vpop.f32.mrf.mxu0  ;;  %8834 = vmatmul.mubr.msk.bf16.gmra.mxu0 %vm903_vm0, %v9089_v24 }
  0xe7   : > { %1643 = vst [vmem:[#allocation2 + $0x10] sm:$0xff] %v8739_v26  ;;  %8837 = vmatprep.mubr.msk.bf16.mxu0 %vm903_vm0, %v9093_v25 }
  0xe8   : > { %v1130_v27 = vpop.f32.mrf.mxu0 }
  0xe9   : > { %1641 = vst [vmem:[#allocation2] sm:$0xff] %v1130_v27 }
  0xea   : > { %v8740_v30 = vpop.f32.mrf.mxu0 }
  0xeb   : > { %1644 = vst [vmem:[#allocation2 + $0x18] sm:$0xff] %v8740_v30 }
  0xec   : > { %v1133_v31 = vpop.f32.mrf.mxu0 }
  0xed   : > { %1642 = vst [vmem:[#allocation2 + $0x8] sm:$0xff] %v1133_v31 }
  0xee   : > { %v8743_v32 = vpop.f32.mrf.mxu0  ;;  %8838 = vmatmul.mubr.msk.bf16.gmra.mxu0 %vm903_vm0, %v9095_v28 }
  0xef   : > { %1647 = vst [vmem:[#allocation2 + $0x30] sm:$0xff] %v8743_v32  ;;  %8841 = vmatprep.mubr.msk.bf16.mxu0 %vm903_vm0, %v9099_v29 }
  0xf0   : > { %v1146_v33 = vpop.f32.mrf.mxu0 }
  0xf1   : > { %1645 = vst [vmem:[#allocation2 + $0x20] sm:$0xff] %v1146_v33  ;;  %v9138_v33 = vld [vmem:[%s11504_s2 + $0xf0] sm:$0xff]  }
  0xf2   : > { %v8744_v34 = vpop.f32.mrf.mxu0  ;;  %v1771_v38 = vld [vmem:[#allocation2 + $0x10] ss:$2 sm:$0xff]  ;;  %v1835_v39 = vld [vmem:[#allocation2 + $0x11] ss:$2 sm:$0xff]  ;;  %7975 = vmatprep.subr.bf16.mxu1 %v9138_v33 }
  0xf3   : > { %1648 = vst [vmem:[#allocation2 + $0x38] sm:$0xff] %v8744_v34  ;;  %v2025_v50 = vmax.f32 %v1771_v38, %v1835_v39  ;;  %v9139_v34 = vld [vmem:[%s11504_s2 + $0xb0] sm:$0xff]   ;;  %v9125_v39 = vld [vmem:[%s9599_s17 + $0x1e8] sm:$0xff]  }
  0xf4   : > { %v1149_v37 = vpop.f32.mrf.mxu0  ;;  %v1769_v41 = vld [vmem:[#allocation2] ss:$2 sm:$0xff]  ;;  %v1833_v42 = vld [vmem:[#allocation2 + $0x1] ss:$2 sm:$0xff]  ;;  %7976 = vmatpush3.bf16.msra.mxu1 %v9139_v34 }
  0xf5   : > { %1646 = vst [vmem:[#allocation2 + $0x28] sm:$0xff] %v1149_v37  ;;  %v2024_v55 = vmax.f32 %v1769_v41, %v1833_v42 }
  0xf6   : > { %v8747_v40 = vpop.f32.mrf.mxu0  ;;  %8842 = vmatmul.mubr.msk.bf16.gmra.mxu0 %vm903_vm0, %v9101_v35 }
  0xf7   : > { %1651 = vst [vmem:[#allocation2 + $0x50] sm:$0xff] %v8747_v40  ;;  %8845 = vmatprep.mubr.msk.bf16.mxu0 %vm903_vm0, %v9105_v36  ;;  %v9130_v40 = vld [vmem:[%s9599_s17 + $0x1f0] sm:$0xff]  }
  0xf8   : > { %v1162_v43 = vpop.f32.mrf.mxu0 }
  0xf9   : > { %1649 = vst [vmem:[#allocation2 + $0x40] sm:$0xff] %v1162_v43 }
  0xfa   : > { %v1899_v46 = vld [vmem:[#allocation2 + $0x30] ss:$2 sm:$0xff]  ;;  %v1963_v47 = vld [vmem:[#allocation2 + $0x31] ss:$2 sm:$0xff]  ;;  %v8748_v49 = vpop.f32.mrf.mxu0 }
  0xfb   : > { %v2057_v51 = vmax.f32 %v1899_v46, %v1963_v47  ;;  %1652 = vst [vmem:[#allocation2 + $0x58] sm:$0xff] %v8748_v49 }
  0xfc   : > { %v1897_v52 = vld [vmem:[#allocation2 + $0x20] ss:$2 sm:$0xff]  ;;  %v1961_v53 = vld [vmem:[#allocation2 + $0x21] ss:$2 sm:$0xff]  ;;  %v1165_v54 = vpop.f32.mrf.mxu0 }
  0xfd   : > { %v2089_v56 = vmax.f32 %v2025_v50, %v2057_v51  ;;  %v2056_v57 = vmax.f32 %v1897_v52, %v1961_v53  ;;  %1650 = vst [vmem:[#allocation2 + $0x48] sm:$0xff] %v1165_v54  ;;  %v9131_v50 = vld [vmem:[%s9599_s17 + $0x1f8] sm:$0xff]   ;;  %s7211_s17 = sshll.u32 %s432_s21, 4  ;;  %s11463_s17 = int_to_ptr.vmem [resolvable:$true] %s7211_s17 }
  0xfe   : > { %v8751_v58 = vpop.f32.mrf.mxu0  ;;  %8846 = vmatmul.mubr.msk.bf16.gmra.mxu0 %vm903_vm0, %v9107_v44  ;;  %s9404_s15 = scalar_lea.vmem %s11463_s17, 16  ;;  %p9411_p0 = scmp.lt.s32.totalorder %s11463_s17, %s9409_s16 }
  0xff   : > { %v2128_v59 = vadd.f32 %v9896_v48, %v2089_v56  ;;  %v2088_v60 = vmax.f32 %v2024_v55, %v2056_v57  ;;  %1655 = vst [vmem:[#allocation2 + $0x70] sm:$0xff] %v8751_v58  ;;  %8849 = vmatprep.mubr.msk.bf16.mxu0 %vm903_vm0, %v9111_v45  ;;  %p9405_p11 = scmp.ne.s32.totalorder %s11463_s17, %s9404_s15  ;;  %p9412_p1 = scmp.lt.s32.totalorder %s9410_s22, %s9404_s15 }
 0x100   : > { %v1178_v63 = vpop.f32.mrf.mxu0 }
 0x101   : > { %1653 = vst [vmem:[#allocation2 + $0x60] sm:$0xff] %v1178_v63  ;;  %v2127_v0 = vadd.f32 %v9896_v48, %v2088_v60  ;;  %v2160_v1 = vmax.f32 %v2128_v59, 0.0  ;;  %p9406_p12 = pnand %p9405_p11, %p9578_p5  ;;  %p9413_p2 = por %p9412_p1, %p9411_p0 }
 0x102   : > { %v8752_v2 = vpop.f32.mrf.mxu0  ;;  %v1775_v8 = vld [vmem:[#allocation2 + $0x50] ss:$2 sm:$0xff]  ;;  %v1839_v9 = vld [vmem:[#allocation2 + $0x51] ss:$2 sm:$0xff] }
 0x103   : > { %1656 = vst [vmem:[#allocation2 + $0x78] sm:$0xff] %v8752_v2  ;;  %v2159_v5 = vmax.f32 %v2127_v0, 0.0  ;;  %2232 = vst [vmem:[#allocation7 + $0x21] sm:$0xff] %v2160_v1  ;;  %v2027_v18 = vmax.f32 %v1775_v8, %v1839_v9  ;;  %v9140_v9 = vld [vmem:[%s11504_s2 + $0xe8] sm:$0xff]   ;;  %p9407_p13 = pneg %p9406_p12 }
 0x104   : > { %v1181_v6 = vpop.f32.mrf.mxu0  ;;  %v1773_v11 = vld [vmem:[#allocation2 + $0x40] ss:$2 sm:$0xff]  ;;  %v1837_v14 = vld [vmem:[#allocation2 + $0x41] ss:$2 sm:$0xff]  ;;  %7977 = vmatprep.subr.bf16.mxu1 %v9140_v9 }
 0x105   : > { %1654 = vst [vmem:[#allocation2 + $0x68] sm:$0xff] %v1181_v6  ;;  %2231 = vst [vmem:[#allocation7 + $0x19] sm:$0xff] %v2159_v5  ;;  %v9910_v7 = vpack.c.bf16 %v2160_v1, %v2159_v5  ;;  %v2026_v25 = vmax.f32 %v1773_v11, %v1837_v14  ;;  %p9414_p3 = pnand %p9413_p2, %p9407_p13 }
 0x106   : > { %v8755_v10 = vpop.f32.mrf.mxu0  ;;  %8850 = vmatmul.mubr.msk.bf16.gmra.mxu0 %vm903_vm0, %v9113_v3 }
 0x107   : > { %1659 = vst [vmem:[#allocation2 + $0x90] sm:$0xff] %v8755_v10  ;;  %8853 = vmatprep.mubr.msk.bf16.mxu0 %vm903_vm0, %v9118_v4  ;;  %3312 = vmatprep.mubr.bf16.mxu1 %v9910_v7  ;;  %v9141_v10 = vld [vmem:[%s11504_s2 + $0xa8] sm:$0xff]  }
 0x108   : > { %v1194_v12 = vpop.f32.mrf.mxu0  ;;  %7978 = vmatpush3.bf16.msra.mxu1 %v9141_v10 }
 0x109   : > { %1657 = vst [vmem:[#allocation2 + $0x80] sm:$0xff] %v1194_v12 }
 0x10a   : > { %v1903_v15 = vld [vmem:[#allocation2 + $0x70] ss:$2 sm:$0xff]  ;;  %v1967_v16 = vld [vmem:[#allocation2 + $0x71] ss:$2 sm:$0xff]  ;;  %v8756_v17 = vpop.f32.mrf.mxu0 }
 0x10b   : > { %v2059_v19 = vmax.f32 %v1903_v15, %v1967_v16  ;;  %1660 = vst [vmem:[#allocation2 + $0x98] sm:$0xff] %v8756_v17  ;;  %v2424_v58 = vld [vmem:[#allocation7 + $0x22] sm:$0xff] }
 0x10c   : > { %v1901_v21 = vld [vmem:[#allocation2 + $0x60] ss:$2 sm:$0xff]  ;;  %v1965_v22 = vld [vmem:[#allocation2 + $0x61] ss:$2 sm:$0xff]  ;;  %v1197_v23 = vpop.f32.mrf.mxu0  ;;  %v2266_v28 = vld [vmem:[#allocation7 + $0x20] sm:$0xff] }
 0x10d   : > { %v2265_v24 = vld [vmem:[#allocation7 + $0x18] sm:$0xff]  ;;  %v2091_v26 = vmax.f32 %v2027_v18, %v2059_v19  ;;  %v2058_v27 = vmax.f32 %v1901_v21, %v1965_v22  ;;  %1658 = vst [vmem:[#allocation2 + $0x88] sm:$0xff] %v1197_v23 }
 0x10e   : > { %v8759_v29 = vpop.f32.mrf.mxu0  ;;  %8854 = vmatmul.mubr.msk.bf16.gmra.mxu0 %vm903_vm0, %v9119_v13  ;;  %v2561_v30 = vpack.c.bf16 %v2266_v28, %v2265_v24  ;;  %v2423_v51 = vld [vmem:[#allocation7 + $0x1a] sm:$0xff] }
 0x10f   : > { %v2130_v31 = vadd.f32 %v9896_v48, %v2091_v26  ;;  %v2090_v32 = vmax.f32 %v2026_v25, %v2058_v27  ;;  %1663 = vst [vmem:[#allocation2 + $0xb0] sm:$0xff] %v8759_v29  ;;  %8857 = vmatprep.mubr.msk.bf16.mxu0 %vm903_vm0, %v9124_v20  ;;  %v2557_v2 = vpack.c.bf16 %v2424_v58, %v2423_v51 }
 0x110   : > { %v1210_v35 = vpop.f32.mrf.mxu0  ;;  %3313 = vmatmul.mubr.bf16.gmra.mxu1 %v2561_v30 }
 0x111   : > { %1661 = vst [vmem:[#allocation2 + $0xa0] sm:$0xff] %v1210_v35  ;;  %v2129_v36 = vadd.f32 %v9896_v48, %v2090_v32  ;;  %v2162_v37 = vmax.f32 %v2130_v31, 0.0 }
 0x112   : > { %v8760_v38 = vpop.f32.mrf.mxu0  ;;  %v1779_v44 = vld [vmem:[#allocation2 + $0x90] ss:$2 sm:$0xff]  ;;  %v1843_v45 = vld [vmem:[#allocation2 + $0x91] ss:$2 sm:$0xff] }
 0x113   : > { %1664 = vst [vmem:[#allocation2 + $0xb8] sm:$0xff] %v8760_v38  ;;  %v2161_v41 = vmax.f32 %v2129_v36, 0.0  ;;  %2234 = vst [vmem:[#allocation7 + $0x39] sm:$0xff] %v2162_v37  ;;  %v2029_v56 = vmax.f32 %v1779_v44, %v1843_v45 }
 0x114   : > { %v1213_v42 = vpop.f32.mrf.mxu0  ;;  %v1777_v47 = vld [vmem:[#allocation2 + $0x80] ss:$2 sm:$0xff]  ;;  %v1841_v52 = vld [vmem:[#allocation2 + $0x81] ss:$2 sm:$0xff] }
 0x115   : > { %1662 = vst [vmem:[#allocation2 + $0xa8] sm:$0xff] %v1213_v42  ;;  %2233 = vst [vmem:[#allocation7 + $0x31] sm:$0xff] %v2161_v41  ;;  %v9929_v43 = vpack.c.bf16 %v2162_v37, %v2161_v41  ;;  %v2028_v63 = vmax.f32 %v1777_v47, %v1841_v52  ;;  %v9142_v47 = vld [vmem:[%s11504_s2 + $0xe0] sm:$0xff]  }
 0x116   : > { %v8763_v46 = vpop.f32.mrf.mxu0  ;;  %8858 = vmatmul.mubr.msk.bf16.gmra.mxu0 %vm903_vm0, %v9125_v39  ;;  %7979 = vmatprep.subr.bf16.mxu1 %v9142_v47 }
 0x117   : > { %1667 = vst [vmem:[#allocation2 + $0xd0] sm:$0xff] %v8763_v46  ;;  %8861 = vmatprep.mubr.msk.bf16.mxu0 %vm903_vm0, %v9130_v40  ;;  %3320 = vmatprep.mubr.bf16.mxu1 %v9929_v43 }
 0x118   : > { %v1226_v49 = vpop.f32.mrf.mxu0 }
 0x119   : > { %1665 = vst [vmem:[#allocation2 + $0xc0] sm:$0xff] %v1226_v49  ;;  %v9143_v49 = vld [vmem:[%s11504_s2 + $0xa0] sm:$0xff]  }
 0x11a   : > { %v1907_v53 = vld [vmem:[#allocation2 + $0xb0] ss:$2 sm:$0xff]  ;;  %v1971_v54 = vld [vmem:[#allocation2 + $0xb1] ss:$2 sm:$0xff]  ;;  %v8764_v55 = vpop.f32.mrf.mxu0  ;;  %7980 = vmatpush3.bf16.msra.mxu1 %v9143_v49 }
 0x11b   : > { %v2061_v57 = vmax.f32 %v1907_v53, %v1971_v54  ;;  %1668 = vst [vmem:[#allocation2 + $0xd8] sm:$0xff] %v8764_v55  ;;  %v2426_v18 = vld [vmem:[#allocation7 + $0x3a] sm:$0xff] }
 0x11c   : > { %v1905_v59 = vld [vmem:[#allocation2 + $0xa0] ss:$2 sm:$0xff]  ;;  %v1969_v60 = vld [vmem:[#allocation2 + $0xa1] ss:$2 sm:$0xff]  ;;  %v1229_v61 = vpop.f32.mrf.mxu0 }
 0x11d   : > { %v2267_v62 = vld [vmem:[#allocation7 + $0x30] sm:$0xff]  ;;  %v2093_v0 = vmax.f32 %v2029_v56, %v2061_v57  ;;  %v2060_v1 = vmax.f32 %v1905_v59, %v1969_v60  ;;  %1666 = vst [vmem:[#allocation2 + $0xc8] sm:$0xff] %v1229_v61  ;;  %v2268_v3 = vld [vmem:[#allocation7 + $0x38] sm:$0xff] }
 0x11e   : > { %v8767_v4 = vpop.f32.mrf.mxu0  ;;  %8862 = vmatmul.mubr.msk.bf16.gmra.mxu0 %vm903_vm0, %v9131_v50  ;;  %v2570_v5 = vpack.c.bf16 %v2268_v3, %v2267_v62  ;;  %v2425_v15 = vld [vmem:[#allocation7 + $0x32] sm:$0xff] }
 0x11f   : > { %v2132_v6 = vadd.f32 %v9896_v48, %v2093_v0  ;;  %v2092_v8 = vmax.f32 %v2028_v63, %v2060_v1  ;;  %1671 = vst [vmem:[#allocation2 + $0xf0] sm:$0xff] %v8767_v4  ;;  %3626 = vmatprep.mubr.bf16.mxu0 %v2557_v2  ;;  %v2566_v19 = vpack.c.bf16 %v2426_v18, %v2425_v15 }
 0x120   : > { %v1242_v11 = vpop.f32.mrf.mxu0  ;;  %3321 = vmatmul.mubr.bf16.gmra.mxu1 %v2570_v5 }
 0x121   : > { %1669 = vst [vmem:[#allocation2 + $0xe0] sm:$0xff] %v1242_v11  ;;  %v2131_v12 = vadd.f32 %v9896_v48, %v2092_v8  ;;  %v2164_v13 = vmax.f32 %v2132_v6, 0.0 }
 0x122   : > { %v8768_v14 = vpop.f32.mrf.mxu0  ;;  %v1783_v21 = vld [vmem:[#allocation2 + $0xd0] ss:$2 sm:$0xff]  ;;  %v1847_v22 = vld [vmem:[#allocation2 + $0xd1] ss:$2 sm:$0xff] }
 0x123   : > { %1672 = vst [vmem:[#allocation2 + $0xf8] sm:$0xff] %v8768_v14  ;;  %v2163_v16 = vmax.f32 %v2131_v12, 0.0  ;;  %2236 = vst [vmem:[#allocation7 + $0x51] sm:$0xff] %v2164_v13  ;;  %v2031_v30 = vmax.f32 %v1783_v21, %v1847_v22 }
 0x124   : > { %v1245_v17 = vpop.f32.mrf.mxu0  ;;  %v1781_v24 = vld [vmem:[#allocation2 + $0xc0] ss:$2 sm:$0xff]  ;;  %v1845_v26 = vld [vmem:[#allocation2 + $0xc1] ss:$2 sm:$0xff] }
 0x125   : > { %1670 = vst [vmem:[#allocation2 + $0xe8] sm:$0xff] %v1245_v17  ;;  %2235 = vst [vmem:[#allocation7 + $0x49] sm:$0xff] %v2163_v16  ;;  %v2580_v20 = vpack.c.bf16 %v2164_v13, %v2163_v16  ;;  %v2030_v37 = vmax.f32 %v1781_v24, %v1845_v26 }
 0x126   : > { %v8771_v23 = vpop.f32.mrf.mxu0  ;;  %3627 = vmatmul.mubr.bf16.vlgmr.msra.gmra.mxu0 %v9910_v7 }
 0x127   : > { %1675 = vst [vmem:[#allocation2 + $0x110] sm:$0xff] %v8771_v23  ;;  %3634 = vmatprep.mubr.bf16.mxu0 %v2566_v19  ;;  %3328 = vmatprep.mubr.bf16.mxu1 %v2580_v20  ;;  %v9144_v19 = vld [vmem:[%s11504_s2 + $0xd8] sm:$0xff]  }
 0x128   : > { %v1258_v25 = vpop.f32.mrf.mxu0  ;;  %7981 = vmatprep.subr.bf16.mxu1 %v9144_v19 }
 0x129   : > { %1673 = vst [vmem:[#allocation2 + $0x100] sm:$0xff] %v1258_v25 }
 0x12a   : > { %v1911_v27 = vld [vmem:[#allocation2 + $0xf0] ss:$2 sm:$0xff]  ;;  %v1975_v28 = vld [vmem:[#allocation2 + $0xf1] ss:$2 sm:$0xff]  ;;  %v8772_v29 = vpop.f32.mrf.mxu0  ;;  %v2428_v32 = vld [vmem:[#allocation7 + $0x52] sm:$0xff] }
 0x12b   : > { %v2063_v31 = vmax.f32 %v1911_v27, %v1975_v28  ;;  %1676 = vst [vmem:[#allocation2 + $0x118] sm:$0xff] %v8772_v29 }
 0x12c   : > { %v1909_v33 = vld [vmem:[#allocation2 + $0xe0] ss:$2 sm:$0xff]  ;;  %v1973_v34 = vld [vmem:[#allocation2 + $0xe1] ss:$2 sm:$0xff]  ;;  %v1261_v35 = vpop.f32.mrf.mxu0  ;;  %v2269_v40 = vld [vmem:[#allocation7 + $0x48] sm:$0xff] }
 0x12d   : > { %v2427_v36 = vld [vmem:[#allocation7 + $0x4a] sm:$0xff]  ;;  %v2095_v7 = vmax.f32 %v2031_v30, %v2063_v31  ;;  %v2062_v38 = vmax.f32 %v1909_v33, %v1973_v34  ;;  %1674 = vst [vmem:[#allocation2 + $0x108] sm:$0xff] %v1261_v35 }
 0x12e   : > { %v2575_v39 = vpack.c.bf16 %v2428_v32, %v2427_v36  ;;  %v2270_v41 = vld [vmem:[#allocation7 + $0x50] sm:$0xff]  ;;  %v8775_v42 = vpop.f32.mrf.mxu0  ;;  %3635 = vmatmul.mubr.bf16.gmra.mxu0 %v9929_v43 }
 0x12f   : > { %v2579_v44 = vpack.c.bf16 %v2270_v41, %v2269_v40  ;;  %v2134_v45 = vadd.f32 %v9896_v48, %v2095_v7  ;;  %v2094_v46 = vmax.f32 %v2030_v37, %v2062_v38  ;;  %1679 = vst [vmem:[#allocation2 + $0x130] sm:$0xff] %v8775_v42 }
 0x130   : > { %3642 = vmatprep.mubr.bf16.mxu0 %v2575_v39  ;;  %v1274_v50 = vpop.f32.mrf.mxu0 }
 0x131   : > { %3329 = vmatmul.mubr.bf16.gmra.mxu1 %v2579_v44  ;;  %1677 = vst [vmem:[#allocation2 + $0x120] sm:$0xff] %v1274_v50  ;;  %v2133_v51 = vadd.f32 %v9896_v48, %v2094_v46  ;;  %v2166_v43 = vmax.f32 %v2134_v45, 0.0 }
 0x132   : > { %v8776_v52 = vpop.f32.mrf.mxu0  ;;  %v1787_v56 = vld [vmem:[#allocation2 + $0x110] ss:$2 sm:$0xff]  ;;  %v1851_v57 = vld [vmem:[#allocation2 + $0x111] ss:$2 sm:$0xff] }
 0x133   : > { %1680 = vst [vmem:[#allocation2 + $0x138] sm:$0xff] %v8776_v52  ;;  %v2165_v53 = vmax.f32 %v2133_v51, 0.0  ;;  %2238 = vst [vmem:[#allocation7 + $0x69] sm:$0xff] %v2166_v43  ;;  %v2033_v1 = vmax.f32 %v1787_v56, %v1851_v57  ;;  %v7877_v52 = vpop.f32.mrf.mxu1  ;;  %v9147_v56 = vld [vmem:[%s11504_s2 + $0x90] sm:$0xff]  }
 0x134   : > { %v1277_v54 = vpop.f32.mrf.mxu0  ;;  %v1785_v59 = vld [vmem:[#allocation2 + $0x100] ss:$2 sm:$0xff]  ;;  %v1849_v61 = vld [vmem:[#allocation2 + $0x101] ss:$2 sm:$0xff] }
 0x135   : > { %1678 = vst [vmem:[#allocation2 + $0x128] sm:$0xff] %v1277_v54  ;;  %2237 = vst [vmem:[#allocation7 + $0x61] sm:$0xff] %v2165_v53  ;;  %v2589_v55 = vpack.c.bf16 %v2166_v43, %v2165_v53  ;;  %v2032_v9 = vmax.f32 %v1785_v59, %v1849_v61  ;;  %v7878_v61 = vpop.f32.mrf.mxu1 }
 0x136   : > { %v8779_v58 = vpop.f32.mrf.mxu0  ;;  %3643 = vmatmul.mubr.bf16.gmra.mxu0 %v2580_v20  ;;  %v9145_v20 = vld [vmem:[%s11504_s2 + $0x98] sm:$0xff]  }
 0x137   : > { %1683 = vst [vmem:[#allocation2 + $0x150] sm:$0xff] %v8779_v58  ;;  %3336 = vmatprep.mubr.bf16.mxu1 %v2589_v55  ;;  %7982 = vmatpush3.bf16.msra.mxu1 %v9145_v20 }
 0x138   : > { %v1290_v60 = vpop.f32.mrf.mxu0 }
 0x139   : > { %1681 = vst [vmem:[#allocation2 + $0x140] sm:$0xff] %v1290_v60 }
 0x13a   : > { %v1915_v62 = vld [vmem:[#allocation2 + $0x130] ss:$2 sm:$0xff]  ;;  %v1979_v63 = vld [vmem:[#allocation2 + $0x131] ss:$2 sm:$0xff]  ;;  %v8780_v0 = vpop.f32.mrf.mxu0 }
 0x13b   : > { %v2065_v2 = vmax.f32 %v1915_v62, %v1979_v63  ;;  %1684 = vst [vmem:[#allocation2 + $0x158] sm:$0xff] %v8780_v0  ;;  %v2430_v3 = vld [vmem:[#allocation7 + $0x6a] sm:$0xff]  ;;  %v9970_v63 = vadd.f32 %v7878_v61, %v7877_v52 }
 0x13c   : > { %v1913_v4 = vld [vmem:[#allocation2 + $0x120] ss:$2 sm:$0xff]  ;;  %v1977_v5 = vld [vmem:[#allocation2 + $0x121] ss:$2 sm:$0xff]  ;;  %v1293_v6 = vpop.f32.mrf.mxu0  ;;  %v2429_v8 = vld [vmem:[#allocation7 + $0x62] sm:$0xff] }
 0x13d   : > { %v2097_v10 = vmax.f32 %v2033_v1, %v2065_v2  ;;  %v2064_v11 = vmax.f32 %v1913_v4, %v1977_v5  ;;  %1682 = vst [vmem:[#allocation2 + $0x148] sm:$0xff] %v1293_v6  ;;  %v2584_v12 = vpack.c.bf16 %v2430_v3, %v2429_v8  ;;  %v2271_v13 = vld [vmem:[#allocation7 + $0x60] sm:$0xff]  ;;  %v2272_v14 = vld [vmem:[#allocation7 + $0x68] sm:$0xff] }
 0x13e   : > { %v8783_v15 = vpop.f32.mrf.mxu0  ;;  %v2588_v16 = vpack.c.bf16 %v2272_v14, %v2271_v13 }
 0x13f   : > { %v2136_v17 = vadd.f32 %v9896_v48, %v2097_v10  ;;  %v2096_v18 = vmax.f32 %v2032_v9, %v2064_v11  ;;  %1687 = vst [vmem:[#allocation2 + $0x170] sm:$0xff] %v8783_v15  ;;  %3650 = vmatprep.mubr.bf16.mxu0 %v2584_v12 }
 0x140   : > { %v1306_v21 = vpop.f32.mrf.mxu0  ;;  %3337 = vmatmul.mubr.bf16.gmra.mxu1 %v2588_v16  ;;  %3651 = vmatmul.mubr.bf16.gmra.mxu0 %v2589_v55  ;;  %v9146_v55 = vld [vmem:[%s11504_s2 + $0xd0] sm:$0xff]  }
 0x141   : > { %1685 = vst [vmem:[#allocation2 + $0x160] sm:$0xff] %v1306_v21  ;;  %v2135_v22 = vadd.f32 %v9896_v48, %v2096_v18  ;;  %v2168_v23 = vmax.f32 %v2136_v17, 0.0  ;;  %7983 = vmatprep.subr.bf16.mxu1 %v9146_v55 }
 0x142   : > { %v8784_v24 = vpop.f32.mrf.mxu0  ;;  %v1791_v28 = vld [vmem:[#allocation2 + $0x150] ss:$2 sm:$0xff]  ;;  %v1855_v29 = vld [vmem:[#allocation2 + $0x151] ss:$2 sm:$0xff]  ;;  %7984 = vmatpush3.bf16.msra.mxu1 %v9147_v56 }
 0x143   : > { %1688 = vst [vmem:[#allocation2 + $0x178] sm:$0xff] %v8784_v24  ;;  %v2167_v25 = vmax.f32 %v2135_v22, 0.0  ;;  %2240 = vst [vmem:[#allocation7 + $0x81] sm:$0xff] %v2168_v23  ;;  %v2035_v37 = vmax.f32 %v1791_v28, %v1855_v29  ;;  %v9148_v29 = vld [vmem:[%s11504_s2 + $0xc8] sm:$0xff]  }
 0x144   : > { %v1309_v26 = vpop.f32.mrf.mxu0  ;;  %v1789_v31 = vld [vmem:[#allocation2 + $0x140] ss:$2 sm:$0xff]  ;;  %v1853_v33 = vld [vmem:[#allocation2 + $0x141] ss:$2 sm:$0xff]  ;;  %7985 = vmatprep.subr.bf16.mxu1 %v9148_v29 }
 0x145   : > { %1686 = vst [vmem:[#allocation2 + $0x168] sm:$0xff] %v1309_v26  ;;  %2239 = vst [vmem:[#allocation7 + $0x79] sm:$0xff] %v2167_v25  ;;  %v2598_v27 = vpack.c.bf16 %v2168_v23, %v2167_v25  ;;  %v2034_v44 = vmax.f32 %v1789_v31, %v1853_v33 }
 0x146   : > { %v8787_v30 = vpop.f32.mrf.mxu0 }
 0x147   : > { %1691 = vst [vmem:[#allocation2 + $0x190] sm:$0xff] %v8787_v30  ;;  %3344 = vmatprep.mubr.bf16.mxu1 %v2598_v27  ;;  %v9149_v30 = vld [vmem:[%s11504_s2 + $0x88] sm:$0xff]  }
 0x148   : > { %v1322_v32 = vpop.f32.mrf.mxu0  ;;  %7986 = vmatpush3.bf16.msra.mxu1 %v9149_v30 }
 0x149   : > { %1689 = vst [vmem:[#allocation2 + $0x180] sm:$0xff] %v1322_v32 }
 0x14a   : > { %v1919_v34 = vld [vmem:[#allocation2 + $0x170] ss:$2 sm:$0xff]  ;;  %v1983_v35 = vld [vmem:[#allocation2 + $0x171] ss:$2 sm:$0xff]  ;;  %v8788_v36 = vpop.f32.mrf.mxu0 }
 0x14b   : > { %v2067_v7 = vmax.f32 %v1919_v34, %v1983_v35  ;;  %1692 = vst [vmem:[#allocation2 + $0x198] sm:$0xff] %v8788_v36  ;;  %v2432_v38 = vld [vmem:[#allocation7 + $0x82] sm:$0xff] }
 0x14c   : > { %v1917_v39 = vld [vmem:[#allocation2 + $0x160] ss:$2 sm:$0xff]  ;;  %v1981_v40 = vld [vmem:[#allocation2 + $0x161] ss:$2 sm:$0xff]  ;;  %v1325_v41 = vpop.f32.mrf.mxu0  ;;  %v2274_v50 = vld [vmem:[#allocation7 + $0x80] sm:$0xff] }
 0x14d   : > { %v2431_v42 = vld [vmem:[#allocation7 + $0x7a] sm:$0xff]  ;;  %v2099_v45 = vmax.f32 %v2035_v37, %v2067_v7  ;;  %v2066_v46 = vmax.f32 %v1917_v39, %v1981_v40  ;;  %1690 = vst [vmem:[#allocation2 + $0x188] sm:$0xff] %v1325_v41 }
 0x14e   : > { %v2593_v47 = vpack.c.bf16 %v2432_v38, %v2431_v42  ;;  %v2273_v49 = vld [vmem:[#allocation7 + $0x78] sm:$0xff]  ;;  %v8791_v51 = vpop.f32.mrf.mxu0  ;;  %v9152_v38 = vld [vmem:[%s11504_s2 + $0x238] sm:$0xff]  }
 0x14f   : > { %v2597_v43 = vpack.c.bf16 %v2274_v50, %v2273_v49  ;;  %v2138_v53 = vadd.f32 %v9896_v48, %v2099_v45  ;;  %v2098_v54 = vmax.f32 %v2034_v44, %v2066_v46  ;;  %1695 = vst [vmem:[#allocation2 + $0x1b0] sm:$0xff] %v8791_v51  ;;  %8865 = vmatprep.subr.bf16.mxu0 %v9152_v38  ;;  %v9153_v51 = vld [vmem:[%s11504_s2 + $0x230] sm:$0xff]  }
 0x150   : > { %3658 = vmatprep.mubr.bf16.mxu0 %v2593_v47  ;;  %v1338_v57 = vpop.f32.mrf.mxu0  ;;  %8866 = vmatpush3.bf16.msra.mxu0 %v9152_v38  ;;  %v9159_v38 = vld [vmem:[%s11504_s2 + $0x210] sm:$0xff]  }
 0x151   : > { %3345 = vmatmul.mubr.bf16.gmra.mxu1 %v2597_v43  ;;  %3659 = vmatmul.mubr.bf16.gmra.mxu0 %v2598_v27  ;;  %1693 = vst [vmem:[#allocation2 + $0x1a0] sm:$0xff] %v1338_v57  ;;  %v2137_v58 = vadd.f32 %v9896_v48, %v2098_v54  ;;  %v2170_v59 = vmax.f32 %v2138_v53, 0.0 }
 0x152   : > { %v8792_v60 = vpop.f32.mrf.mxu0  ;;  %v1795_v2 = vld [vmem:[#allocation2 + $0x190] ss:$2 sm:$0xff]  ;;  %v1859_v3 = vld [vmem:[#allocation2 + $0x191] ss:$2 sm:$0xff]  ;;  %8867 = vmatprep.subr.bf16.mxu0 %v9153_v51 }
 0x153   : > { %1696 = vst [vmem:[#allocation2 + $0x1b8] sm:$0xff] %v8792_v60  ;;  %v2169_v62 = vmax.f32 %v2137_v58, 0.0  ;;  %2242 = vst [vmem:[#allocation7 + $0x99] sm:$0xff] %v2170_v59  ;;  %v2037_v12 = vmax.f32 %v1795_v2, %v1859_v3  ;;  %v9150_v3 = vld [vmem:[%s11504_s2 + $0xc0] sm:$0xff]  }
 0x154   : > { %v1341_v0 = vpop.f32.mrf.mxu0  ;;  %v1793_v6 = vld [vmem:[#allocation2 + $0x180] ss:$2 sm:$0xff]  ;;  %v1857_v8 = vld [vmem:[#allocation2 + $0x181] ss:$2 sm:$0xff]  ;;  %8868 = vmatpush3.bf16.msra.mxu0 %v9153_v51  ;;  %7987 = vmatprep.subr.bf16.mxu1 %v9150_v3 }
 0x155   : > { %1694 = vst [vmem:[#allocation2 + $0x1a8] sm:$0xff] %v1341_v0  ;;  %2241 = vst [vmem:[#allocation7 + $0x91] sm:$0xff] %v2169_v62  ;;  %v2607_v1 = vpack.c.bf16 %v2170_v59, %v2169_v62  ;;  %v2036_v19 = vmax.f32 %v1793_v6, %v1857_v8  ;;  %v9989_v0 = vld [vmem:[%s11508_s6] ss:$0 sm:$0xff] }
 0x156   : > { %v8795_v4 = vpop.f32.mrf.mxu0  ;;  %v9161_v51 = vld [vmem:[%s11504_s2 + $0x200] sm:$0xff]  }
 0x157   : > { %1699 = vst [vmem:[#allocation2 + $0x1d0] sm:$0xff] %v8795_v4  ;;  %3352 = vmatprep.mubr.bf16.mxu1 %v2607_v1  ;;  %v9151_v4 = vld [vmem:[%s11504_s2 + $0x80] sm:$0xff]  }
 0x158   : > { %v1354_v5 = vpop.f32.mrf.mxu0  ;;  %7988 = vmatpush3.bf16.msra.mxu1 %v9151_v4 }
 0x159   : > { %1697 = vst [vmem:[#allocation2 + $0x1c0] sm:$0xff] %v1354_v5  ;;  %v9154_v5 = vld [vmem:[%s11504_s2 + $0x228] sm:$0xff]  }
 0x15a   : > { %v1923_v9 = vld [vmem:[#allocation2 + $0x1b0] ss:$2 sm:$0xff]  ;;  %v1987_v10 = vld [vmem:[#allocation2 + $0x1b1] ss:$2 sm:$0xff]  ;;  %v8796_v11 = vpop.f32.mrf.mxu0  ;;  %8869 = vmatprep.subr.bf16.mxu0 %v9154_v5 }
 0x15b   : > { %v2069_v13 = vmax.f32 %v1923_v9, %v1987_v10  ;;  %1700 = vst [vmem:[#allocation2 + $0x1d8] sm:$0xff] %v8796_v11  ;;  %v2434_v14 = vld [vmem:[#allocation7 + $0x9a] sm:$0xff]  ;;  %8870 = vmatpush3.bf16.msra.mxu0 %v9154_v5 }
 0x15c   : > { %v1921_v15 = vld [vmem:[#allocation2 + $0x1a0] ss:$2 sm:$0xff]  ;;  %v1985_v16 = vld [vmem:[#allocation2 + $0x1a1] ss:$2 sm:$0xff]  ;;  %v1357_v17 = vpop.f32.mrf.mxu0 }
 0x15d   : > { %v2433_v18 = vld [vmem:[#allocation7 + $0x92] sm:$0xff]  ;;  %v2101_v20 = vmax.f32 %v2037_v12, %v2069_v13  ;;  %v2068_v21 = vmax.f32 %v1921_v15, %v1985_v16  ;;  %1698 = vst [vmem:[#allocation2 + $0x1c8] sm:$0xff] %v1357_v17  ;;  %v9156_v16 = vld [vmem:[%s11504_s2 + $0x1f8] sm:$0xff]  }
 0x15e   : > { %v2602_v22 = vpack.c.bf16 %v2434_v14, %v2433_v18  ;;  %v2275_v23 = vld [vmem:[#allocation7 + $0x90] sm:$0xff]  ;;  %v2276_v24 = vld [vmem:[#allocation7 + $0x98] sm:$0xff]  ;;  %v8799_v25 = vpop.f32.mrf.mxu0  ;;  %8197 = vmatprep.subr.bf16.mxu1 %v9156_v16 }
 0x15f   : > { %v2606_v26 = vpack.c.bf16 %v2276_v24, %v2275_v23  ;;  %v2140_v27 = vadd.f32 %v9896_v48, %v2101_v20  ;;  %v2100_v28 = vmax.f32 %v2036_v19, %v2068_v21  ;;  %1703 = vst [vmem:[#allocation2 + $0x1f0] sm:$0xff] %v8799_v25  ;;  %v9155_v13 = vld [vmem:[%s11504_s2 + $0x220] sm:$0xff]   ;;  %v9158_v20 = vld [vmem:[%s11504_s2 + $0x218] sm:$0xff]  }
 0x160   : > { %3666 = vmatprep.mubr.bf16.mxu0 %v2602_v22  ;;  %v1370_v31 = vpop.f32.mrf.mxu0  ;;  %8871 = vmatprep.subr.bf16.mxu0 %v9155_v13 }
 0x161   : > { %3353 = vmatmul.mubr.bf16.gmra.mxu1 %v2606_v26  ;;  %3667 = vmatmul.mubr.bf16.gmra.mxu0 %v2607_v1  ;;  %1701 = vst [vmem:[#allocation2 + $0x1e0] sm:$0xff] %v1370_v31  ;;  %v2139_v32 = vadd.f32 %v9896_v48, %v2100_v28  ;;  %v2172_v33 = vmax.f32 %v2140_v27, 0.0 }
 0x162   : > { %v8800_v34 = vpop.f32.mrf.mxu0  ;;  %v1799_v39 = vld [vmem:[#allocation2 + $0x1d0] ss:$2 sm:$0xff]  ;;  %v1863_v48 = vld [vmem:[#allocation2 + $0x1d1] ss:$2 sm:$0xff]  ;;  %8872 = vmatpush3.bf16.msra.mxu0 %v9155_v13 }
 0x163   : > { %1704 = vst [vmem:[#allocation2 + $0x1f8] sm:$0xff] %v8800_v34  ;;  %v2171_v35 = vmax.f32 %v2139_v32, 0.0  ;;  %2244 = vst [vmem:[#allocation7 + $0xb1] sm:$0xff] %v2172_v33  ;;  %v2039_v47 = vmax.f32 %v1799_v39, %v1863_v48  ;;  %8873 = vmatprep.subr.bf16.mxu0 %v9158_v20 }
 0x164   : > { %v1373_v36 = vpop.f32.mrf.mxu0  ;;  %v1797_v41 = vld [vmem:[#allocation2 + $0x1c0] ss:$2 sm:$0xff]  ;;  %v1861_v42 = vld [vmem:[#allocation2 + $0x1c1] ss:$2 sm:$0xff] }
 0x165   : > { %1702 = vst [vmem:[#allocation2 + $0x1e8] sm:$0xff] %v1373_v36  ;;  %2243 = vst [vmem:[#allocation7 + $0xa9] sm:$0xff] %v2171_v35  ;;  %v2616_v37 = vpack.c.bf16 %v2172_v33, %v2171_v35  ;;  %v2038_v55 = vmax.f32 %v1797_v41, %v1861_v42 }
 0x166   : > { %v8803_v7 = vpop.f32.mrf.mxu0  ;;  %8874 = vmatpush3.bf16.msra.mxu0 %v9158_v20 }
 0x167   : > { %1707 = vst [vmem:[#allocation2 + $0x210] sm:$0xff] %v8803_v7  ;;  %3360 = vmatprep.mubr.bf16.mxu1 %v2616_v37  ;;  %8875 = vmatprep.subr.bf16.mxu0 %v9159_v38 }
 0x168   : > { %v1386_v40 = vpop.f32.mrf.mxu0 }
 0x169   : > { %1705 = vst [vmem:[#allocation2 + $0x200] sm:$0xff] %v1386_v40 }
 0x16a   : > { %v1927_v44 = vld [vmem:[#allocation2 + $0x1f0] ss:$2 sm:$0xff]  ;;  %v1991_v45 = vld [vmem:[#allocation2 + $0x1f1] ss:$2 sm:$0xff]  ;;  %v8804_v46 = vpop.f32.mrf.mxu0  ;;  %v2436_v50 = vld [vmem:[#allocation7 + $0xb2] sm:$0xff]  ;;  %8876 = vmatpush3.bf16.msra.mxu0 %v9159_v38 }
 0x16b   : > { %v2071_v49 = vmax.f32 %v1927_v44, %v1991_v45  ;;  %1708 = vst [vmem:[#allocation2 + $0x218] sm:$0xff] %v8804_v46  ;;  %v9160_v44 = vld [vmem:[%s11504_s2 + $0x208] sm:$0xff]  }
 0x16c   : > { %v1925_v43 = vld [vmem:[#allocation2 + $0x1e0] ss:$2 sm:$0xff]  ;;  %v1989_v52 = vld [vmem:[#allocation2 + $0x1e1] ss:$2 sm:$0xff]  ;;  %v1389_v53 = vpop.f32.mrf.mxu0  ;;  %v2277_v59 = vld [vmem:[#allocation7 + $0xa8] sm:$0xff]  ;;  %8877 = vmatprep.subr.bf16.mxu0 %v9160_v44 }
 0x16d   : > { %v2435_v54 = vld [vmem:[#allocation7 + $0xaa] sm:$0xff]  ;;  %v2103_v56 = vmax.f32 %v2039_v47, %v2071_v49  ;;  %v2070_v57 = vmax.f32 %v1925_v43, %v1989_v52  ;;  %1706 = vst [vmem:[#allocation2 + $0x208] sm:$0xff] %v1389_v53 }
 0x16e   : > { %v2611_v58 = vpack.c.bf16 %v2436_v50, %v2435_v54  ;;  %v2278_v60 = vld [vmem:[#allocation7 + $0xb0] sm:$0xff]  ;;  %v8807_v61 = vpop.f32.mrf.mxu0  ;;  %8878 = vmatpush3.bf16.msra.mxu0 %v9160_v44 }
 0x16f   : > { %v2615_v62 = vpack.c.bf16 %v2278_v60, %v2277_v59  ;;  %v2142_v1 = vadd.f32 %v9989_v0, %v2103_v56  ;;  %v2102_v2 = vmax.f32 %v2038_v55, %v2070_v57  ;;  %1711 = vst [vmem:[#allocation2 + $0x230] sm:$0xff] %v8807_v61  ;;  %8879 = vmatprep.subr.bf16.mxu0 %v9161_v51 }
 0x170   : > { %3674 = vmatprep.mubr.bf16.mxu0 %v2611_v58  ;;  %v1402_v6 = vpop.f32.mrf.mxu0 }
 0x171   : > { %3361 = vmatmul.mubr.bf16.gmra.mxu1 %v2615_v62  ;;  %3675 = vmatmul.mubr.bf16.gmra.mxu0 %v2616_v37  ;;  %1709 = vst [vmem:[#allocation2 + $0x220] sm:$0xff] %v1402_v6  ;;  %v2141_v8 = vadd.f32 %v9989_v0, %v2102_v2  ;;  %v2174_v9 = vmax.f32 %v2142_v1, 0.0 }
 0x172   : > { %v8808_v10 = vpop.f32.mrf.mxu0  ;;  %v1803_v17 = vld [vmem:[#allocation2 + $0x210] ss:$2 sm:$0xff]  ;;  %v1867_v18 = vld [vmem:[#allocation2 + $0x211] ss:$2 sm:$0xff]  ;;  %8880 = vmatpush3.bf16.msra.mxu0 %v9161_v51 }
 0x173   : > { %1712 = vst [vmem:[#allocation2 + $0x238] sm:$0xff] %v8808_v10  ;;  %v2173_v11 = vmax.f32 %v2141_v8, 0.0  ;;  %2246 = vst [vmem:[#allocation7 + $0xc9] sm:$0xff] %v2174_v9  ;;  %v2041_v26 = vmax.f32 %v1803_v17, %v1867_v18 }
 0x174   : > { %v1405_v12 = vpop.f32.mrf.mxu0  ;;  %v1801_v21 = vld [vmem:[#allocation2 + $0x200] ss:$2 sm:$0xff]  ;;  %v1865_v22 = vld [vmem:[#allocation2 + $0x201] ss:$2 sm:$0xff] }
 0x175   : > { %1710 = vst [vmem:[#allocation2 + $0x228] sm:$0xff] %v1405_v12  ;;  %2245 = vst [vmem:[#allocation7 + $0xc1] sm:$0xff] %v2173_v11  ;;  %v2625_v14 = vpack.c.bf16 %v2174_v9, %v2173_v11  ;;  %v2040_v33 = vmax.f32 %v1801_v21, %v1865_v22 }
 0x176   : > { %v8811_v15 = vpop.f32.mrf.mxu0 }
 0x177   : > { %1715 = vst [vmem:[#allocation2 + $0x250] sm:$0xff] %v8811_v15  ;;  %3368 = vmatprep.mubr.bf16.mxu1 %v2625_v14 }
 0x178   : > { %v1418_v19 = vpop.f32.mrf.mxu0 }
 0x179   : > { %1713 = vst [vmem:[#allocation2 + $0x240] sm:$0xff] %v1418_v19 }
 0x17a   : > { %v1931_v23 = vld [vmem:[#allocation2 + $0x230] ss:$2 sm:$0xff]  ;;  %v1995_v24 = vld [vmem:[#allocation2 + $0x231] ss:$2 sm:$0xff]  ;;  %v8812_v25 = vpop.f32.mrf.mxu0 }
 0x17b   : > { %v2073_v27 = vmax.f32 %v1931_v23, %v1995_v24  ;;  %1716 = vst [vmem:[#allocation2 + $0x258] sm:$0xff] %v8812_v25  ;;  %v2438_v28 = vld [vmem:[#allocation7 + $0xca] sm:$0xff] }
 0x17c   : > { %v1929_v29 = vld [vmem:[#allocation2 + $0x220] ss:$2 sm:$0xff]  ;;  %v1993_v30 = vld [vmem:[#allocation2 + $0x221] ss:$2 sm:$0xff]  ;;  %v1421_v31 = vpop.f32.mrf.mxu0  ;;  %v2437_v32 = vld [vmem:[#allocation7 + $0xc2] sm:$0xff] }
 0x17d   : > { %v2105_v34 = vmax.f32 %v2041_v26, %v2073_v27  ;;  %v2072_v35 = vmax.f32 %v1929_v29, %v1993_v30  ;;  %1714 = vst [vmem:[#allocation2 + $0x248] sm:$0xff] %v1421_v31  ;;  %v2620_v36 = vpack.c.bf16 %v2438_v28, %v2437_v32  ;;  %v2279_v37 = vld [vmem:[#allocation7 + $0xc0] sm:$0xff]  ;;  %v2280_v7 = vld [vmem:[#allocation7 + $0xc8] sm:$0xff] }
 0x17e   : > { %v8815_v39 = vpop.f32.mrf.mxu0  ;;  %v2624_v48 = vpack.c.bf16 %v2280_v7, %v2279_v37 }
 0x17f   : > { %v2144_v40 = vadd.f32 %v9989_v0, %v2105_v34  ;;  %v2104_v41 = vmax.f32 %v2040_v33, %v2072_v35  ;;  %1719 = vst [vmem:[#allocation2 + $0x270] sm:$0xff] %v8815_v39  ;;  %3682 = vmatprep.mubr.bf16.mxu0 %v2620_v36 }
 0x180   : > { %v1434_v42 = vpop.f32.mrf.mxu0  ;;  %3369 = vmatmul.mubr.bf16.gmra.mxu1 %v2624_v48  ;;  %3683 = vmatmul.mubr.bf16.gmra.mxu0 %v2625_v14 }
 0x181   : > { %1717 = vst [vmem:[#allocation2 + $0x260] sm:$0xff] %v1434_v42  ;;  %v2143_v45 = vadd.f32 %v9989_v0, %v2104_v41  ;;  %v2176_v46 = vmax.f32 %v2144_v40, 0.0 }
 0x182   : > { %v8816_v47 = vpop.f32.mrf.mxu0  ;;  %v1807_v53 = vld [vmem:[#allocation2 + $0x250] ss:$2 sm:$0xff]  ;;  %v1871_v54 = vld [vmem:[#allocation2 + $0x251] ss:$2 sm:$0xff] }
 0x183   : > { %1720 = vst [vmem:[#allocation2 + $0x278] sm:$0xff] %v8816_v47  ;;  %v2175_v49 = vmax.f32 %v2143_v45, 0.0  ;;  %2248 = vst [vmem:[#allocation7 + $0xe1] sm:$0xff] %v2176_v46  ;;  %v2043_v61 = vmax.f32 %v1807_v53, %v1871_v54 }
 0x184   : > { %v1437_v50 = vpop.f32.mrf.mxu0  ;;  %v1805_v56 = vld [vmem:[#allocation2 + $0x240] ss:$2 sm:$0xff]  ;;  %v1869_v57 = vld [vmem:[#allocation2 + $0x241] ss:$2 sm:$0xff] }
 0x185   : > { %1718 = vst [vmem:[#allocation2 + $0x268] sm:$0xff] %v1437_v50  ;;  %2247 = vst [vmem:[#allocation7 + $0xd9] sm:$0xff] %v2175_v49  ;;  %v2634_v43 = vpack.c.bf16 %v2176_v46, %v2175_v49  ;;  %v2042_v6 = vmax.f32 %v1805_v56, %v1869_v57 }
 0x186   : > { %v8819_v52 = vpop.f32.mrf.mxu0 }
 0x187   : > { %1723 = vst [vmem:[#allocation2 + $0x290] sm:$0xff] %v8819_v52  ;;  %3376 = vmatprep.mubr.bf16.mxu1 %v2634_v43 }
 0x188   : > { %v1450_v55 = vpop.f32.mrf.mxu0 }
 0x189   : > { %1721 = vst [vmem:[#allocation2 + $0x280] sm:$0xff] %v1450_v55 }
 0x18a   : > { %v1935_v58 = vld [vmem:[#allocation2 + $0x270] ss:$2 sm:$0xff]  ;;  %v1999_v59 = vld [vmem:[#allocation2 + $0x271] ss:$2 sm:$0xff]  ;;  %v8820_v60 = vpop.f32.mrf.mxu0 }
 0x18b   : > { %v2075_v62 = vmax.f32 %v1935_v58, %v1999_v59  ;;  %1724 = vst [vmem:[#allocation2 + $0x298] sm:$0xff] %v8820_v60  ;;  %v2440_v1 = vld [vmem:[#allocation7 + $0xe2] sm:$0xff] }
 0x18c   : > { %v1933_v2 = vld [vmem:[#allocation2 + $0x260] ss:$2 sm:$0xff]  ;;  %v1997_v3 = vld [vmem:[#allocation2 + $0x261] ss:$2 sm:$0xff]  ;;  %v1453_v4 = vpop.f32.mrf.mxu0  ;;  %v2282_v12 = vld [vmem:[#allocation7 + $0xe0] sm:$0xff] }
 0x18d   : > { %v2439_v5 = vld [vmem:[#allocation7 + $0xda] sm:$0xff]  ;;  %v2107_v8 = vmax.f32 %v2043_v61, %v2075_v62  ;;  %v2074_v9 = vmax.f32 %v1933_v2, %v1997_v3  ;;  %1722 = vst [vmem:[#allocation2 + $0x288] sm:$0xff] %v1453_v4 }
 0x18e   : > { %v2629_v10 = vpack.c.bf16 %v2440_v1, %v2439_v5  ;;  %v2281_v11 = vld [vmem:[#allocation7 + $0xd8] sm:$0xff]  ;;  %v8823_v13 = vpop.f32.mrf.mxu0 }
 0x18f   : > { %v2633_v14 = vpack.c.bf16 %v2282_v12, %v2281_v11  ;;  %v2146_v15 = vadd.f32 %v9989_v0, %v2107_v8  ;;  %v2106_v16 = vmax.f32 %v2042_v6, %v2074_v9  ;;  %1727 = vst [vmem:[#allocation2 + $0x2b0] sm:$0xff] %v8823_v13 }
 0x190   : > { %3690 = vmatprep.mubr.bf16.mxu0 %v2629_v10  ;;  %v1466_v17 = vpop.f32.mrf.mxu0 }
 0x191   : > { %3377 = vmatmul.mubr.bf16.gmra.mxu1 %v2633_v14  ;;  %3691 = vmatmul.mubr.bf16.gmra.mxu0 %v2634_v43  ;;  %1725 = vst [vmem:[#allocation2 + $0x2a0] sm:$0xff] %v1466_v17  ;;  %v2145_v18 = vadd.f32 %v9989_v0, %v2106_v16  ;;  %v2178_v19 = vmax.f32 %v2146_v15, 0.0 }
 0x192   : > { %v8824_v20 = vpop.f32.mrf.mxu0  ;;  %v1811_v25 = vld [vmem:[#allocation2 + $0x290] ss:$2 sm:$0xff]  ;;  %v1875_v26 = vld [vmem:[#allocation2 + $0x291] ss:$2 sm:$0xff] }
 0x193   : > { %1728 = vst [vmem:[#allocation2 + $0x2b8] sm:$0xff] %v8824_v20  ;;  %v2177_v21 = vmax.f32 %v2145_v18, 0.0  ;;  %2250 = vst [vmem:[#allocation7 + $0xf9] sm:$0xff] %v2178_v19  ;;  %v2045_v33 = vmax.f32 %v1811_v25, %v1875_v26 }
 0x194   : > { %v1469_v22 = vpop.f32.mrf.mxu0  ;;  %v1809_v28 = vld [vmem:[#allocation2 + $0x280] ss:$2 sm:$0xff]  ;;  %v1873_v29 = vld [vmem:[#allocation2 + $0x281] ss:$2 sm:$0xff] }
 0x195   : > { %1726 = vst [vmem:[#allocation2 + $0x2a8] sm:$0xff] %v1469_v22  ;;  %2249 = vst [vmem:[#allocation7 + $0xf1] sm:$0xff] %v2177_v21  ;;  %v2643_v23 = vpack.c.bf16 %v2178_v19, %v2177_v21  ;;  %v2044_v39 = vmax.f32 %v1809_v28, %v1873_v29 }
 0x196   : > { %v8827_v24 = vpop.f32.mrf.mxu0 }
 0x197   : > { %1731 = vst [vmem:[#allocation2 + $0x2d0] sm:$0xff] %v8827_v24  ;;  %3384 = vmatprep.mubr.bf16.mxu1 %v2643_v23 }
 0x198   : > { %v1482_v27 = vpop.f32.mrf.mxu0 }
 0x199   : > { %1729 = vst [vmem:[#allocation2 + $0x2c0] sm:$0xff] %v1482_v27 }
 0x19a   : > { %v1939_v30 = vld [vmem:[#allocation2 + $0x2b0] ss:$2 sm:$0xff]  ;;  %v2003_v31 = vld [vmem:[#allocation2 + $0x2b1] ss:$2 sm:$0xff]  ;;  %v8828_v32 = vpop.f32.mrf.mxu0 }
 0x19b   : > { %v2077_v34 = vmax.f32 %v1939_v30, %v2003_v31  ;;  %1732 = vst [vmem:[#allocation2 + $0x2d8] sm:$0xff] %v8828_v32  ;;  %v2442_v35 = vld [vmem:[#allocation7 + $0xfa] sm:$0xff] }
 0x19c   : > { %v1937_v36 = vld [vmem:[#allocation2 + $0x2a0] ss:$2 sm:$0xff]  ;;  %v2001_v37 = vld [vmem:[#allocation2 + $0x2a1] ss:$2 sm:$0xff]  ;;  %v1485_v7 = vpop.f32.mrf.mxu0 }
 0x19d   : > { %v2441_v38 = vld [vmem:[#allocation7 + $0xf2] sm:$0xff]  ;;  %v2109_v48 = vmax.f32 %v2045_v33, %v2077_v34  ;;  %v2076_v40 = vmax.f32 %v1937_v36, %v2001_v37  ;;  %1730 = vst [vmem:[#allocation2 + $0x2c8] sm:$0xff] %v1485_v7 }
 0x19e   : > { %v2638_v41 = vpack.c.bf16 %v2442_v35, %v2441_v38  ;;  %v2283_v42 = vld [vmem:[#allocation7 + $0xf0] sm:$0xff]  ;;  %v2284_v44 = vld [vmem:[#allocation7 + $0xf8] sm:$0xff]  ;;  %v8831_v45 = vpop.f32.mrf.mxu0 }
 0x19f   : > { %v2642_v46 = vpack.c.bf16 %v2284_v44, %v2283_v42  ;;  %v2148_v47 = vadd.f32 %v9989_v0, %v2109_v48  ;;  %v2108_v49 = vmax.f32 %v2044_v39, %v2076_v40  ;;  %1735 = vst [vmem:[#allocation2 + $0x2f0] sm:$0xff] %v8831_v45 }
 0x1a0   : > { %3698 = vmatprep.mubr.bf16.mxu0 %v2638_v41  ;;  %v1498_v50 = vpop.f32.mrf.mxu0 }
 0x1a1   : > { %3385 = vmatmul.mubr.bf16.gmra.mxu1 %v2642_v46  ;;  %3699 = vmatmul.mubr.bf16.gmra.mxu0 %v2643_v23  ;;  %1733 = vst [vmem:[#allocation2 + $0x2e0] sm:$0xff] %v1498_v50  ;;  %v2147_v51 = vadd.f32 %v9989_v0, %v2108_v49  ;;  %v2180_v43 = vmax.f32 %v2148_v47, 0.0 }
 0x1a2   : > { %v8832_v52 = vpop.f32.mrf.mxu0  ;;  %v1815_v57 = vld [vmem:[#allocation2 + $0x2d0] ss:$2 sm:$0xff]  ;;  %v1879_v58 = vld [vmem:[#allocation2 + $0x2d1] ss:$2 sm:$0xff] }
 0x1a3   : > { %1736 = vst [vmem:[#allocation2 + $0x2f8] sm:$0xff] %v8832_v52  ;;  %v2179_v53 = vmax.f32 %v2147_v51, 0.0  ;;  %2252 = vst [vmem:[#allocation7 + $0x111] sm:$0xff] %v2180_v43  ;;  %v2047_v3 = vmax.f32 %v1815_v57, %v1879_v58 }
 0x1a4   : > { %v1501_v54 = vpop.f32.mrf.mxu0  ;;  %v1813_v60 = vld [vmem:[#allocation2 + $0x2c0] ss:$2 sm:$0xff]  ;;  %v1877_v61 = vld [vmem:[#allocation2 + $0x2c1] ss:$2 sm:$0xff] }
 0x1a5   : > { %1734 = vst [vmem:[#allocation2 + $0x2e8] sm:$0xff] %v1501_v54  ;;  %2251 = vst [vmem:[#allocation7 + $0x109] sm:$0xff] %v2179_v53  ;;  %v2652_v55 = vpack.c.bf16 %v2180_v43, %v2179_v53  ;;  %v2046_v11 = vmax.f32 %v1813_v60, %v1877_v61 }
 0x1a6   : > { %v8835_v56 = vpop.f32.mrf.mxu0 }
 0x1a7   : > { %1739 = vst [vmem:[#allocation2 + $0x310] sm:$0xff] %v8835_v56  ;;  %3392 = vmatprep.mubr.bf16.mxu1 %v2652_v55 }
 0x1a8   : > { %v1514_v59 = vpop.f32.mrf.mxu0 }
 0x1a9   : > { %1737 = vst [vmem:[#allocation2 + $0x300] sm:$0xff] %v1514_v59 }
 0x1aa   : > { %v1943_v62 = vld [vmem:[#allocation2 + $0x2f0] ss:$2 sm:$0xff]  ;;  %v2007_v1 = vld [vmem:[#allocation2 + $0x2f1] ss:$2 sm:$0xff]  ;;  %v8836_v2 = vpop.f32.mrf.mxu0  ;;  %v2444_v5 = vld [vmem:[#allocation7 + $0x112] sm:$0xff] }
 0x1ab   : > { %v2079_v4 = vmax.f32 %v1943_v62, %v2007_v1  ;;  %1740 = vst [vmem:[#allocation2 + $0x318] sm:$0xff] %v8836_v2  ;;  %v10036_v2 = vpop.f32.mrf.mxu1 }
 0x1ac   : > { %v1941_v6 = vld [vmem:[#allocation2 + $0x2e0] ss:$2 sm:$0xff]  ;;  %v2005_v8 = vld [vmem:[#allocation2 + $0x2e1] ss:$2 sm:$0xff]  ;;  %v1517_v9 = vpop.f32.mrf.mxu0  ;;  %v2285_v15 = vld [vmem:[#allocation7 + $0x108] sm:$0xff] }
 0x1ad   : > { %v2443_v10 = vld [vmem:[#allocation7 + $0x10a] sm:$0xff]  ;;  %v2111_v12 = vmax.f32 %v2047_v3, %v2079_v4  ;;  %v2078_v13 = vmax.f32 %v1941_v6, %v2005_v8  ;;  %1738 = vst [vmem:[#allocation2 + $0x308] sm:$0xff] %v1517_v9 }
 0x1ae   : > { %v10026_v14 = vpack.c.bf16 %v2444_v5, %v2443_v10  ;;  %v2286_v16 = vld [vmem:[#allocation7 + $0x110] sm:$0xff]  ;;  %v8839_v17 = vpop.f32.mrf.mxu0 }
 0x1af   : > { %v2651_v18 = vpack.c.bf16 %v2286_v16, %v2285_v15  ;;  %v2150_v19 = vadd.f32 %v9989_v0, %v2111_v12  ;;  %v2110_v20 = vmax.f32 %v2046_v11, %v2078_v13  ;;  %1743 = vst [vmem:[#allocation2 + $0x330] sm:$0xff] %v8839_v17  ;;  %v10038_v16 = vpop.f32.mrf.mxu1 }
 0x1b0   : > { %3706 = vmatprep.mubr.bf16.mxu0 %v10026_v14  ;;  %v1530_v21 = vpop.f32.mrf.mxu0 }
 0x1b1   : > { %3393 = vmatmul.mubr.bf16.gmra.mxu1 %v2651_v18  ;;  %3707 = vmatmul.mubr.bf16.gmra.mxu0 %v2652_v55  ;;  %1741 = vst [vmem:[#allocation2 + $0x320] sm:$0xff] %v1530_v21  ;;  %v2149_v22 = vadd.f32 %v9989_v0, %v2110_v20  ;;  %v2182_v23 = vmax.f32 %v2150_v19, 0.0 }
 0x1b2   : > { %v8840_v24 = vpop.f32.mrf.mxu0  ;;  %v1819_v29 = vld [vmem:[#allocation2 + $0x310] ss:$2 sm:$0xff]  ;;  %v1883_v30 = vld [vmem:[#allocation2 + $0x311] ss:$2 sm:$0xff] }
 0x1b3   : > { %1744 = vst [vmem:[#allocation2 + $0x338] sm:$0xff] %v8840_v24  ;;  %v2181_v25 = vmax.f32 %v2149_v22, 0.0  ;;  %2254 = vst [vmem:[#allocation7 + $0x129] sm:$0xff] %v2182_v23  ;;  %v2049_v37 = vmax.f32 %v1819_v29, %v1883_v30 }
 0x1b4   : > { %v1533_v26 = vpop.f32.mrf.mxu0  ;;  %v1817_v32 = vld [vmem:[#allocation2 + $0x300] ss:$2 sm:$0xff]  ;;  %v1881_v33 = vld [vmem:[#allocation2 + $0x301] ss:$2 sm:$0xff] }
 0x1b5   : > { %1742 = vst [vmem:[#allocation2 + $0x328] sm:$0xff] %v1533_v26  ;;  %2253 = vst [vmem:[#allocation7 + $0x121] sm:$0xff] %v2181_v25  ;;  %v2661_v27 = vpack.c.bf16 %v2182_v23, %v2181_v25  ;;  %v2048_v42 = vmax.f32 %v1817_v32, %v1881_v33 }
 0x1b6   : > { %v8843_v28 = vpop.f32.mrf.mxu0 }
 0x1b7   : > { %1747 = vst [vmem:[#allocation2 + $0x350] sm:$0xff] %v8843_v28  ;;  %3400 = vmatprep.mubr.bf16.mxu1 %v2661_v27 }
 0x1b8   : > { %v1546_v31 = vpop.f32.mrf.mxu0 }
 0x1b9   : > { %1745 = vst [vmem:[#allocation2 + $0x340] sm:$0xff] %v1546_v31 }
 0x1ba   : > { %v1947_v34 = vld [vmem:[#allocation2 + $0x330] ss:$2 sm:$0xff]  ;;  %v2011_v35 = vld [vmem:[#allocation2 + $0x331] ss:$2 sm:$0xff]  ;;  %v8844_v36 = vpop.f32.mrf.mxu0 }
 0x1bb   : > { %v2081_v7 = vmax.f32 %v1947_v34, %v2011_v35  ;;  %1748 = vst [vmem:[#allocation2 + $0x358] sm:$0xff] %v8844_v36  ;;  %v2446_v38 = vld [vmem:[#allocation7 + $0x12a] sm:$0xff] }
 0x1bc   : > { %v1945_v39 = vld [vmem:[#allocation2 + $0x320] ss:$2 sm:$0xff]  ;;  %v2009_v48 = vld [vmem:[#allocation2 + $0x321] ss:$2 sm:$0xff]  ;;  %v1549_v40 = vpop.f32.mrf.mxu0  ;;  %v2445_v41 = vld [vmem:[#allocation7 + $0x122] sm:$0xff] }
 0x1bd   : > { %v2113_v44 = vmax.f32 %v2049_v37, %v2081_v7  ;;  %v2080_v45 = vmax.f32 %v1945_v39, %v2009_v48  ;;  %1746 = vst [vmem:[#allocation2 + $0x348] sm:$0xff] %v1549_v40  ;;  %v10031_v46 = vpack.c.bf16 %v2446_v38, %v2445_v41  ;;  %v2287_v47 = vld [vmem:[#allocation7 + $0x120] sm:$0xff]  ;;  %v2288_v49 = vld [vmem:[#allocation7 + $0x128] sm:$0xff] }
 0x1be   : > { %v8847_v50 = vpop.f32.mrf.mxu0  ;;  %v2660_v51 = vpack.c.bf16 %v2288_v49, %v2287_v47 }
 0x1bf   : > { %v2152_v43 = vadd.f32 %v9989_v0, %v2113_v44  ;;  %v2112_v52 = vmax.f32 %v2048_v42, %v2080_v45  ;;  %1751 = vst [vmem:[#allocation2 + $0x370] sm:$0xff] %v8847_v50  ;;  %3714 = vmatprep.mubr.bf16.mxu0 %v10031_v46 }
 0x1c0   : > { %v1562_v53 = vpop.f32.mrf.mxu0  ;;  %3401 = vmatmul.mubr.bf16.gmra.mxu1 %v2660_v51  ;;  %3715 = vmatmul.mubr.bf16.gmra.mxu0 %v2661_v27 }
 0x1c1   : > { %1749 = vst [vmem:[#allocation2 + $0x360] sm:$0xff] %v1562_v53  ;;  %v2151_v54 = vadd.f32 %v9989_v0, %v2112_v52  ;;  %v2184_v55 = vmax.f32 %v2152_v43, 0.0 }
 0x1c2   : > { %v8848_v56 = vpop.f32.mrf.mxu0  ;;  %v1823_v61 = vld [vmem:[#allocation2 + $0x350] ss:$2 sm:$0xff]  ;;  %v1887_v62 = vld [vmem:[#allocation2 + $0x351] ss:$2 sm:$0xff] }
 0x1c3   : > { %1752 = vst [vmem:[#allocation2 + $0x378] sm:$0xff] %v8848_v56  ;;  %v2183_v57 = vmax.f32 %v2151_v54, 0.0  ;;  %2256 = vst [vmem:[#allocation7 + $0x141] sm:$0xff] %v2184_v55  ;;  %v2051_v9 = vmax.f32 %v1823_v61, %v1887_v62 }
 0x1c4   : > { %v1565_v58 = vpop.f32.mrf.mxu0  ;;  %v1821_v3 = vld [vmem:[#allocation2 + $0x340] ss:$2 sm:$0xff]  ;;  %v1885_v4 = vld [vmem:[#allocation2 + $0x341] ss:$2 sm:$0xff] }
 0x1c5   : > { %1750 = vst [vmem:[#allocation2 + $0x368] sm:$0xff] %v1565_v58  ;;  %2255 = vst [vmem:[#allocation7 + $0x139] sm:$0xff] %v2183_v57  ;;  %v2670_v59 = vpack.c.bf16 %v2184_v55, %v2183_v57  ;;  %v2050_v18 = vmax.f32 %v1821_v3, %v1885_v4 }
 0x1c6   : > { %v8851_v60 = vpop.f32.mrf.mxu0 }
 0x1c7   : > { %1755 = vst [vmem:[#allocation2 + $0x390] sm:$0xff] %v8851_v60  ;;  %3408 = vmatprep.mubr.bf16.mxu1 %v2670_v59 }
 0x1c8   : > { %v1578_v1 = vpop.f32.mrf.mxu0 }
 0x1c9   : > { %1753 = vst [vmem:[#allocation2 + $0x380] sm:$0xff] %v1578_v1 }
 0x1ca   : > { %v1951_v5 = vld [vmem:[#allocation2 + $0x370] ss:$2 sm:$0xff]  ;;  %v2015_v6 = vld [vmem:[#allocation2 + $0x371] ss:$2 sm:$0xff]  ;;  %v8852_v8 = vpop.f32.mrf.mxu0 }
 0x1cb   : > { %v2083_v10 = vmax.f32 %v1951_v5, %v2015_v6  ;;  %1756 = vst [vmem:[#allocation2 + $0x398] sm:$0xff] %v8852_v8  ;;  %v2448_v11 = vld [vmem:[#allocation7 + $0x142] sm:$0xff] }
 0x1cc   : > { %v1949_v12 = vld [vmem:[#allocation2 + $0x360] ss:$2 sm:$0xff]  ;;  %v2013_v13 = vld [vmem:[#allocation2 + $0x361] ss:$2 sm:$0xff]  ;;  %v1581_v15 = vpop.f32.mrf.mxu0  ;;  %v2290_v23 = vld [vmem:[#allocation7 + $0x140] sm:$0xff] }
 0x1cd   : > { %v2447_v17 = vld [vmem:[#allocation7 + $0x13a] sm:$0xff]  ;;  %v2115_v19 = vmax.f32 %v2051_v9, %v2083_v10  ;;  %v2082_v20 = vmax.f32 %v1949_v12, %v2013_v13  ;;  %1754 = vst [vmem:[#allocation2 + $0x388] sm:$0xff] %v1581_v15 }
 0x1ce   : > { %v10040_v21 = vpack.c.bf16 %v2448_v11, %v2447_v17  ;;  %v2289_v22 = vld [vmem:[#allocation7 + $0x138] sm:$0xff]  ;;  %v8855_v24 = vpop.f32.mrf.mxu0 }
 0x1cf   : > { %v10042_v25 = vpack.c.bf16 %v2290_v23, %v2289_v22  ;;  %v2154_v26 = vadd.f32 %v9989_v0, %v2115_v19  ;;  %v2114_v27 = vmax.f32 %v2050_v18, %v2082_v20  ;;  %1759 = vst [vmem:[#allocation2 + $0x3b0] sm:$0xff] %v8855_v24 }
 0x1d0   : > { %3722 = vmatprep.mubr.bf16.mxu0 %v10040_v21  ;;  %v1594_v28 = vpop.f32.mrf.mxu0  ;;  %v7883_v29 = vpop.f32.mrf.mxu1 }
 0x1d1   : > { %3409 = vmatmul.mubr.bf16.gmra.mxu1 %v10042_v25  ;;  %3723 = vmatmul.mubr.bf16.gmra.mxu0 %v2670_v59  ;;  %1757 = vst [vmem:[#allocation2 + $0x3a0] sm:$0xff] %v1594_v28  ;;  %v2153_v30 = vadd.f32 %v9989_v0, %v2114_v27  ;;  %v2186_v31 = vmax.f32 %v2154_v26, 0.0 }
 0x1d2   : > { %v8856_v32 = vpop.f32.mrf.mxu0  ;;  %v7884_v33 = vpop.f32.mrf.mxu1  ;;  %v1827_v38 = vld [vmem:[#allocation2 + $0x390] ss:$2 sm:$0xff]  ;;  %v1891_v39 = vld [vmem:[#allocation2 + $0x391] ss:$2 sm:$0xff] }
 0x1d3   : > { %1760 = vst [vmem:[#allocation2 + $0x3b8] sm:$0xff] %v8856_v32  ;;  %v10048_v34 = vadd.f32 %v7884_v33, %v7883_v29  ;;  %v2185_v35 = vmax.f32 %v2153_v30, 0.0  ;;  %2258 = vst [vmem:[#allocation7 + $0x159] sm:$0xff] %v2186_v31  ;;  %v2053_v49 = vmax.f32 %v1827_v38, %v1891_v39 }
 0x1d4   : > { %v1597_v36 = vpop.f32.mrf.mxu0  ;;  %v1825_v40 = vld [vmem:[#allocation2 + $0x380] ss:$2 sm:$0xff]  ;;  %v1889_v41 = vld [vmem:[#allocation2 + $0x381] ss:$2 sm:$0xff]  ;;  %v10050_v45 = vpop.f32.mrf.mxu1 }
 0x1d5   : > { %1758 = vst [vmem:[#allocation2 + $0x3a8] sm:$0xff] %v1597_v36  ;;  %2257 = vst [vmem:[#allocation7 + $0x151] sm:$0xff] %v2185_v35  ;;  %v2679_v37 = vpack.c.bf16 %v2186_v31, %v2185_v35  ;;  %v2052_v55 = vmax.f32 %v1825_v40, %v1889_v41  ;;  %v2359_v36 = vld [vmem:[#allocation7 + $0x18] sm:$0xff] }
 0x1d6   : > { %v8859_v7 = vpop.f32.mrf.mxu0  ;;  %v10054_v61 = vpop.f32.mrf.mxu1 }
 0x1d7   : > { %1763 = vst [vmem:[#allocation2 + $0x3d0] sm:$0xff] %v8859_v7  ;;  %3416 = vmatprep.mubr.bf16.mxu1 %v2679_v37 }
 0x1d8   : > { %v1610_v48 = vpop.f32.mrf.mxu0 }
 0x1d9   : > { %1761 = vst [vmem:[#allocation2 + $0x3c0] sm:$0xff] %v1610_v48 }
 0x1da   : > { %v1955_v42 = vld [vmem:[#allocation2 + $0x3b0] ss:$2 sm:$0xff]  ;;  %v2019_v44 = vld [vmem:[#allocation2 + $0x3b1] ss:$2 sm:$0xff]  ;;  %v8860_v47 = vpop.f32.mrf.mxu0 }
 0x1db   : > { %v2085_v50 = vmax.f32 %v1955_v42, %v2019_v44  ;;  %1764 = vst [vmem:[#allocation2 + $0x3d8] sm:$0xff] %v8860_v47  ;;  %v2450_v51 = vld [vmem:[#allocation7 + $0x15a] sm:$0xff] }
 0x1dc   : > { %v1953_v43 = vld [vmem:[#allocation2 + $0x3a0] ss:$2 sm:$0xff]  ;;  %v2017_v52 = vld [vmem:[#allocation2 + $0x3a1] ss:$2 sm:$0xff]  ;;  %v1613_v53 = vpop.f32.mrf.mxu0 }
 0x1dd   : > { %v2449_v54 = vld [vmem:[#allocation7 + $0x152] sm:$0xff]  ;;  %v2117_v56 = vmax.f32 %v2053_v49, %v2085_v50  ;;  %v2084_v57 = vmax.f32 %v1953_v43, %v2017_v52  ;;  %1762 = vst [vmem:[#allocation2 + $0x3c8] sm:$0xff] %v1613_v53 }
 0x1de   : > { %v10052_v58 = vpack.c.bf16 %v2450_v51, %v2449_v54  ;;  %v2291_v59 = vld [vmem:[#allocation7 + $0x150] sm:$0xff]  ;;  %v2292_v60 = vld [vmem:[#allocation7 + $0x158] sm:$0xff]  ;;  %v8863_v62 = vpop.f32.mrf.mxu0 }
 0x1df   : > { %v10056_v1 = vpack.c.bf16 %v2292_v60, %v2291_v59  ;;  %v2156_v3 = vadd.f32 %v9989_v0, %v2117_v56  ;;  %v2116_v4 = vmax.f32 %v2052_v55, %v2084_v57  ;;  %1767 = vst [vmem:[#allocation2 + $0x3f0] sm:$0xff] %v8863_v62  ;;  %v2327_v57 = vld [vmem:[#allocation7 + $0x2] sm:$0xff]  ;;  %v2328_v59 = vld [vmem:[#allocation7 + $0xa] sm:$0xff] }
 0x1e0   : > { %3730 = vmatprep.mubr.bf16.mxu0 %v10052_v58  ;;  %v1626_v5 = vpop.f32.mrf.mxu0  ;;  %v7889_v6 = vpop.f32.mrf.mxu1 }
 0x1e1   : > { %3417 = vmatmul.mubr.bf16.gmra.mxu1 %v10056_v1  ;;  %3731 = vmatmul.mubr.bf16.gmra.mxu0 %v2679_v37  ;;  %1765 = vst [vmem:[#allocation2 + $0x3e0] sm:$0xff] %v1626_v5  ;;  %v2155_v8 = vadd.f32 %v9989_v0, %v2116_v4  ;;  %v2188_v9 = vmax.f32 %v2156_v3, 0.0  ;;  %v2360_v37 = vld [vmem:[#allocation7 + $0x20] sm:$0xff] }
 0x1e2   : > { %v8864_v10 = vpop.f32.mrf.mxu0  ;;  %v7890_v11 = vpop.f32.mrf.mxu1  ;;  %v1831_v18 = vld [vmem:[#allocation2 + $0x3d0] ss:$2 sm:$0xff]  ;;  %v1895_v19 = vld [vmem:[#allocation2 + $0x3d1] ss:$2 sm:$0xff]  ;;  %v2555_v53 = vpack.c.bf16 %v2360_v37, %v2359_v36  ;;  %v2364_v36 = vld [vmem:[#allocation7 + $0x50] sm:$0xff] }
 0x1e3   : > { %1768 = vst [vmem:[#allocation2 + $0x3f8] sm:$0xff] %v8864_v10  ;;  %v10062_v12 = vadd.f32 %v7890_v11, %v7889_v6  ;;  %v2187_v13 = vmax.f32 %v2155_v8, 0.0  ;;  %2260 = vst [vmem:[#allocation7 + $0x171] sm:$0xff] %v2188_v9  ;;  %v2055_v26 = vmax.f32 %v1831_v18, %v1895_v19  ;;  %v2361_v10 = vld [vmem:[#allocation7 + $0x30] sm:$0xff]  ;;  %v2362_v11 = vld [vmem:[#allocation7 + $0x38] sm:$0xff] }
 0x1e4   : > { %v1629_v15 = vpop.f32.mrf.mxu0  ;;  %v1829_v22 = vld [vmem:[#allocation2 + $0x3c0] ss:$2 sm:$0xff]  ;;  %v1893_v23 = vld [vmem:[#allocation2 + $0x3c1] ss:$2 sm:$0xff]  ;;  %v10066_v30 = vpop.f32.mrf.mxu1 }
 0x1e5   : > { %1766 = vst [vmem:[#allocation2 + $0x3e8] sm:$0xff] %v1629_v15  ;;  %2259 = vst [vmem:[#allocation7 + $0x169] sm:$0xff] %v2187_v13  ;;  %v2688_v17 = vpack.c.bf16 %v2188_v9, %v2187_v13  ;;  %v2054_v32 = vmax.f32 %v1829_v22, %v1893_v23  ;;  %v2554_v9 = vpack.c.bf16 %v2328_v59, %v2327_v57  ;;  %v9157_v13 = vld [vmem:[%s11504_s2 + $0x1b8] sm:$0xff]   ;;  %v9167_v57 = vld [vmem:[%s11504_s2 + $0x1a0] sm:$0xff]  }
 0x1e6   : > { %v8101_v20 = vpop.f32.mrf.mxu0  ;;  %v10074_v49 = vpop.f32.mrf.mxu1 }
 0x1e7   : > { %3424 = vmatprep.mubr.bf16.mxu1 %v2688_v17 }
 0x1e8   : > { %v8102_v24 = vpop.f32.mrf.mxu0 }
 0x1e9   : > { %v10064_v27 = vadd.f32 %v8102_v24, %v8101_v20  ;;  %v9163_v20 = vld [vmem:[%s11504_s2 + $0x1b0] sm:$0xff]  }
 0x1ea   : > { %v1959_v28 = vld [vmem:[#allocation2 + $0x3f0] ss:$2 sm:$0xff]  ;;  %v2023_v29 = vld [vmem:[#allocation2 + $0x3f1] ss:$2 sm:$0xff]  ;;  %v10068_v31 = vpop.f32.mrf.mxu0  ;;  %v2452_v35 = vld [vmem:[#allocation7 + $0x172] sm:$0xff] }
 0x1eb   : > { %v2087_v33 = vmax.f32 %v1959_v28, %v2023_v29  ;;  %v2329_v28 = vld [vmem:[#allocation7 + $0x1a] sm:$0xff]  ;;  %v2520_v29 = vld [vmem:[#allocation7 + $0x32] sm:$0xff] }
 0x1ec   : > { %v1957_v7 = vld [vmem:[#allocation2 + $0x3e0] ss:$2 sm:$0xff]  ;;  %v2021_v38 = vld [vmem:[#allocation2 + $0x3e1] ss:$2 sm:$0xff]  ;;  %v10070_v39 = vpop.f32.mrf.mxu0  ;;  %v2293_v44 = vld [vmem:[#allocation7 + $0x168] sm:$0xff] }
 0x1ed   : > { %v2451_v48 = vld [vmem:[#allocation7 + $0x16a] sm:$0xff]  ;;  %v2119_v40 = vmax.f32 %v2055_v26, %v2087_v33  ;;  %v2086_v41 = vmax.f32 %v1957_v7, %v2021_v38  ;;  %v9164_v26 = vld [vmem:[%s11504_s2 + $0x1e8] sm:$0xff]   ;;  %v2330_v7 = vld [vmem:[#allocation7 + $0x22] sm:$0xff] }
 0x1ee   : > { %v10072_v42 = vpack.c.bf16 %v2452_v35, %v2451_v48  ;;  %v2294_v47 = vld [vmem:[#allocation7 + $0x170] sm:$0xff]  ;;  %v8107_v50 = vpop.f32.mrf.mxu0  ;;  %v2363_v35 = vld [vmem:[#allocation7 + $0x48] sm:$0xff] }
 0x1ef   : > { %v10076_v51 = vpack.c.bf16 %v2294_v47, %v2293_v44  ;;  %v2158_v43 = vadd.f32 %v9989_v0, %v2119_v40  ;;  %v2118_v52 = vmax.f32 %v2054_v32, %v2086_v41  ;;  %v2563_v40 = vpack.c.bf16 %v2330_v7, %v2329_v28  ;;  %v2521_v41 = vld [vmem:[#allocation7 + $0x3a] sm:$0xff]  ;;  %v2528_v7 = vld [vmem:[#allocation7 + $0x92] sm:$0xff] }
 0x1f0   : > { %3738 = vmatprep.mubr.bf16.mxu0 %v10072_v42  ;;  %v8108_v55 = vpop.f32.mrf.mxu0  ;;  %v9165_v44 = vld [vmem:[%s11504_s2 + $0x1a8] sm:$0xff]   ;;  %v10121_v47 = vpack.c.bf16 %v2364_v36, %v2363_v35  ;;  %v2368_v36 = vld [vmem:[#allocation7 + $0x80] sm:$0xff] }
 0x1f1   : > { %v7895_v54 = vpop.f32.mrf.mxu1  ;;  %3425 = vmatmul.mubr.bf16.gmra.mxu1 %v10076_v51  ;;  %3739 = vmatmul.mubr.bf16.gmra.mxu0 %v2688_v17  ;;  %v10081_v56 = vadd.f32 %v8108_v55, %v8107_v50  ;;  %v2157_v60 = vadd.f32 %v9989_v0, %v2118_v52  ;;  %v2190_v62 = vmax.f32 %v2158_v43, 0.0  ;;  %v9162_v0 = vld [vmem:[%s11504_s2 + $0x1f0] sm:$0xff]   ;;  %v10096_v17 = vpack.c.bf16 %v2362_v11, %v2361_v10  ;;  %v9166_v43 = vld [vmem:[%s11504_s2 + $0x1e0] sm:$0xff]   ;;  %v2367_v35 = vld [vmem:[#allocation7 + $0x78] sm:$0xff] }
 0x1f2   : > { %3465 = vmatprep.mubr.bf16.mxu1 %v2555_v53  ;;  %v10084_v4 = vpop.f32.mrf.mxu0  ;;  %v2560_v50 = vpack.c.bf16 %v2521_v41, %v2520_v29  ;;  %v2524_v10 = vld [vmem:[#allocation7 + $0x62] sm:$0xff]  ;;  %v2523_v11 = vld [vmem:[#allocation7 + $0x52] sm:$0xff] }
 0x1f3   : > { %v7896_v3 = vpop.f32.mrf.mxu1  ;;  %v2189_v6 = vmax.f32 %v2157_v60, 0.0  ;;  %2262 = vst [vmem:[#allocation7 + $0x189] sm:$0xff] %v2190_v62  ;;  %v9171_v29 = vld [vmem:[%s11504_s2 + $0x190] sm:$0xff]  }
 0x1f4   : > { %v10086_v5 = vadd.f32 %v7896_v3, %v7895_v54  ;;  %v10088_v8 = vpop.f32.mrf.mxu0  ;;  %v9168_v3 = vld [vmem:[%s11504_s2 + $0x1d8] sm:$0xff]  }
 0x1f5   : > { %2261 = vst [vmem:[#allocation7 + $0x181] sm:$0xff] %v2189_v6  ;;  %v10104_v22 = vpop.f32.mrf.mxu1  ;;  %v2691_v33 = vpack.c.bf16 %v2190_v62, %v2189_v6  ;;  %v2522_v62 = vld [vmem:[#allocation7 + $0x4a] sm:$0xff]  ;;  %v2365_v6 = vld [vmem:[#allocation7 + $0x60] sm:$0xff] }
 0x1f6   : > { %v8113_v15 = vpop.f32.mrf.mxu0 }
 0x1f7   : > { %v10113_v38 = vpop.f32.mrf.mxu1 }
 0x1f8   : > { %v8114_v18 = vpop.f32.mrf.mxu0 }
 0x1f9   : > { %3466 = vmatmul.mubr.bf16.vlgmr.msra.gmra.mxu1 %v2554_v9  ;;  %v10098_v19 = vadd.f32 %v8114_v18, %v8113_v15  ;;  %v2366_v9 = vld [vmem:[#allocation7 + $0x68] sm:$0xff] }
 0x1fa   : > { %8198 = vmatpush3.bf16.msra.mxu1 %v9157_v13  ;;  %3473 = vmatprep.mubr.bf16.mxu1 %v10096_v17  ;;  %v10106_v23 = vpop.f32.mrf.mxu0  ;;  %v2454_v24 = vld [vmem:[#allocation7 + $0x18a] sm:$0xff]  ;;  %v2569_v13 = vpack.c.bf16 %v2523_v11, %v2522_v62  ;;  %v10140_v18 = vpack.c.bf16 %v2366_v9, %v2365_v6 }
 0x1fb   : > { %8199 = vmatprep.subr.bf16.mxu1 %v9162_v0  ;;  %v2525_v15 = vld [vmem:[#allocation7 + $0x6a] sm:$0xff] }
 0x1fc   : > { %v2453_v32 = vld [vmem:[#allocation7 + $0x182] sm:$0xff]  ;;  %v10115_v48 = vpop.f32.mrf.mxu0  ;;  %v9175_v9 = vld [vmem:[%s11504_s2 + $0x180] sm:$0xff]  }
 0x1fd   : > { %v10111_v37 = vpack.c.bf16 %v2454_v24, %v2453_v32  ;;  %v9169_v0 = vld [vmem:[%s11504_s2 + $0x198] sm:$0xff]   ;;  %v9170_v24 = vld [vmem:[%s11504_s2 + $0x1d0] sm:$0xff]  }
 0x1fe   : > { %8200 = vmatpush3.bf16.msra.mxu1 %v9163_v20  ;;  %v2578_v20 = vpack.c.bf16 %v2525_v15, %v2524_v10  ;;  %v2526_v32 = vld [vmem:[#allocation7 + $0x7a] sm:$0xff]  ;;  %v2530_v15 = vld [vmem:[#allocation7 + $0xaa] sm:$0xff] }
 0x1ff   : > { %8201 = vmatprep.subr.bf16.mxu1 %v9164_v26  ;;  %3746 = vmatprep.mubr.bf16.mxu0 %v10111_v37 }
 0x200   : > { %v7901_v52 = vpop.f32.mrf.mxu1  ;;  %v8119_v53 = vpop.f32.mrf.mxu0  ;;  %3747 = vmatmul.mubr.bf16.gmra.mxu0 %v2691_v33  ;;  %v9172_v33 = vld [vmem:[%s11504_s2 + $0x1c8] sm:$0xff]  }
 0x201   : > { %3474 = vmatmul.mubr.bf16.gmra.mxu1 %v2563_v40  ;;  %8881 = vmatprep.mubr.bf16.mxu0 %v2560_v50  ;;  %v2527_v40 = vld [vmem:[#allocation7 + $0x82] sm:$0xff] }
 0x202   : > { %3481 = vmatprep.mubr.bf16.mxu1 %v10121_v47  ;;  %v7902_v54 = vpop.f32.mrf.mxu1  ;;  %v8120_v55 = vpop.f32.mrf.mxu0  ;;  %8202 = vmatpush3.bf16.msra.mxu1 %v9165_v44 }
 0x203   : > { %v10130_v59 = vadd.f32 %v7902_v54, %v7901_v52  ;;  %v10132_v60 = vadd.f32 %v8120_v55, %v8119_v53  ;;  %8203 = vmatprep.subr.bf16.mxu1 %v9166_v43  ;;  %v2529_v43 = vld [vmem:[#allocation7 + $0x9a] sm:$0xff]  ;;  %v10163_v53 = vpack.c.bf16 %v2368_v36, %v2367_v35  ;;  %v9174_v55 = vld [vmem:[%s11504_s2 + $0x1c0] sm:$0xff]  }
 0x204   : > { %v10146_v26 = vpop.f32.mrf.mxu1  ;;  %v10148_v28 = vpop.f32.mrf.mxu0  ;;  %v9173_v52 = vld [vmem:[%s11504_s2 + $0x188] sm:$0xff]   ;;  %v2596_v54 = vpack.c.bf16 %v2529_v43, %v2528_v7 }
 0x205   : > { %v2534_v43 = vld [vmem:[#allocation7 + $0xda] sm:$0xff] }
 0x206   : > { %8204 = vmatpush3.bf16.msra.mxu1 %v9167_v57  ;;  %v10156_v41 = vpop.f32.mrf.mxu1  ;;  %v10158_v44 = vpop.f32.mrf.mxu0 }
 0x207   : > { %8205 = vmatprep.subr.bf16.mxu1 %v9168_v3 }
 0x208   : > { %8882 = vmatmul.mubr.bf16.vlgmr.msra.gmra.mxu0 %v2569_v13 }
 0x209   : > { %3482 = vmatmul.mubr.bf16.gmra.mxu1 %v2560_v50  ;;  %8885 = vmatprep.mubr.bf16.mxu0 %v2578_v20  ;;  %v2587_v50 = vpack.c.bf16 %v2527_v40, %v2526_v32 }
 0x20a   : > { %3489 = vmatprep.mubr.bf16.mxu1 %v10140_v18  ;;  %8206 = vmatpush3.bf16.msra.mxu1 %v9169_v0  ;;  %v2369_v0 = vld [vmem:[#allocation7 + $0x90] sm:$0xff] }
 0x20b   : > { %8207 = vmatprep.subr.bf16.mxu1 %v9170_v24  ;;  %v2532_v24 = vld [vmem:[#allocation7 + $0xc2] sm:$0xff] }
 0x20e   : > { %8208 = vmatpush3.bf16.msra.mxu1 %v9171_v29  ;;  %v2531_v29 = vld [vmem:[#allocation7 + $0xb2] sm:$0xff] }
 0x20f   : > { %8209 = vmatprep.subr.bf16.mxu1 %v9172_v33  ;;  %v2605_v32 = vpack.c.bf16 %v2531_v29, %v2530_v15  ;;  %v2533_v33 = vld [vmem:[#allocation7 + $0xca] sm:$0xff]  ;;  %v2537_v15 = vld [vmem:[#allocation7 + $0xfa] sm:$0xff] }
 0x210   : > { %8886 = vmatmul.mubr.bf16.gmra.mxu0 %v2587_v50  ;;  %v2614_v36 = vpack.c.bf16 %v2533_v33, %v2532_v24 }
 0x211   : > { %v7907_v57 = vpop.f32.mrf.mxu1  ;;  %3490 = vmatmul.mubr.bf16.gmra.mxu1 %v2569_v13  ;;  %v8125_v62 = vpop.f32.mrf.mxu0  ;;  %8889 = vmatprep.mubr.bf16.mxu0 %v2596_v54  ;;  %v2370_v13 = vld [vmem:[#allocation7 + $0x98] sm:$0xff] }
 0x212   : > { %3497 = vmatprep.mubr.bf16.mxu1 %v10163_v53  ;;  %8210 = vmatpush3.bf16.msra.mxu1 %v9173_v52  ;;  %v10176_v35 = vpack.c.bf16 %v2370_v13, %v2369_v0  ;;  %v2371_v52 = vld [vmem:[#allocation7 + $0xa8] sm:$0xff] }
 0x213   : > { %v7908_v3 = vpop.f32.mrf.mxu1  ;;  %v8126_v6 = vpop.f32.mrf.mxu0  ;;  %8211 = vmatprep.subr.bf16.mxu1 %v9174_v55  ;;  %v2372_v55 = vld [vmem:[#allocation7 + $0xb0] sm:$0xff] }
 0x214   : > { %v10172_v10 = vadd.f32 %v7908_v3, %v7907_v57  ;;  %v10174_v11 = vadd.f32 %v8126_v6, %v8125_v62  ;;  %v2536_v57 = vld [vmem:[#allocation7 + $0xf2] sm:$0xff]  ;;  %v2535_v62 = vld [vmem:[#allocation7 + $0xe2] sm:$0xff] }
 0x215   : > { %v10179_v7 = vpop.f32.mrf.mxu1  ;;  %v10181_v40 = vpop.f32.mrf.mxu0  ;;  %v2632_v0 = vpack.c.bf16 %v2537_v15, %v2536_v57  ;;  %v2376_v57 = vld [vmem:[#allocation7 + $0xe0] sm:$0xff] }
 0x216   : > { %11525 = vst [vmem:[#allocation15_spill] sm:$0xff] %v10172_v10  ;;  %8212 = vmatpush3.bf16.msra.mxu1 %v9175_v9  ;;  %11526 = vst [vmem:[#allocation16_spill] sm:$0xff] %v10179_v7  ;;  %v2623_v9 = vpack.c.bf16 %v2535_v62, %v2534_v43 }
 0x217   : > { %v10183_v3 = vpop.f32.mrf.mxu1  ;;  %v10185_v6 = vpop.f32.mrf.mxu0 }
 0x218   : > { %8890 = vmatmul.mubr.bf16.gmra.mxu0 %v2605_v32  ;;  %11527 = vst [vmem:[#allocation17_spill] sm:$0xff] %v10183_v3  ;;  %11528 = vst [vmem:[#allocation18_spill] sm:$0xff] %v10185_v6  ;;  %v2373_v3 = vld [vmem:[#allocation7 + $0xc0] sm:$0xff]  ;;  %v2374_v6 = vld [vmem:[#allocation7 + $0xc8] sm:$0xff] }
 0x219   : > { %3498 = vmatmul.mubr.bf16.gmra.mxu1 %v2578_v20  ;;  %8893 = vmatprep.mubr.bf16.mxu0 %v2614_v36  ;;  %v10187_v20 = vpack.c.bf16 %v2372_v55, %v2371_v52  ;;  %v10194_v43 = vpack.c.bf16 %v2374_v6, %v2373_v3  ;;  %v2375_v55 = vld [vmem:[#allocation7 + $0xd8] sm:$0xff] }
 0x21a   : > { %3505 = vmatprep.mubr.bf16.mxu1 %v10176_v35 }
 0x220   : > { %8894 = vmatmul.mubr.bf16.gmra.mxu0 %v2623_v9 }
 0x221   : > { %v7913_v13 = vpop.f32.mrf.mxu1  ;;  %3506 = vmatmul.mubr.bf16.gmra.mxu1 %v2587_v50  ;;  %v8131_v24 = vpop.f32.mrf.mxu0  ;;  %8897 = vmatprep.mubr.bf16.mxu0 %v2632_v0 }
 0x222   : > { %3513 = vmatprep.mubr.bf16.mxu1 %v10187_v20 }
 0x223   : > { %v7914_v29 = vpop.f32.mrf.mxu1  ;;  %v8132_v33 = vpop.f32.mrf.mxu0 }
 0x224   : > { %v10190_v7 = vadd.f32 %v7914_v29, %v7913_v13  ;;  %v10192_v10 = vadd.f32 %v8132_v33, %v8131_v24  ;;  %v10207_v13 = vpack.c.bf16 %v2376_v57, %v2375_v55  ;;  %v2377_v29 = vld [vmem:[#allocation7 + $0xf0] sm:$0xff]  ;;  %v2378_v33 = vld [vmem:[#allocation7 + $0xf8] sm:$0xff]  ;;  %v2379_v57 = vld [vmem:[#allocation7 + $0x108] sm:$0xff] }
 0x225   : > { %v10199_v50 = vpop.f32.mrf.mxu1  ;;  %v10201_v52 = vpop.f32.mrf.mxu0 }
 0x226   : > { %11529 = vst [vmem:[#allocation19_spill] sm:$0xff] %v10190_v7  ;;  %11530 = vst [vmem:[#allocation20_spill] sm:$0xff] %v10199_v50 }
 0x227   : > { %v10203_v62 = vpop.f32.mrf.mxu1  ;;  %v10205_v15 = vpop.f32.mrf.mxu0 }
 0x228   : > { %8898 = vmatmul.mubr.bf16.gmra.mxu0 %v10026_v14  ;;  %11531 = vst [vmem:[#allocation21_spill] sm:$0xff] %v10203_v62  ;;  %v10216_v62 = vpack.c.bf16 %v2378_v33, %v2377_v29 }
 0x229   : > { %3514 = vmatmul.mubr.bf16.gmra.mxu1 %v2596_v54  ;;  %8901 = vmatprep.mubr.bf16.mxu0 %v10031_v46 }
 0x22a   : > { %3521 = vmatprep.mubr.bf16.mxu1 %v10194_v43 }
 0x230   : > { %8902 = vmatmul.mubr.bf16.gmra.mxu0 %v10040_v21 }
 0x231   : > { %v7919_v3 = vpop.f32.mrf.mxu1  ;;  %3522 = vmatmul.mubr.bf16.gmra.mxu1 %v2605_v32  ;;  %v8137_v54 = vpop.f32.mrf.mxu0  ;;  %8905 = vmatprep.mubr.bf16.mxu0 %v10052_v58 }
 0x232   : > { %3529 = vmatprep.mubr.bf16.mxu1 %v10207_v13 }
 0x233   : > { %v7920_v14 = vpop.f32.mrf.mxu1  ;;  %v8138_v46 = vpop.f32.mrf.mxu0 }
 0x234   : > { %v10212_v6 = vadd.f32 %v7920_v14, %v7919_v3  ;;  %v10214_v24 = vadd.f32 %v8138_v46, %v8137_v54  ;;  %v2380_v3 = vld [vmem:[#allocation7 + $0x110] sm:$0xff] }
 0x235   : > { %v10221_v32 = vpop.f32.mrf.mxu1  ;;  %v10223_v55 = vpop.f32.mrf.mxu0  ;;  %v10229_v46 = vpack.c.bf16 %v2380_v3, %v2379_v57 }
 0x236   : > { %11532 = vst [vmem:[#allocation22_spill] sm:$0xff] %v10212_v6  ;;  %11533 = vst [vmem:[#allocation23_spill] sm:$0xff] %v10214_v24  ;;  %v2382_v24 = vld [vmem:[#allocation7 + $0x128] sm:$0xff] }
 0x237   : > { %11534 = vst [vmem:[#allocation24_spill] sm:$0xff] %v10221_v32  ;;  %11535 = vst [vmem:[#allocation25_spill] sm:$0xff] %v10223_v55  ;;  %v10225_v14 = vpop.f32.mrf.mxu1  ;;  %v10227_v54 = vpop.f32.mrf.mxu0  ;;  %v2381_v55 = vld [vmem:[#allocation7 + $0x120] sm:$0xff] }
 0x238   : > { %8906 = vmatmul.mubr.bf16.gmra.mxu0 %v10072_v42  ;;  %11536 = vst [vmem:[#allocation26_spill] sm:$0xff] %v10225_v14  ;;  %11537 = vst [vmem:[#allocation27_spill] sm:$0xff] %v10227_v54  ;;  %v10236_v50 = vpack.c.bf16 %v2382_v24, %v2381_v55  ;;  %v2350_v14 = vld [vmem:[#allocation7 + $0x112] sm:$0xff] }
 0x239   : > { %3530 = vmatmul.mubr.bf16.gmra.mxu1 %v2614_v36  ;;  %8909 = vmatprep.mubr.bf16.mxu0 %v10111_v37 }
 0x23a   : > { %3537 = vmatprep.mubr.bf16.mxu1 %v10216_v62 }
 0x240   : > { %v7925_v29 = vpop.f32.mrf.mxu1  ;;  %v8143_v36 = vpop.f32.mrf.mxu0 }
 0x241   : > { %3538 = vmatmul.mubr.bf16.gmra.mxu1 %v2623_v9  ;;  %v2349_v9 = vld [vmem:[#allocation7 + $0x10a] sm:$0xff] }
 0x242   : > { %3545 = vmatprep.mubr.bf16.mxu1 %v10229_v46  ;;  %v7926_v33 = vpop.f32.mrf.mxu1  ;;  %v8144_v6 = vpop.f32.mrf.mxu0 }
 0x243   : > { %v10232_v37 = vadd.f32 %v7926_v33, %v7925_v29  ;;  %v10234_v32 = vadd.f32 %v8144_v6, %v8143_v36  ;;  %v2653_v29 = vpack.c.bf16 %v2350_v14, %v2349_v9 }
 0x244   : > { %v10239_v57 = vpop.f32.mrf.mxu1  ;;  %v10241_v3 = vpop.f32.mrf.mxu0 }
 0x245   : > { %11538 = vst [vmem:[#allocation28_spill] sm:$0xff] %v10232_v37  ;;  %11539 = vst [vmem:[#allocation29_spill] sm:$0xff] %v10239_v57  ;;  %v2351_v57 = vld [vmem:[#allocation7 + $0x122] sm:$0xff]  ;;  %v2352_v37 = vld [vmem:[#allocation7 + $0x12a] sm:$0xff] }
 0x246   : > { %11540 = vst [vmem:[#allocation30_spill] sm:$0xff] %v10241_v3  ;;  %v10243_v54 = vpop.f32.mrf.mxu1  ;;  %v10245_v7 = vpop.f32.mrf.mxu0  ;;  %v2662_v3 = vpack.c.bf16 %v2352_v37, %v2351_v57 }
 0x247   : > { %11541 = vst [vmem:[#allocation31_spill] sm:$0xff] %v10243_v54 }
 0x249   : > { %3546 = vmatmul.mubr.bf16.gmra.mxu1 %v2632_v0 }
 0x24a   : > { %3553 = vmatprep.mubr.bf16.mxu1 %v10236_v50 }
 0x251   : > { %v7931_v6 = vpop.f32.mrf.mxu1  ;;  %3554 = vmatmul.mubr.bf16.gmra.mxu1 %v2653_v29  ;;  %v8149_v36 = vpop.f32.mrf.mxu0 }
 0x252   : > { %3561 = vmatprep.mubr.bf16.mxu1 %v10042_v25 }
 0x253   : > { %v7932_v24 = vpop.f32.mrf.mxu1  ;;  %v8150_v0 = vpop.f32.mrf.mxu0 }
 0x254   : > { %v10248_v55 = vadd.f32 %v7932_v24, %v7931_v6  ;;  %v10250_v33 = vadd.f32 %v8150_v0, %v8149_v36  ;;  %v2390_v0 = vld [vmem:[#allocation7 + $0x188] sm:$0xff] }
 0x255   : > { %v10253_v54 = vpop.f32.mrf.mxu1  ;;  %v10255_v14 = vpop.f32.mrf.mxu0 }
 0x256   : > { %11542 = vst [vmem:[#allocation32_spill] sm:$0xff] %v10248_v55  ;;  %11543 = vst [vmem:[#allocation33_spill] sm:$0xff] %v10250_v33 }
 0x257   : > { %11544 = vst [vmem:[#allocation34_spill] sm:$0xff] %v10253_v54  ;;  %11545 = vst [vmem:[#allocation35_spill] sm:$0xff] %v10255_v14  ;;  %v10257_v9 = vpop.f32.mrf.mxu1  ;;  %v10259_v29 = vpop.f32.mrf.mxu0  ;;  %v2490_v14 = vld [vmem:[#allocation7 + $0x49] sm:$0xff] }
 0x258   : > { %11546 = vst [vmem:[#allocation36_spill] sm:$0xff] %v10257_v9  ;;  %11547 = vst [vmem:[#allocation37_spill] sm:$0xff] %v10259_v29  ;;  %v2551_v29 = vld [vmem:[#allocation7 + $0x1a2] sm:$0xff] }
 0x259   : > { %3562 = vmatmul.mubr.bf16.gmra.mxu1 %v2662_v3  ;;  %v2389_v3 = vld [vmem:[#allocation7 + $0x180] sm:$0xff] }
 0x25a   : > { %3569 = vmatprep.mubr.bf16.mxu1 %v10056_v1  ;;  %v10269_v9 = vpack.c.bf16 %v2390_v0, %v2389_v3 }
 0x261   : > { %v7937_v25 = vpop.f32.mrf.mxu1  ;;  %3570 = vmatmul.mubr.bf16.gmra.mxu1 %v10040_v21  ;;  %v8155_v6 = vpop.f32.mrf.mxu0 }
 0x262   : > { %3577 = vmatprep.mubr.bf16.mxu1 %v10076_v51  ;;  %v2550_v51 = vld [vmem:[#allocation7 + $0x19a] sm:$0xff] }
 0x263   : > { %v7938_v36 = vpop.f32.mrf.mxu1  ;;  %v8156_v24 = vpop.f32.mrf.mxu0 }
 0x264   : > { %v10263_v37 = vadd.f32 %v7938_v36, %v7937_v25  ;;  %v10265_v57 = vadd.f32 %v8156_v24, %v8155_v6  ;;  %v2488_v25 = vld [vmem:[#allocation7 + $0x31] sm:$0xff]  ;;  %v2695_v36 = vpack.c.bf16 %v2551_v29, %v2550_v51  ;;  %v2489_v24 = vld [vmem:[#allocation7 + $0x39] sm:$0xff] }
 0x265   : > { %v8158_v1 = vpop.f32.mrf.mxu0  ;;  %v10273_v21 = vpop.f32.mrf.mxu1 }
 0x266   : > { %11548 = vst [vmem:[#allocation38_spill] sm:$0xff] %v10263_v37  ;;  %11549 = vst [vmem:[#allocation39_spill] sm:$0xff] %v10265_v57  ;;  %8910 = vmatmul.mubr.bf16.gmra.mxu0 %v2695_v36  ;;  %v2559_v37 = vpack.c.bf16 %v2489_v24, %v2488_v25 }
 0x267   : > { %v8159_v54 = vpop.f32.mrf.mxu0  ;;  %11551 = vst [vmem:[#allocation41_spill] sm:$0xff] %v10273_v21  ;;  %v10275_v6 = vpop.f32.mrf.mxu1 }
 0x268   : > { %v10267_v55 = vadd.f32 %v8159_v54, %v8158_v1  ;;  %11552 = vst [vmem:[#allocation42_spill] sm:$0xff] %v10275_v6  ;;  %v2491_v6 = vld [vmem:[#allocation7 + $0x51] sm:$0xff] }
 0x269   : > { %3578 = vmatmul.mubr.bf16.gmra.mxu1 %v10052_v58  ;;  %v2568_v36 = vpack.c.bf16 %v2491_v6, %v2490_v14  ;;  %v2494_v14 = vld [vmem:[#allocation7 + $0x79] sm:$0xff] }
 0x26a   : > { %11550 = vst [vmem:[#allocation40_spill] sm:$0xff] %v10267_v55  ;;  %3585 = vmatprep.mubr.bf16.mxu1 %v10269_v9 }
 0x271   : > { %v7943_v57 = vpop.f32.mrf.mxu1  ;;  %3586 = vmatmul.mubr.bf16.gmra.mxu1 %v10072_v42  ;;  %v8161_v54 = vpop.f32.mrf.mxu0  ;;  %v2492_v42 = vld [vmem:[#allocation7 + $0x61] sm:$0xff] }
 0x272   : > { %3787 = vmatprep.mubr.bf16.mxu1 %v2559_v37  ;;  %v2493_v37 = vld [vmem:[#allocation7 + $0x69] sm:$0xff] }
 0x273   : > { %v7944_v1 = vpop.f32.mrf.mxu1  ;;  %v8162_v58 = vpop.f32.mrf.mxu0 }
 0x274   : > { %v10278_v3 = vadd.f32 %v7944_v1, %v7943_v57  ;;  %v10280_v0 = vadd.f32 %v8162_v58, %v8161_v54  ;;  %v2577_v57 = vpack.c.bf16 %v2493_v37, %v2492_v42 }
 0x275   : > { %v7946_v21 = vpop.f32.mrf.mxu1  ;;  %v8164_v55 = vpop.f32.mrf.mxu0 }
 0x276   : > { %11553 = vst [vmem:[#allocation43_spill] sm:$0xff] %v10278_v3 }
 0x277   : > { %v7947_v29 = vpop.f32.mrf.mxu1  ;;  %v8165_v51 = vpop.f32.mrf.mxu0 }
 0x278   : > { %v10282_v33 = vadd.f32 %v7947_v29, %v7946_v21  ;;  %v10284_v25 = vadd.f32 %v8165_v51, %v8164_v55  ;;  %v2495_v51 = vld [vmem:[#allocation7 + $0x81] sm:$0xff] }
 0x279   : > { %3788 = vmatmul.mubr.bf16.vlgmr.msra.gmra.mxu1 %v10096_v17  ;;  %v2586_v37 = vpack.c.bf16 %v2495_v51, %v2494_v14  ;;  %v2498_v14 = vld [vmem:[#allocation7 + $0xa9] sm:$0xff]  ;;  %v2499_v51 = vld [vmem:[#allocation7 + $0xb1] sm:$0xff] }
 0x27a   : > { %11554 = vst [vmem:[#allocation44_spill] sm:$0xff] %v10282_v33  ;;  %3795 = vmatprep.mubr.bf16.mxu1 %v2568_v36 }
 0x280   : > { %v7949_v24 = vpop.f32.mrf.mxu1  ;;  %v8167_v54 = vpop.f32.mrf.mxu0 }
 0x281   : > { %3796 = vmatmul.mubr.bf16.gmra.mxu1 %v10121_v47  ;;  %v2496_v47 = vld [vmem:[#allocation7 + $0x91] sm:$0xff] }
 0x282   : > { %3803 = vmatprep.mubr.bf16.mxu1 %v2577_v57  ;;  %v7950_v1 = vpop.f32.mrf.mxu1  ;;  %v8168_v58 = vpop.f32.mrf.mxu0  ;;  %v2497_v57 = vld [vmem:[#allocation7 + $0x99] sm:$0xff] }
 0x283   : > { %v10288_v3 = vadd.f32 %v7950_v1, %v7949_v24  ;;  %v10290_v21 = vadd.f32 %v8168_v58, %v8167_v54  ;;  %v2595_v24 = vpack.c.bf16 %v2497_v57, %v2496_v47  ;;  %v2604_v57 = vpack.c.bf16 %v2499_v51, %v2498_v14  ;;  %v2502_v14 = vld [vmem:[#allocation7 + $0xd9] sm:$0xff]  ;;  %v2503_v51 = vld [vmem:[#allocation7 + $0xe1] sm:$0xff] }
 0x284   : > { %v7952_v55 = vpop.f32.mrf.mxu1  ;;  %v8170_v29 = vpop.f32.mrf.mxu0 }
 0x285   : > { %11555 = vst [vmem:[#allocation45_spill] sm:$0xff] %v10288_v3 }
 0x286   : > { %v7953_v6 = vpop.f32.mrf.mxu1  ;;  %v8171_v17 = vpop.f32.mrf.mxu0 }
 0x287   : > { %v10292_v36 = vadd.f32 %v7953_v6, %v7952_v55  ;;  %v10294_v42 = vadd.f32 %v8171_v17, %v8170_v29 }
 0x289   : > { %11556 = vst [vmem:[#allocation46_spill] sm:$0xff] %v10292_v36  ;;  %3804 = vmatmul.mubr.bf16.gmra.mxu1 %v10140_v18 }
 0x28a   : > { %3811 = vmatprep.mubr.bf16.mxu1 %v2586_v37 }
 0x291   : > { %v7955_v1 = vpop.f32.mrf.mxu1  ;;  %v8173_v54 = vpop.f32.mrf.mxu0  ;;  %3812 = vmatmul.mubr.bf16.gmra.mxu1 %v10163_v53  ;;  %v2500_v53 = vld [vmem:[#allocation7 + $0xc1] sm:$0xff] }
 0x292   : > { %3819 = vmatprep.mubr.bf16.mxu1 %v2595_v24  ;;  %v2501_v24 = vld [vmem:[#allocation7 + $0xc9] sm:$0xff] }
 0x293   : > { %v7956_v58 = vpop.f32.mrf.mxu1  ;;  %v8174_v3 = vpop.f32.mrf.mxu0 }
 0x294   : > { %v10298_v33 = vadd.f32 %v7956_v58, %v7955_v1  ;;  %v10300_v55 = vadd.f32 %v8174_v3, %v8173_v54  ;;  %v2613_v1 = vpack.c.bf16 %v2501_v24, %v2500_v53  ;;  %v2622_v24 = vpack.c.bf16 %v2503_v51, %v2502_v14 }
 0x295   : > { %v7958_v29 = vpop.f32.mrf.mxu1  ;;  %v8176_v6 = vpop.f32.mrf.mxu0 }
 0x296   : > { %11557 = vst [vmem:[#allocation47_spill] sm:$0xff] %v10298_v33 }
 0x297   : > { %v7959_v17 = vpop.f32.mrf.mxu1  ;;  %v8177_v18 = vpop.f32.mrf.mxu0 }
 0x298   : > { %v10302_v37 = vadd.f32 %v7959_v17, %v7958_v29  ;;  %v10304_v47 = vadd.f32 %v8177_v18, %v8176_v6 }
 0x299   : > { %3820 = vmatmul.mubr.bf16.gmra.mxu1 %v10176_v35 }
 0x29a   : > { %3827 = vmatprep.mubr.bf16.mxu1 %v2604_v57 }
 0x2a1   : > { %v7961_v58 = vpop.f32.mrf.mxu1  ;;  %v8179_v3 = vpop.f32.mrf.mxu0  ;;  %3828 = vmatmul.mubr.bf16.gmra.mxu1 %v10187_v20  ;;  %v2504_v20 = vld [vmem:[#allocation7 + $0xf1] sm:$0xff] }
 0x2a2   : > { %3835 = vmatprep.mubr.bf16.mxu1 %v2613_v1  ;;  %v2505_v1 = vld [vmem:[#allocation7 + $0xf9] sm:$0xff] }
 0x2a3   : > { %v7962_v54 = vpop.f32.mrf.mxu1  ;;  %v8180_v33 = vpop.f32.mrf.mxu0 }
 0x2a4   : > { %v10308_v36 = vadd.f32 %v7962_v54, %v7961_v58  ;;  %v10310_v29 = vadd.f32 %v8180_v33, %v8179_v3  ;;  %v2631_v58 = vpack.c.bf16 %v2505_v1, %v2504_v20  ;;  %v9176_v3 = vld [vmem:[%s11505_s3 + $0x78] sm:$0xff]   ;;  %v2507_v1 = vld [vmem:[#allocation7 + $0x111] sm:$0xff] }
 0x2a5   : > { %v7964_v6 = vpop.f32.mrf.mxu1  ;;  %v8182_v17 = vpop.f32.mrf.mxu0  ;;  %8333 = vmatprep.subr.bf16.mxu1 %v9176_v3  ;;  %v2508_v3 = vld [vmem:[#allocation7 + $0x121] sm:$0xff] }
 0x2a6   : > { %11558 = vst [vmem:[#allocation48_spill] sm:$0xff] %v10308_v36 }
 0x2a7   : > { %v7965_v18 = vpop.f32.mrf.mxu1  ;;  %v8183_v35 = vpop.f32.mrf.mxu0 }
 0x2a8   : > { %v10312_v57 = vadd.f32 %v7965_v18, %v7964_v6  ;;  %v10314_v53 = vadd.f32 %v8183_v35, %v8182_v17  ;;  %v9177_v6 = vld [vmem:[%s11505_s3 + $0x38] sm:$0xff]  }
 0x2a9   : > { %3836 = vmatmul.mubr.bf16.gmra.mxu1 %v10194_v43 }
 0x2aa   : > { %11559 = vst [vmem:[#allocation49_spill] sm:$0xff] %v10312_v57  ;;  %11560 = vst [vmem:[#allocation50_spill] sm:$0xff] %v10314_v53  ;;  %3843 = vmatprep.mubr.bf16.mxu1 %v2622_v24  ;;  %v2506_v24 = vld [vmem:[#allocation7 + $0x109] sm:$0xff]  ;;  %8334 = vmatpush3.bf16.msra.mxu1 %v9177_v6 }
 0x2ab   : > { %v2640_v36 = vpack.c.bf16 %v2507_v1, %v2506_v24  ;;  %v2509_v6 = vld [vmem:[#allocation7 + $0x129] sm:$0xff] }
 0x2b1   : > { %v7967_v54 = vpop.f32.mrf.mxu1  ;;  %v8185_v33 = vpop.f32.mrf.mxu0  ;;  %3844 = vmatmul.mubr.bf16.gmra.mxu1 %v10207_v13 }
 0x2b2   : > { %3851 = vmatprep.mubr.bf16.mxu1 %v2631_v58 }
 0x2b3   : > { %v7968_v17 = vpop.f32.mrf.mxu1  ;;  %v8186_v14 = vpop.f32.mrf.mxu0 }
 0x2b4   : > { %v10324_v43 = vadd.f32 %v7968_v17, %v7967_v54  ;;  %v10326_v18 = vadd.f32 %v8186_v14, %v8185_v33 }
 0x2b5   : > { %v7970_v35 = vpop.f32.mrf.mxu1  ;;  %v8188_v51 = vpop.f32.mrf.mxu0 }
 0x2b6   : > { %11561 = vst [vmem:[#allocation51_spill] sm:$0xff] %v10324_v43  ;;  %11562 = vst [vmem:[#allocation52_spill] sm:$0xff] %v10326_v18  ;;  %v7882_v18 = vadd.f32 %v10038_v16, %v10036_v2  ;;  %v2510_v2 = vld [vmem:[#allocation7 + $0x139] sm:$0xff] }
 0x2b7   : > { %v7971_v13 = vpop.f32.mrf.mxu1  ;;  %v8189_v20 = vpop.f32.mrf.mxu0 }
 0x2b8   : > { %v10328_v58 = vadd.f32 %v7971_v13, %v7970_v35  ;;  %v10330_v57 = vadd.f32 %v8189_v20, %v8188_v51  ;;  %v2649_v13 = vpack.c.bf16 %v2509_v6, %v2508_v3 }
 0x2b9   : > { %v7989_v53 = vpop.f32.mrf.mxu1  ;;  %3852 = vmatmul.mubr.bf16.gmra.mxu1 %v10216_v62  ;;  %v8106_v62 = vadd.f32 %v10070_v39, %v10068_v31  ;;  %v7888_v31 = vadd.f32 %v10054_v61, %v10050_v45  ;;  %v9178_v45 = vld [vmem:[%s11505_s3 + $0x70] sm:$0xff]  }
 0x2ba   : > { %3859 = vmatprep.mubr.bf16.mxu1 %v2640_v36  ;;  %8335 = vmatprep.subr.bf16.mxu1 %v9178_v45 }
 0x2bb   : > { %v7990_v54 = vpop.f32.mrf.mxu1 }
 0x2bc   : > { %v7991_v33 = vadd.f32 %v7990_v54, %v7989_v53 }
 0x2bd   : > { %v7992_v17 = vpop.f32.mrf.mxu1 }
 0x2be   : > { %v3468_v14 = vadd.f32 %v7991_v33, %v9970_v63 }
 0x2bf   : > { %v7993_v43 = vpop.f32.mrf.mxu1 }
 0x2c0   : > { %v7994_v35 = vadd.f32 %v7993_v43, %v7992_v17  ;;  %v10337_v51 = vadd.f32 %v10064_v27, %v3468_v14  ;;  %v8191_v20 = vpop.f32.mrf.mxu0  ;;  %v2511_v17 = vld [vmem:[#allocation7 + $0x141] sm:$0xff] }
 0x2c1   : > { %v7995_v24 = vpop.f32.mrf.mxu1  ;;  %3860 = vmatmul.mubr.bf16.gmra.mxu1 %v10229_v46  ;;  %v2658_v14 = vpack.c.bf16 %v2511_v17, %v2510_v2  ;;  %v7894_v2 = vadd.f32 %v10074_v49, %v10066_v30  ;;  %v9180_v17 = vld [vmem:[%s11505_s3 + $0x68] sm:$0xff]  }
 0x2c2   : > { %v3471_v36 = vadd.f32 %v7994_v35, %v7882_v18  ;;  %3867 = vmatprep.mubr.bf16.mxu1 %v2649_v13  ;;  %v8192_v53 = vpop.f32.mrf.mxu0  ;;  %v8112_v13 = vadd.f32 %v10088_v8, %v10084_v4 }
 0x2c3   : > { %v7996_v63 = vpop.f32.mrf.mxu1  ;;  %v10342_v54 = vadd.f32 %v8192_v53, %v8191_v20 }
 0x2c4   : > { %v7997_v1 = vadd.f32 %v7996_v63, %v7995_v24  ;;  %v10344_v16 = vadd.f32 %v8106_v62, %v3471_v36  ;;  %v8194_v27 = vpop.f32.mrf.mxu0  ;;  %v2478_v62 = vld [vmem:[#allocation7 + $0x138] sm:$0xff]  ;;  %v2479_v36 = vld [vmem:[#allocation7 + $0x140] sm:$0xff] }
 0x2c5   : > { %v7998_v43 = vpop.f32.mrf.mxu1  ;;  %v2512_v63 = vld [vmem:[#allocation7 + $0x151] sm:$0xff]  ;;  %v2657_v53 = vpack.c.bf16 %v2479_v36, %v2478_v62  ;;  %v7900_v36 = vadd.f32 %v10113_v38, %v10104_v22  ;;  %v8124_v22 = vadd.f32 %v10158_v44, %v10148_v28  ;;  %v9188_v28 = vld [vmem:[%s11505_s3 + $0x50] sm:$0xff]  }
 0x2c6   : > { %v3476_v33 = vadd.f32 %v7997_v1, %v10048_v34  ;;  %v8195_v46 = vpop.f32.mrf.mxu0  ;;  %v2513_v1 = vld [vmem:[#allocation7 + $0x159] sm:$0xff]  ;;  %v2515_v62 = vld [vmem:[#allocation7 + $0x171] sm:$0xff] }
 0x2c7   : > { %v7999_v3 = vpop.f32.mrf.mxu1  ;;  %v10349_v18 = vadd.f32 %v8195_v46, %v8194_v27  ;;  %v2667_v27 = vpack.c.bf16 %v2513_v1, %v2512_v63  ;;  %v8118_v46 = vadd.f32 %v10115_v48, %v10106_v23  ;;  %v9183_v23 = vld [vmem:[%s11505_s3 + $0x20] sm:$0xff]   ;;  %v2482_v1 = vld [vmem:[#allocation7 + $0x168] sm:$0xff] }
 0x2c8   : > { %v8000_v39 = vadd.f32 %v7999_v3, %v7998_v43  ;;  %v10352_v6 = vadd.f32 %v10081_v56, %v3476_v33 }
 0x2c9   : > { %v8001_v35 = vpop.f32.mrf.mxu1  ;;  %3868 = vmatmul.mubr.bf16.gmra.mxu1 %v10236_v50  ;;  %v9179_v50 = vld [vmem:[%s11505_s3 + $0x30] sm:$0xff]  }
 0x2ca   : > { %v3479_v34 = vadd.f32 %v8000_v39, %v7888_v31  ;;  %3875 = vmatprep.mubr.bf16.mxu1 %v2658_v14  ;;  %8336 = vmatpush3.bf16.msra.mxu1 %v9179_v50  ;;  %v2481_v31 = vld [vmem:[#allocation7 + $0x158] sm:$0xff]  ;;  %v9184_v50 = vld [vmem:[%s11505_s3 + $0x58] sm:$0xff]  }
 0x2cb   : > { %v8002_v24 = vpop.f32.mrf.mxu1  ;;  %8337 = vmatprep.subr.bf16.mxu1 %v9180_v17 }
 0x2cc   : > { %v8003_v20 = vadd.f32 %v8002_v24, %v8001_v35  ;;  %v10360_v61 = vadd.f32 %v8112_v13, %v3479_v34  ;;  %v9182_v35 = vld [vmem:[%s11505_s3 + $0x60] sm:$0xff]  }
 0x2cd   : > { %v8004_v56 = vpop.f32.mrf.mxu1  ;;  %v2514_v34 = vld [vmem:[#allocation7 + $0x169] sm:$0xff] }
 0x2ce   : > { %v3484_v4 = vadd.f32 %v8003_v20, %v10062_v12  ;;  %v9181_v12 = vld [vmem:[%s11505_s3 + $0x28] sm:$0xff]  }
 0x2cf   : > { %v8005_v8 = vpop.f32.mrf.mxu1  ;;  %8338 = vmatpush3.bf16.msra.mxu1 %v9181_v12  ;;  %v9189_v12 = vld [vmem:[%s11505_s3 + $0x170] sm:$0xff]  }
 0x2d0   : > { %v8006_v43 = vadd.f32 %v8005_v8, %v8004_v56  ;;  %v10369_v33 = vadd.f32 %v10098_v19, %v3484_v4  ;;  %v2480_v19 = vld [vmem:[#allocation7 + $0x150] sm:$0xff]  ;;  %8339 = vmatprep.subr.bf16.mxu1 %v9182_v35  ;;  %v2676_v56 = vpack.c.bf16 %v2515_v62, %v2514_v34  ;;  %v9186_v8 = vld [vmem:[%s11505_s3 + $0x18] sm:$0xff]  }
 0x2d1   : > { %v8007_v3 = vpop.f32.mrf.mxu1  ;;  %3876 = vmatmul.mubr.bf16.gmra.mxu1 %v2657_v53  ;;  %v2666_v20 = vpack.c.bf16 %v2481_v31, %v2480_v19  ;;  %v7906_v31 = vadd.f32 %v10156_v41, %v10146_v26  ;;  %v9194_v26 = vld [vmem:[%s11505_s3 + $0x8] sm:$0xff]   ;;  %v11563_v41 = vld [vmem:[#allocation18_spill] sm:$0xff] }
 0x2d2   : > { %v3487_v14 = vadd.f32 %v8006_v43, %v7894_v2  ;;  %3883 = vmatprep.mubr.bf16.mxu1 %v2667_v27  ;;  %v2483_v43 = vld [vmem:[#allocation7 + $0x170] sm:$0xff] }
 0x2d3   : > { %v8008_v30 = vpop.f32.mrf.mxu1  ;;  %8340 = vmatpush3.bf16.msra.mxu1 %v9183_v23  ;;  %v2517_v27 = vld [vmem:[#allocation7 + $0x189] sm:$0xff]  ;;  %v2675_v19 = vpack.c.bf16 %v2483_v43, %v2482_v1 }
 0x2d4   : > { %v8009_v49 = vadd.f32 %v8008_v30, %v8007_v3  ;;  %v10379_v39 = vadd.f32 %v8118_v46, %v3487_v14  ;;  %8341 = vmatprep.subr.bf16.mxu1 %v9184_v50  ;;  %v2516_v3 = vld [vmem:[#allocation7 + $0x181] sm:$0xff] }
 0x2d5   : > { %v8010_v13 = vpop.f32.mrf.mxu1  ;;  %v9190_v46 = vld [vmem:[%s11505_s3 + $0x10] sm:$0xff]  }
 0x2d6   : > { %v3492_v48 = vadd.f32 %v8009_v49, %v10086_v5  ;;  %v9185_v5 = vld [vmem:[%s11505_s3 + $0x178] sm:$0xff]   ;;  %v9191_v30 = vld [vmem:[%s11505_s3 + $0x130] sm:$0xff]  }
 0x2d7   : > { %v8011_v24 = vpop.f32.mrf.mxu1  ;;  %8413 = vmatprep.subr.bf16.mxu0 %v9185_v5  ;;  %8342 = vmatpush3.bf16.msra.mxu1 %v9186_v8  ;;  %v9197_v5 = vld [vmem:[%s11505_s3 + $0x160] sm:$0xff]   ;;  %v11566_v43 = vld [vmem:[#allocation17_spill] sm:$0xff] }
 0x2d8   : > { %v8012_v45 = vadd.f32 %v8011_v24, %v8010_v13  ;;  %v10391_v63 = vadd.f32 %v10132_v60, %v3492_v48  ;;  %v9187_v60 = vld [vmem:[%s11505_s3 + $0x138] sm:$0xff]   ;;  %8343 = vmatprep.subr.bf16.mxu1 %v9188_v28  ;;  %v2685_v13 = vpack.c.bf16 %v2517_v27, %v2516_v3  ;;  %v9193_v48 = vld [vmem:[%s11505_s3 + $0x168] sm:$0xff]   ;;  %v8130_v24 = vadd.f32 %v11563_v41, %v10181_v40  ;;  %v9196_v40 = vld [vmem:[%s11505_s3 + $0x40] sm:$0xff]  }
 0x2d9   : > { %v8013_v4 = vpop.f32.mrf.mxu1  ;;  %3884 = vmatmul.mubr.bf16.gmra.mxu1 %v2666_v20  ;;  %8414 = vmatpush3.bf16.msra.mxu0 %v9187_v60  ;;  %v9195_v20 = vld [vmem:[%s11505_s3 + $0x128] sm:$0xff]   ;;  %v9198_v8 = vld [vmem:[%s11505_s3] sm:$0xff]  }
 0x2da   : > { %v3495_v38 = vadd.f32 %v8012_v45, %v7900_v36  ;;  %3891 = vmatprep.mubr.bf16.mxu1 %v2676_v56  ;;  %8415 = vmatprep.subr.bf16.mxu0 %v9189_v12  ;;  %v2518_v36 = vld [vmem:[#allocation7 + $0x199] sm:$0xff]  ;;  %v2519_v45 = vld [vmem:[#allocation7 + $0x1a1] sm:$0xff] }
 0x2db   : > { %v8014_v53 = vpop.f32.mrf.mxu1  ;;  %8344 = vmatpush3.bf16.msra.mxu1 %v9190_v46  ;;  %v2694_v60 = vpack.c.bf16 %v2519_v45, %v2518_v36  ;;  %v9200_v12 = vld [vmem:[%s11505_s3 + $0x158] sm:$0xff]   ;;  %v8136_v46 = vadd.f32 %v10205_v15, %v10201_v52  ;;  %v9202_v52 = vld [vmem:[%s11505_s3 + $0x150] sm:$0xff]   ;;  %v11567_v15 = vld [vmem:[#allocation19_spill] sm:$0xff] }
 0x2dc   : > { %v8015_v2 = vadd.f32 %v8014_v53, %v8013_v4  ;;  %v10407_v17 = vadd.f32 %v8124_v22, %v3495_v38  ;;  %v11564_v22 = vld [vmem:[#allocation15_spill] sm:$0xff]  ;;  %v11571_v45 = vld [vmem:[#allocation25_spill] sm:$0xff] }
 0x2dd   : > { %v8016_v44 = vpop.f32.mrf.mxu1  ;;  %8416 = vmatpush3.bf16.msra.mxu0 %v9191_v30  ;;  %v9199_v53 = vld [vmem:[%s11505_s3 + $0x120] sm:$0xff]   ;;  %v9201_v30 = vld [vmem:[%s11505_s3 + $0x118] sm:$0xff]   ;;  %v9204_v36 = vld [vmem:[%s11505_s3 + $0x148] sm:$0xff]  }
 0x2de   : > { %v3500_v14 = vadd.f32 %v8015_v2, %v10130_v59  ;;  %v9192_v59 = vld [vmem:[%s11505_s3 + $0x48] sm:$0xff]   ;;  %8417 = vmatprep.subr.bf16.mxu0 %v9193_v48 }
 0x2df   : > { %v8017_v49 = vpop.f32.mrf.mxu1  ;;  %8345 = vmatprep.subr.bf16.mxu1 %v9192_v59  ;;  %v11565_v2 = vld [vmem:[#allocation16_spill] sm:$0xff] }
 0x2e0   : > { %v8018_v35 = vadd.f32 %v8017_v49, %v8016_v44  ;;  %v10425_v34 = vadd.f32 %v10174_v11, %v3500_v14  ;;  %8346 = vmatpush3.bf16.msra.mxu1 %v9194_v26  ;;  %v7912_v27 = vadd.f32 %v11566_v43, %v11565_v2  ;;  %v9203_v59 = vld [vmem:[%s11505_s3 + $0x110] sm:$0xff]   ;;  %v9207_v43 = vld [vmem:[%s11505_s3 + $0x100] sm:$0xff]  }
 0x2e1   : > { %v8019_v23 = vpop.f32.mrf.mxu1  ;;  %3892 = vmatmul.mubr.bf16.gmra.mxu1 %v2675_v19  ;;  %8418 = vmatpush3.bf16.msra.mxu0 %v9195_v20  ;;  %v11568_v48 = vld [vmem:[#allocation20_spill] sm:$0xff]  ;;  %v11569_v26 = vld [vmem:[#allocation21_spill] sm:$0xff] }
 0x2e2   : > { %v3503_v11 = vadd.f32 %v8018_v35, %v7906_v31  ;;  %3899 = vmatprep.mubr.bf16.mxu1 %v2685_v13  ;;  %8347 = vmatprep.subr.bf16.mxu1 %v9196_v40  ;;  %v10472_v31 = vld [vmem:[#allocation7] sm:$0xff]  ;;  %v7918_v41 = vadd.f32 %v11569_v26, %v11568_v48 }
 0x2e3   : > { %v8020_v62 = vpop.f32.mrf.mxu1  ;;  %8419 = vmatprep.subr.bf16.mxu0 %v9197_v5  ;;  %v2693_v35 = vpack.c.bf16 %v10472_v31, %v10472_v31  ;;  %v9205_v5 = vld [vmem:[%s11505_s3 + $0x108] sm:$0xff]   ;;  %v11578_v26 = vld [vmem:[#allocation29_spill] sm:$0xff] }
 0x2e4   : > { %v8021_v56 = vadd.f32 %v8020_v62, %v8019_v23  ;;  %v10441_v50 = vadd.f32 %v8130_v24, %v3503_v11  ;;  %8348 = vmatpush3.bf16.msra.mxu1 %v9198_v8  ;;  %v11570_v11 = vld [vmem:[#allocation23_spill] sm:$0xff] }
 0x2e5   : > { %v8022_v4 = vpop.f32.mrf.mxu1  ;;  %8420 = vmatpush3.bf16.msra.mxu0 %v9199_v53  ;;  %v9206_v53 = vld [vmem:[%s11505_s3 + $0x140] sm:$0xff]  }
 0x2e6   : > { %v3508_v38 = vadd.f32 %v8021_v56, %v11564_v22  ;;  %8421 = vmatprep.subr.bf16.mxu0 %v9200_v12  ;;  %v11572_v56 = vld [vmem:[#allocation27_spill] sm:$0xff] }
 0x2e7   : > { %v8023_v1 = vpop.f32.mrf.mxu1  ;;  %v8142_v40 = vadd.f32 %v11572_v56, %v11571_v45  ;;  %v11581_v45 = vld [vmem:[#allocation35_spill] sm:$0xff]  ;;  %v11582_v56 = vld [vmem:[#allocation37_spill] sm:$0xff] }
 0x2e8   : > { %v8024_v28 = vadd.f32 %v8023_v1, %v8022_v4  ;;  %v10459_v44 = vadd.f32 %v10192_v10, %v3508_v38  ;;  %v11573_v1 = vld [vmem:[#allocation22_spill] sm:$0xff] }
 0x2e9   : > { %v8025_v3 = vpop.f32.mrf.mxu1  ;;  %3900 = vmatmul.mubr.bf16.gmra.mxu1 %v10269_v9  ;;  %8422 = vmatpush3.bf16.msra.mxu0 %v9201_v30 }
 0x2ea   : > { %v3511_v14 = vadd.f32 %v8024_v28, %v7912_v27  ;;  %3907 = vmatprep.mubr.bf16.mxu1 %v2694_v60  ;;  %8423 = vmatprep.subr.bf16.mxu0 %v9202_v52  ;;  %v11574_v28 = vld [vmem:[#allocation24_spill] sm:$0xff] }
 0x2eb   : > { %v8026_v49 = vpop.f32.mrf.mxu1 }
 0x2ec   : > { %v8027_v10 = vadd.f32 %v8026_v49, %v8025_v3  ;;  %v10470_v19 = vadd.f32 %v8136_v46, %v3511_v14  ;;  %v11575_v3 = vld [vmem:[#allocation26_spill] sm:$0xff] }
 0x2ed   : > { %v8028_v9 = vpop.f32.mrf.mxu1  ;;  %8424 = vmatpush3.bf16.msra.mxu0 %v9203_v59  ;;  %v7924_v12 = vadd.f32 %v11575_v3, %v11574_v28  ;;  %v11576_v49 = vld [vmem:[#allocation30_spill] sm:$0xff]  ;;  %v11577_v59 = vld [vmem:[#allocation28_spill] sm:$0xff]  ;;  %v11586_v3 = vld [vmem:[#allocation39_spill] sm:$0xff] }
 0x2ee   : > { %v3516_v13 = vadd.f32 %v8027_v10, %v11567_v15  ;;  %8425 = vmatprep.subr.bf16.mxu0 %v9204_v36  ;;  %v8148_v10 = vadd.f32 %v10245_v7, %v11576_v49  ;;  %v8154_v7 = vadd.f32 %v11582_v56, %v11581_v45 }
 0x2ef   : > { %v8029_v23 = vpop.f32.mrf.mxu1 }
 0x2f0   : > { %v8030_v24 = vadd.f32 %v8029_v23, %v8028_v9  ;;  %v10486_v20 = vadd.f32 %v11570_v11, %v3516_v13 }
 0x2f1   : > { %v8031_v62 = vpop.f32.mrf.mxu1  ;;  %3908 = vmatmul.mubr.bf16.gmra.mxu1 %v2693_v35  ;;  %8426 = vmatpush3.bf16.msra.mxu0 %v9205_v5 }
 0x2f2   : > { %v3519_v4 = vadd.f32 %v8030_v24, %v7918_v41  ;;  %8427 = vmatprep.subr.bf16.mxu0 %v9206_v53  ;;  %v11579_v41 = vld [vmem:[#allocation31_spill] sm:$0xff] }
 0x2f3   : > { %v8032_v8 = vpop.f32.mrf.mxu1  ;;  %v7930_v24 = vadd.f32 %v11579_v41, %v11578_v26  ;;  %v11590_v26 = vld [vmem:[#allocation42_spill] sm:$0xff] }
 0x2f4   : > { %v8033_v22 = vadd.f32 %v8032_v8, %v8031_v62  ;;  %v10496_v38 = vadd.f32 %v8142_v40, %v3519_v4 }
 0x2f5   : > { %v8034_v60 = vpop.f32.mrf.mxu1  ;;  %8428 = vmatpush3.bf16.msra.mxu0 %v9207_v43  ;;  %v11585_v43 = vld [vmem:[#allocation36_spill] sm:$0xff] }
 0x2f6   : > { %v3524_v2 = vadd.f32 %v8033_v22, %v11573_v1 }
 0x2f7   : > { %v8035_v27 = vpop.f32.mrf.mxu1 }
 0x2f8   : > { %v8036_v46 = vadd.f32 %v8035_v27, %v8034_v60  ;;  %v10508_v14 = vadd.f32 %v10234_v32, %v3524_v2  ;;  %v11580_v32 = vld [vmem:[#allocation33_spill] sm:$0xff]  ;;  %v11583_v60 = vld [vmem:[#allocation32_spill] sm:$0xff]  ;;  %v11584_v2 = vld [vmem:[#allocation34_spill] sm:$0xff] }
 0x2f9   : > { %v8037_v30 = vpop.f32.mrf.mxu1  ;;  %v7936_v27 = vadd.f32 %v11585_v43, %v11584_v2  ;;  %v11592_v2 = vld [vmem:[#allocation44_spill] sm:$0xff] }
 0x2fa   : > { %v3527_v9 = vadd.f32 %v8036_v46, %v7924_v12 }
 0x2fb   : > { %v8038_v35 = vpop.f32.mrf.mxu1 }
 0x2fc   : > { %v8039_v52 = vadd.f32 %v8038_v35, %v8037_v30  ;;  %v10512_v15 = vadd.f32 %v8148_v10, %v3527_v9  ;;  %v11587_v9 = vld [vmem:[#allocation40_spill] sm:$0xff] }
 0x2fd   : > { %v8040_v13 = vpop.f32.mrf.mxu1 }
 0x2fe   : > { %v3532_v23 = vadd.f32 %v8039_v52, %v11577_v59 }
 0x2ff   : > { %v8041_v48 = vpop.f32.mrf.mxu1 }
 0x300   : > { %v8042_v11 = vadd.f32 %v8041_v48, %v8040_v13  ;;  %v10518_v62 = vadd.f32 %v11580_v32, %v3532_v23  ;;  %v11588_v13 = vld [vmem:[#allocation38_spill] sm:$0xff]  ;;  %v11589_v48 = vld [vmem:[#allocation41_spill] sm:$0xff] }
 0x301   : > { %v8043_v36 = vpop.f32.mrf.mxu1  ;;  %v7942_v41 = vadd.f32 %v11590_v26, %v11589_v48  ;;  %v11595_v26 = vld [vmem:[#allocation47_spill] sm:$0xff] }
 0x302   : > { %v3535_v40 = vadd.f32 %v8042_v11, %v7930_v24 }
 0x303   : > { %v8044_v4 = vpop.f32.mrf.mxu1 }
 0x304   : > { %v8045_v5 = vadd.f32 %v8044_v4, %v8043_v36  ;;  %v10522_v8 = vadd.f32 %v8154_v7, %v3535_v40  ;;  %v11591_v4 = vld [vmem:[#allocation43_spill] sm:$0xff] }
 0x305   : > { %v8046_v22 = vpop.f32.mrf.mxu1 }
 0x306   : > { %v3540_v53 = vadd.f32 %v8045_v5, %v11583_v60 }
 0x307   : > { %v8047_v1 = vpop.f32.mrf.mxu1 }
 0x308   : > { %v8048_v28 = vadd.f32 %v8047_v1, %v8046_v22  ;;  %v10528_v12 = vadd.f32 %v11586_v3, %v3540_v53 }
 0x309   : > { %v8049_v46 = vpop.f32.mrf.mxu1 }
 0x30a   : > { %v3543_v30 = vadd.f32 %v8048_v28, %v7936_v27 }
 0x30b   : > { %v8050_v49 = vpop.f32.mrf.mxu1 }
 0x30c   : > { %v8051_v10 = vadd.f32 %v8050_v49, %v8049_v46  ;;  %v10531_v35 = vadd.f32 %v11587_v9, %v3543_v30  ;;  %v11593_v46 = vld [vmem:[#allocation45_spill] sm:$0xff] }
 0x30d   : > { %v8052_v52 = vpop.f32.mrf.mxu1 }
 0x30e   : > { %v3548_v59 = vadd.f32 %v8051_v10, %v11588_v13 }
 0x30f   : > { %v8053_v23 = vpop.f32.mrf.mxu1 }
 0x310   : > { %v8054_v24 = vadd.f32 %v8053_v23, %v8052_v52  ;;  %v10537_v11 = vadd.f32 %v10280_v0, %v3548_v59  ;;  %v11594_v52 = vld [vmem:[#allocation46_spill] sm:$0xff] }
 0x311   : > { %v8055_v32 = vpop.f32.mrf.mxu1 }
 0x312   : > { %v3551_v36 = vadd.f32 %v8054_v24, %v7942_v41 }
 0x313   : > { %v8056_v45 = vpop.f32.mrf.mxu1 }
 0x314   : > { %v8057_v56 = vadd.f32 %v8056_v45, %v8055_v32  ;;  %v10540_v7 = vadd.f32 %v10284_v25, %v3551_v36 }
 0x315   : > { %v8058_v40 = vpop.f32.mrf.mxu1 }
 0x316   : > { %v3556_v5 = vadd.f32 %v8057_v56, %v11591_v4 }
 0x317   : > { %v8059_v22 = vpop.f32.mrf.mxu1 }
 0x318   : > { %v8060_v60 = vadd.f32 %v8059_v22, %v8058_v40  ;;  %v10544_v53 = vadd.f32 %v10290_v21, %v3556_v5  ;;  %v11596_v40 = vld [vmem:[#allocation50_spill] sm:$0xff]  ;;  %v11597_v22 = vld [vmem:[#allocation48_spill] sm:$0xff] }
 0x319   : > { %v8061_v1 = vpop.f32.mrf.mxu1 }
 0x31a   : > { %v3559_v43 = vadd.f32 %v8060_v60, %v11592_v2  ;;  %v11598_v2 = vld [vmem:[#allocation52_spill] sm:$0xff] }
 0x31b   : > { %v8062_v0 = vpop.f32.mrf.mxu1 }
 0x31c   : > { %v8063_v27 = vadd.f32 %v8062_v0, %v8061_v1  ;;  %v10548_v28 = vadd.f32 %v10294_v42, %v3559_v43 }
 0x31d   : > { %v8064_v3 = vpop.f32.mrf.mxu1 }
 0x31e   : > { %v3564_v25 = vadd.f32 %v8063_v27, %v11593_v46  ;;  %v11599_v27 = vld [vmem:[#allocation49_spill] sm:$0xff] }
 0x31f   : > { %v8065_v30 = vpop.f32.mrf.mxu1 }
 0x320   : > { %v8066_v49 = vadd.f32 %v8065_v30, %v8064_v3  ;;  %v10552_v10 = vadd.f32 %v10300_v55, %v3564_v25 }
 0x321   : > { %v8067_v9 = vpop.f32.mrf.mxu1 }
 0x322   : > { %v3567_v21 = vadd.f32 %v8066_v49, %v11594_v52  ;;  %v11600_v49 = vld [vmem:[#allocation51_spill] sm:$0xff]  ;;  %v8883_v52 = vpop.f32.mrf.mxu0 }
 0x323   : > { %v8068_v13 = vpop.f32.mrf.mxu1 }
 0x324   : > { %v8069_v59 = vadd.f32 %v8068_v13, %v8067_v9  ;;  %v10556_v23 = vadd.f32 %v10304_v47, %v3567_v21 }
 0x325   : > { %v8070_v48 = vpop.f32.mrf.mxu1 }
 0x326   : > { %v3572_v42 = vadd.f32 %v8069_v59, %v11595_v26 }
 0x327   : > { %v8071_v41 = vpop.f32.mrf.mxu1 }
 0x328   : > { %v8072_v24 = vadd.f32 %v8071_v41, %v8070_v48  ;;  %v10560_v32 = vadd.f32 %v10310_v29, %v3572_v42  ;;  %v9208_v29 = vld [vmem:[%s11505_s3 + $0xf8] sm:$0xff]   ;;  %v3950_v42 = vpop.f32.mrf.mxu0 }
 0x329   : > { %v8073_v36 = vpop.f32.mrf.mxu1  ;;  %8373 = vmatprep.subr.bf16.mxu1 %v9208_v29 }
 0x32a   : > { %v3575_v55 = vadd.f32 %v8072_v24, %v10302_v37 }
 0x32b   : > { %v8074_v45 = vpop.f32.mrf.mxu1 }
 0x32c   : > { %v8075_v56 = vadd.f32 %v8074_v45, %v8073_v36  ;;  %v10564_v4 = vadd.f32 %v11596_v40, %v3575_v55  ;;  %v8884_v45 = vpop.f32.mrf.mxu0 }
 0x32d   : > { %v8076_v5 = vpop.f32.mrf.mxu1 }
 0x32e   : > { %v3580_v47 = vadd.f32 %v8075_v56, %v11597_v22 }
 0x32f   : > { %v8077_v60 = vpop.f32.mrf.mxu1 }
 0x330   : > { %v8078_v1 = vadd.f32 %v8077_v60, %v8076_v5  ;;  %v10568_v43 = vadd.f32 %v11598_v2, %v3580_v47  ;;  %v3953_v47 = vpop.f32.mrf.mxu0 }
 0x331   : > { %v8079_v0 = vpop.f32.mrf.mxu1 }
 0x332   : > { %v3583_v37 = vadd.f32 %v8078_v1, %v11599_v27  ;;  %v8887_v29 = vpop.f32.mrf.mxu0 }
 0x333   : > { %v8080_v3 = vpop.f32.mrf.mxu1 }
 0x334   : > { %v8081_v46 = vadd.f32 %v8080_v3, %v8079_v0  ;;  %v10575_v25 = vadd.f32 %v10330_v57, %v3583_v37 }
 0x335   : > { %v8082_v30 = vpop.f32.mrf.mxu1 }
 0x336   : > { %v3588_v9 = vadd.f32 %v8081_v46, %v11600_v49 }
 0x337   : > { %v8083_v21 = vpop.f32.mrf.mxu1 }
 0x338   : > { %v8084_v13 = vadd.f32 %v8083_v21, %v8082_v30  ;;  %v10579_v59 = vadd.f32 %v10342_v54, %v3588_v9  ;;  %v10589_v54 = vld [vmem:[%s11505_s3 + $0x238] sm:$0xff]   ;;  %v3966_v30 = vpop.f32.mrf.mxu0 }
 0x339   : > { %v8213_v48 = vpop.f32.mrf.mxu1  ;;  %8913 = vmatprep.subr.bf16.mxu0 %v10589_v54 }
 0x33a   : > { %v3591_v26 = vadd.f32 %v8084_v13, %v10328_v58 }
 0x33b   : > { %v8214_v41 = vpop.f32.mrf.mxu1 }
 0x33c   : > { %v8215_v24 = vadd.f32 %v8214_v41, %v8213_v48  ;;  %v10583_v36 = vadd.f32 %v10349_v18, %v3591_v26  ;;  %v8888_v48 = vpop.f32.mrf.mxu0 }
 0x33d   : > { %v8216_v57 = vpop.f32.mrf.mxu1 }
 0x33e   : > { %v3790_v55 = vadd.f32 %v8215_v24, %v10337_v51  ;;  %v3969_v24 = vpop.f32.mrf.mxu0 }
 0x33f   : > { %v8217_v56 = vpop.f32.mrf.mxu1 }
 0x340   : > { %v3951_v40 = vadd.f32 %v3950_v42, %v3790_v55  ;;  %v8218_v5 = vadd.f32 %v8217_v56, %v8216_v57 }
 0x341   : > { %v8219_v22 = vpop.f32.mrf.mxu1 }
 0x342   : > { %4077 = vst [vmem:[#allocation3] sm:$0xff] %v3951_v40  ;;  %v3793_v58 = vadd.f32 %v8218_v5, %v10344_v16 }
 0x343   : > { %v8220_v60 = vpop.f32.mrf.mxu1 }
 0x344   : > { %v3954_v18 = vadd.f32 %v3953_v47, %v3793_v58  ;;  %v8221_v1 = vadd.f32 %v8220_v60, %v8219_v22  ;;  %v8891_v60 = vpop.f32.mrf.mxu0 }
 0x345   : > { %v8222_v51 = vpop.f32.mrf.mxu1 }
 0x346   : > { %4078 = vst [vmem:[#allocation3 + $0x8] sm:$0xff] %v3954_v18  ;;  %v3798_v2 = vadd.f32 %v8221_v1, %v10352_v6 }
 0x347   : > { %v8223_v0 = vpop.f32.mrf.mxu1 }
 0x348   : > { %v3959_v27 = vadd.f32 %v8883_v52, %v3798_v2  ;;  %v8224_v37 = vadd.f32 %v8223_v0, %v8222_v51 }
 0x349   : > { %v8225_v3 = vpop.f32.mrf.mxu1 }
 0x34a   : > { %4079 = vst [vmem:[#allocation3 + $0x10] sm:$0xff] %v3959_v27  ;;  %v3801_v46 = vadd.f32 %v8224_v37, %v10360_v61 }
 0x34b   : > { %v8226_v16 = vpop.f32.mrf.mxu1 }
 0x34c   : > { %v3962_v49 = vadd.f32 %v8884_v45, %v3801_v46  ;;  %v8227_v9 = vadd.f32 %v8226_v16, %v8225_v3  ;;  %v3982_v3 = vpop.f32.mrf.mxu0 }
 0x34d   : > { %v8228_v21 = vpop.f32.mrf.mxu1  ;;  %v4109_v57 = vld [vmem:[#allocation3] ss:$2 sm:$0xff]  ;;  %v4125_v55 = vld [vmem:[#allocation3 + $0x1] ss:$2 sm:$0xff] }
 0x34e   : > { %4080 = vst [vmem:[#allocation3 + $0x18] sm:$0xff] %v3962_v49  ;;  %v3806_v13 = vadd.f32 %v8227_v9, %v10369_v33  ;;  %v4172_v58 = vmax.f32 %v4109_v57, %v4125_v55 }
 0x34f   : > { %v8229_v26 = vpop.f32.mrf.mxu1 }
 0x350   : > { %v3967_v42 = vadd.f32 %v3966_v30, %v3806_v13  ;;  %v8230_v6 = vadd.f32 %v8229_v26, %v8228_v21  ;;  %v4257_v30 = vld [vmem:[#allocation8 + $0x1] sm:$0xff]  ;;  %v8892_v13 = vpop.f32.mrf.mxu0 }
 0x351   : > { %v8231_v41 = vpop.f32.mrf.mxu1 }
 0x352   : > { %4081 = vst [vmem:[#allocation3 + $0x20] sm:$0xff] %v3967_v42  ;;  %v3809_v52 = vadd.f32 %v8230_v6, %v10379_v39  ;;  %v10601_v39 = vld [vmem:[%s11509_s7] ss:$0 sm:$0xff] }
 0x353   : > { %v8232_v61 = vpop.f32.mrf.mxu1 }
 0x354   : > { %v3970_v56 = vadd.f32 %v3969_v24, %v3809_v52  ;;  %v8233_v40 = vadd.f32 %v8232_v61, %v8231_v41  ;;  %v3985_v41 = vpop.f32.mrf.mxu0 }
 0x355   : > { %v4141_v45 = vld [vmem:[#allocation3 + $0x10] ss:$2 sm:$0xff]  ;;  %v4157_v5 = vld [vmem:[#allocation3 + $0x11] ss:$2 sm:$0xff]  ;;  %v8234_v22 = vpop.f32.mrf.mxu1 }
 0x356   : > { %v4180_v47 = vmax.f32 %v4141_v45, %v4157_v5  ;;  %4082 = vst [vmem:[#allocation3 + $0x28] sm:$0xff] %v3970_v56  ;;  %v3814_v33 = vadd.f32 %v8233_v40, %v10391_v63 }
 0x357   : > { %v8235_v18 = vpop.f32.mrf.mxu1 }
 0x358   : > { %v3975_v1 = vadd.f32 %v8887_v29, %v3814_v33  ;;  %v8236_v51 = vadd.f32 %v8235_v18, %v8234_v22  ;;  %v4188_v2 = vmax.f32 %v4172_v58, %v4180_v47  ;;  %v9210_v33 = vld [vmem:[%s11505_s3 + $0xf0] sm:$0xff]   ;;  %v10622_v18 = vpop.f32.mrf.mxu0 }
 0x359   : > { %v8237_v0 = vpop.f32.mrf.mxu1 }
 0x35a   : > { %4083 = vst [vmem:[#allocation3 + $0x30] sm:$0xff] %v3975_v1  ;;  %v3817_v27 = vadd.f32 %v8236_v51, %v10407_v17  ;;  %v4203_v37 = vadd.f32 %v10601_v39, %v4188_v2 }
 0x35b   : > { %v8238_v46 = vpop.f32.mrf.mxu1 }
 0x35c   : > { %v3978_v63 = vadd.f32 %v8888_v48, %v3817_v27  ;;  %v8239_v16 = vadd.f32 %v8238_v46, %v8237_v0  ;;  %v10605_v49 = vmax.f32 %v4203_v37, 0.0 }
 0x35d   : > { %v8240_v9 = vpop.f32.mrf.mxu1  ;;  %v4111_v52 = vld [vmem:[#allocation3 + $0x20] ss:$2 sm:$0xff]  ;;  %v4127_v24 = vld [vmem:[#allocation3 + $0x21] ss:$2 sm:$0xff] }
 0x35e   : > { %4084 = vst [vmem:[#allocation3 + $0x38] sm:$0xff] %v3978_v63  ;;  %v3822_v21 = vadd.f32 %v8239_v16, %v10425_v34  ;;  %4241 = vst [vmem:[#allocation8 + $0x11] sm:$0xff] %v10605_v49  ;;  %v4323_v29 = vpack.c.bf16 %v10605_v49, %v4257_v30  ;;  %v9209_v34 = vld [vmem:[%s11505_s3 + $0xb8] sm:$0xff]   ;;  %v4173_v22 = vmax.f32 %v4111_v52, %v4127_v24 }
 0x35f   : > { %v8241_v26 = vpop.f32.mrf.mxu1 }
 0x360   : > { %v3983_v17 = vadd.f32 %v3982_v3, %v3822_v21  ;;  %v8242_v42 = vadd.f32 %v8241_v26, %v8240_v9  ;;  %4966 = vmatprep.mubr.bf16.mxu1 %v4323_v29  ;;  %v9212_v3 = vld [vmem:[%s11505_s3 + $0xe8] sm:$0xff]   ;;  %v9214_v29 = vld [vmem:[%s11505_s3 + $0xe0] sm:$0xff]  }
 0x361   : > { %v8243_v6 = vpop.f32.mrf.mxu1  ;;  %v9213_v21 = vld [vmem:[%s11505_s3 + $0xa8] sm:$0xff]  }
 0x362   : > { %4085 = vst [vmem:[#allocation3 + $0x40] sm:$0xff] %v3983_v17  ;;  %v3825_v48 = vadd.f32 %v8242_v42, %v10441_v50 }
 0x363   : > { %v8244_v57 = vpop.f32.mrf.mxu1 }
 0x364   : > { %v3986_v55 = vadd.f32 %v3985_v41, %v3825_v48  ;;  %v8245_v61 = vadd.f32 %v8244_v57, %v8243_v6  ;;  %v9215_v48 = vld [vmem:[%s11505_s3 + $0xa0] sm:$0xff]   ;;  %v9216_v41 = vld [vmem:[%s11505_s3 + $0xd8] sm:$0xff]  }
 0x365   : > { %v4143_v56 = vld [vmem:[#allocation3 + $0x30] ss:$2 sm:$0xff]  ;;  %v4159_v40 = vld [vmem:[#allocation3 + $0x31] ss:$2 sm:$0xff]  ;;  %v8246_v45 = vpop.f32.mrf.mxu1 }
 0x366   : > { %v10614_v5 = vld [vmem:[#allocation8 + $0x10] sm:$0xff]  ;;  %v4181_v58 = vmax.f32 %v4143_v56, %v4159_v40  ;;  %4086 = vst [vmem:[#allocation3 + $0x48] sm:$0xff] %v3986_v55  ;;  %v3830_v50 = vadd.f32 %v8245_v61, %v10459_v44  ;;  %v9217_v40 = vld [vmem:[%s11505_s3 + $0x98] sm:$0xff]  }
 0x367   : > { %v4322_v47 = vpack.c.bf16 %v10614_v5, %v10472_v31  ;;  %v8247_v1 = vpop.f32.mrf.mxu1  ;;  %v9211_v44 = vld [vmem:[%s11505_s3 + $0xb0] sm:$0xff]  }
 0x368   : > { %v3991_v51 = vadd.f32 %v8891_v60, %v3830_v50  ;;  %v8248_v2 = vadd.f32 %v8247_v1, %v8246_v45  ;;  %v4189_v0 = vmax.f32 %v4173_v22, %v4181_v58  ;;  %v3998_v60 = vpop.f32.mrf.mxu0  ;;  %v10649_v56 = vld [vmem:[#allocation8 + $0x12] sm:$0xff] }
 0x369   : > { %4967 = vmatmul.mubr.bf16.vlgmr.msra.gmra.mxu1 %v4322_v47  ;;  %v8249_v27 = vpop.f32.mrf.mxu1 }
 0x36a   : > { %8374 = vmatpush3.bf16.msra.mxu1 %v9209_v34  ;;  %4087 = vst [vmem:[#allocation3 + $0x50] sm:$0xff] %v3991_v51  ;;  %v3833_v31 = vadd.f32 %v8248_v2, %v10470_v19  ;;  %v4204_v37 = vadd.f32 %v10601_v39, %v4189_v0  ;;  %v9219_v2 = vld [vmem:[%s11505_s3 + $0xd0] sm:$0xff]  }
 0x36b   : > { %8375 = vmatprep.subr.bf16.mxu1 %v9210_v33  ;;  %v8250_v46 = vpop.f32.mrf.mxu1 }
 0x36c   : > { %v3994_v30 = vadd.f32 %v8892_v13, %v3833_v31  ;;  %v8251_v63 = vadd.f32 %v8250_v46, %v8249_v27  ;;  %v10632_v16 = vmax.f32 %v4204_v37, 0.0  ;;  %v8896_v13 = vpop.f32.mrf.mxu0 }
 0x36d   : > { %v8252_v9 = vpop.f32.mrf.mxu1  ;;  %v4113_v24 = vld [vmem:[#allocation3 + $0x40] ss:$2 sm:$0xff]  ;;  %v4129_v57 = vld [vmem:[#allocation3 + $0x41] ss:$2 sm:$0xff] }
 0x36e   : > { %8376 = vmatpush3.bf16.msra.mxu1 %v9211_v44  ;;  %4088 = vst [vmem:[#allocation3 + $0x58] sm:$0xff] %v3994_v30  ;;  %v3838_v19 = vadd.f32 %v8251_v63, %v10486_v20  ;;  %4242 = vst [vmem:[#allocation8 + $0x21] sm:$0xff] %v10632_v16  ;;  %v4001_v52 = vpop.f32.mrf.mxu0  ;;  %v4174_v50 = vmax.f32 %v4113_v24, %v4129_v57  ;;  %v4326_v44 = vpack.c.bf16 %v10632_v16, %v10605_v49  ;;  %v9220_v30 = vld [vmem:[%s11505_s3 + $0x90] sm:$0xff]  }
 0x36f   : > { %8377 = vmatprep.subr.bf16.mxu1 %v9212_v3  ;;  %v8253_v26 = vpop.f32.mrf.mxu1 }
 0x370   : > { %v3999_v17 = vadd.f32 %v3998_v60, %v3838_v19  ;;  %v8254_v42 = vadd.f32 %v8253_v26, %v8252_v9  ;;  %v10664_v0 = vpop.f32.mrf.mxu0  ;;  %v9224_v19 = vld [vmem:[%s11505_s3 + $0x228] sm:$0xff]  }
 0x371   : > { %v8255_v6 = vpop.f32.mrf.mxu1 }
 0x372   : > { %8378 = vmatpush3.bf16.msra.mxu1 %v9213_v21  ;;  %4089 = vst [vmem:[#allocation3 + $0x60] sm:$0xff] %v3999_v17  ;;  %v3841_v20 = vadd.f32 %v8254_v42, %v10496_v38  ;;  %v4014_v9 = vpop.f32.mrf.mxu0 }
 0x373   : > { %8379 = vmatprep.subr.bf16.mxu1 %v9214_v29  ;;  %v8256_v55 = vpop.f32.mrf.mxu1 }
 0x374   : > { %v4002_v61 = vadd.f32 %v4001_v52, %v3841_v20  ;;  %v8257_v34 = vadd.f32 %v8256_v55, %v8255_v6 }
 0x375   : > { %v4145_v45 = vld [vmem:[#allocation3 + $0x50] ss:$2 sm:$0xff]  ;;  %v4161_v22 = vld [vmem:[#allocation3 + $0x51] ss:$2 sm:$0xff]  ;;  %v8258_v38 = vpop.f32.mrf.mxu1  ;;  %v10654_v58 = vld [vmem:[#allocation8 + $0x22] sm:$0xff] }
 0x376   : > { %8380 = vmatpush3.bf16.msra.mxu1 %v9215_v48  ;;  %v4182_v47 = vmax.f32 %v4145_v45, %v4161_v22  ;;  %4090 = vst [vmem:[#allocation3 + $0x68] sm:$0xff] %v4002_v61  ;;  %v3846_v33 = vadd.f32 %v8257_v34, %v10508_v14  ;;  %v4327_v1 = vpack.c.bf16 %v10654_v58, %v10649_v56  ;;  %v10659_v51 = vld [vmem:[#allocation8 + $0x20] sm:$0xff]  ;;  %v9221_v14 = vld [vmem:[%s11505_s3 + $0x230] sm:$0xff]   ;;  %v8900_v48 = vpop.f32.mrf.mxu0  ;;  %v9228_v34 = vld [vmem:[%s11505_s3 + $0x1f8] sm:$0xff]  }
 0x377   : > { %8381 = vmatprep.subr.bf16.mxu1 %v9216_v41  ;;  %v8259_v27 = vpop.f32.mrf.mxu1  ;;  %v4325_v31 = vpack.c.bf16 %v10659_v51, %v10614_v5  ;;  %v9227_v41 = vld [vmem:[%s11505_s3 + $0x220] sm:$0xff]   ;;  %v9230_v22 = vld [vmem:[%s11505_s3 + $0x218] sm:$0xff]  }
 0x378   : > { %v4007_v37 = vadd.f32 %v10622_v18, %v3846_v33  ;;  %v8260_v3 = vadd.f32 %v8259_v27, %v8258_v38  ;;  %5096 = vmatprep.mubr.bf16.mxu0 %v4327_v1  ;;  %v4190_v60 = vmax.f32 %v4174_v50, %v4182_v47  ;;  %v9222_v18 = vld [vmem:[%s11505_s3 + $0xc8] sm:$0xff]  }
 0x379   : > { %v8261_v46 = vpop.f32.mrf.mxu1  ;;  %5097 = vmatmul.mubr.bf16.vlgmr.msra.gmra.mxu0 %v4326_v44 }
 0x37a   : > { %8382 = vmatpush3.bf16.msra.mxu1 %v9217_v40  ;;  %4091 = vst [vmem:[#allocation3 + $0x70] sm:$0xff] %v4007_v37  ;;  %v3849_v49 = vadd.f32 %v8260_v3, %v10512_v15  ;;  %v4205_v63 = vadd.f32 %v10601_v39, %v4190_v60  ;;  %8914 = vmatpush3.bf16.msra.mxu0 %v10589_v54  ;;  %v9223_v54 = vld [vmem:[%s11505_s3 + $0x88] sm:$0xff]   ;;  %v4017_v40 = vpop.f32.mrf.mxu0 }
 0x37b   : > { %8383 = vmatprep.subr.bf16.mxu1 %v9219_v2  ;;  %v8262_v21 = vpop.f32.mrf.mxu1  ;;  %8915 = vmatprep.subr.bf16.mxu0 %v9221_v14 }
 0x37c   : > { %v4010_v29 = vadd.f32 %v8896_v13, %v3849_v49  ;;  %v8263_v26 = vadd.f32 %v8262_v21, %v8261_v46  ;;  %v10686_v17 = vmax.f32 %v4205_v63, 0.0  ;;  %v9225_v13 = vld [vmem:[%s11505_s3 + $0xc0] sm:$0xff]   ;;  %v8903_v3 = vpop.f32.mrf.mxu0  ;;  %v9233_v46 = vld [vmem:[%s11505_s3 + $0x210] sm:$0xff]  }
 0x37d   : > { %v8264_v15 = vpop.f32.mrf.mxu1  ;;  %v4115_v57 = vld [vmem:[#allocation3 + $0x60] ss:$2 sm:$0xff]  ;;  %v4131_v55 = vld [vmem:[#allocation3 + $0x61] ss:$2 sm:$0xff] }
 0x37e   : > { %8384 = vmatpush3.bf16.msra.mxu1 %v9220_v30  ;;  %4092 = vst [vmem:[#allocation3 + $0x78] sm:$0xff] %v4010_v29  ;;  %v3854_v42 = vadd.f32 %v8263_v26, %v10518_v62  ;;  %4243 = vst [vmem:[#allocation8 + $0x31] sm:$0xff] %v10686_v17  ;;  %v10695_v6 = vpack.c.bf16 %v10686_v17, %v10632_v16  ;;  %8916 = vmatpush3.bf16.msra.mxu0 %v9221_v14  ;;  %v9226_v16 = vld [vmem:[%s11505_s3 + $0x80] sm:$0xff]  }
 0x37f   : > { %8385 = vmatprep.subr.bf16.mxu1 %v9222_v18  ;;  %v8265_v20 = vpop.f32.mrf.mxu1  ;;  %8917 = vmatprep.subr.bf16.mxu0 %v9224_v19  ;;  %v4175_v47 = vmax.f32 %v4115_v57, %v4131_v55 }
 0x380   : > { %v4015_v62 = vadd.f32 %v4014_v9, %v3854_v42  ;;  %v8266_v52 = vadd.f32 %v8265_v20, %v8264_v15  ;;  %4974 = vmatprep.mubr.bf16.mxu1 %v10695_v6  ;;  %v9239_v20 = vld [vmem:[%s11505_s3 + $0x200] sm:$0xff]  }
 0x381   : > { %v8267_v24 = vpop.f32.mrf.mxu1 }
 0x382   : > { %8386 = vmatpush3.bf16.msra.mxu1 %v9223_v54  ;;  %4093 = vst [vmem:[#allocation3 + $0x80] sm:$0xff] %v4015_v62  ;;  %v3857_v61 = vadd.f32 %v8266_v52, %v10522_v8  ;;  %8918 = vmatpush3.bf16.msra.mxu0 %v9224_v19  ;;  %v4030_v19 = vpop.f32.mrf.mxu0 }
 0x383   : > { %8387 = vmatprep.subr.bf16.mxu1 %v9225_v13  ;;  %v8268_v45 = vpop.f32.mrf.mxu1  ;;  %8919 = vmatprep.subr.bf16.mxu0 %v9227_v41 }
 0x384   : > { %v4018_v38 = vadd.f32 %v4017_v40, %v3857_v61  ;;  %v8269_v50 = vadd.f32 %v8268_v45, %v8267_v24 }
 0x385   : > { %v4147_v33 = vld [vmem:[#allocation3 + $0x70] ss:$2 sm:$0xff]  ;;  %v4163_v1 = vld [vmem:[#allocation3 + $0x71] ss:$2 sm:$0xff]  ;;  %v8270_v2 = vpop.f32.mrf.mxu1 }
 0x386   : > { %v10714_v8 = vld [vmem:[#allocation8 + $0x30] sm:$0xff]  ;;  %8388 = vmatpush3.bf16.msra.mxu1 %v9226_v16  ;;  %v4183_v27 = vmax.f32 %v4147_v33, %v4163_v1  ;;  %4094 = vst [vmem:[#allocation3 + $0x88] sm:$0xff] %v4018_v38  ;;  %v3862_v44 = vadd.f32 %v8269_v50, %v10528_v12  ;;  %8920 = vmatpush3.bf16.msra.mxu0 %v9227_v41 }
 0x387   : > { %v10719_v14 = vpack.c.bf16 %v10714_v8, %v10659_v51  ;;  %v4291_v37 = vld [vmem:[#allocation8 + $0x32] sm:$0xff]  ;;  %8453 = vmatprep.subr.bf16.mxu1 %v9228_v34  ;;  %v8271_v60 = vpop.f32.mrf.mxu1  ;;  %8921 = vmatprep.subr.bf16.mxu0 %v9230_v22 }
 0x388   : > { %v10725_v30 = vpack.c.bf16 %v4291_v37, %v10654_v58  ;;  %v4023_v49 = vadd.f32 %v10664_v0, %v3862_v44  ;;  %v8272_v12 = vadd.f32 %v8271_v60, %v8270_v2  ;;  %v4191_v63 = vmax.f32 %v4175_v47, %v4183_v27  ;;  %v9236_v58 = vld [vmem:[%s11505_s3 + $0x208] sm:$0xff]  }
 0x389   : > { %4975 = vmatmul.mubr.bf16.gmra.mxu1 %v10719_v14  ;;  %v8273_v18 = vpop.f32.mrf.mxu1 }
 0x38a   : > { %4095 = vst [vmem:[#allocation3 + $0x90] sm:$0xff] %v4023_v49  ;;  %v3865_v9 = vadd.f32 %v8272_v12, %v10531_v35  ;;  %v4206_v21 = vadd.f32 %v10601_v39, %v4191_v63  ;;  %8922 = vmatpush3.bf16.msra.mxu0 %v9230_v22  ;;  %v8904_v35 = vpop.f32.mrf.mxu0 }
 0x38b   : > { %v8274_v29 = vpop.f32.mrf.mxu1  ;;  %8923 = vmatprep.subr.bf16.mxu0 %v9233_v46 }
 0x38c   : > { %v4026_v26 = vadd.f32 %v8900_v48, %v3865_v9  ;;  %v8275_v0 = vadd.f32 %v8274_v29, %v8273_v18  ;;  %v4214_v15 = vmax.f32 %v4206_v21, 0.0  ;;  %v4033_v24 = vpop.f32.mrf.mxu0 }
 0x38d   : > { %v8276_v54 = vpop.f32.mrf.mxu1  ;;  %v4117_v16 = vld [vmem:[#allocation3 + $0x80] ss:$2 sm:$0xff]  ;;  %v4133_v57 = vld [vmem:[#allocation3 + $0x81] ss:$2 sm:$0xff] }
 0x38e   : > { %4096 = vst [vmem:[#allocation3 + $0x98] sm:$0xff] %v4026_v26  ;;  %v3870_v42 = vadd.f32 %v8275_v0, %v10537_v11  ;;  %4244 = vst [vmem:[#allocation8 + $0x41] sm:$0xff] %v4214_v15  ;;  %8924 = vmatpush3.bf16.msra.mxu0 %v9233_v46  ;;  %v4176_v38 = vmax.f32 %v4117_v16, %v4133_v57  ;;  %v8907_v33 = vpop.f32.mrf.mxu0  ;;  %v4335_v2 = vpack.c.bf16 %v4214_v15, %v10686_v17 }
 0x38f   : > { %v8277_v13 = vpop.f32.mrf.mxu1  ;;  %8925 = vmatprep.subr.bf16.mxu0 %v9236_v58 }
 0x390   : > { %v4031_v41 = vadd.f32 %v4030_v19, %v3870_v42  ;;  %v8278_v62 = vadd.f32 %v8277_v13, %v8276_v54  ;;  %v4046_v63 = vpop.f32.mrf.mxu0 }
 0x391   : > { %v8279_v52 = vpop.f32.mrf.mxu1 }
 0x392   : > { %4097 = vst [vmem:[#allocation3 + $0xa0] sm:$0xff] %v4031_v41  ;;  %v3873_v48 = vadd.f32 %v8278_v62, %v10540_v7  ;;  %8926 = vmatpush3.bf16.msra.mxu0 %v9236_v58  ;;  %v8908_v19 = vpop.f32.mrf.mxu0 }
 0x393   : > { %v8280_v11 = vpop.f32.mrf.mxu1  ;;  %8927 = vmatprep.subr.bf16.mxu0 %v9239_v20 }
 0x394   : > { %v4034_v55 = vadd.f32 %v4033_v24, %v3873_v48  ;;  %v8281_v61 = vadd.f32 %v8280_v11, %v8279_v52  ;;  %v4049_v54 = vpop.f32.mrf.mxu0 }
 0x395   : > { %v4149_v34 = vld [vmem:[#allocation3 + $0x90] ss:$2 sm:$0xff]  ;;  %v4165_v40 = vld [vmem:[#allocation3 + $0x91] ss:$2 sm:$0xff]  ;;  %v8282_v45 = vpop.f32.mrf.mxu1  ;;  %v10739_v22 = vld [vmem:[#allocation8 + $0x42] sm:$0xff] }
 0x396   : > { %v4184_v50 = vmax.f32 %v4149_v34, %v4165_v40  ;;  %4098 = vst [vmem:[#allocation3 + $0xa8] sm:$0xff] %v4034_v55  ;;  %v3878_v47 = vadd.f32 %v8281_v61, %v10544_v53  ;;  %v4336_v7 = vpack.c.bf16 %v10739_v22, %v4291_v37  ;;  %8928 = vmatpush3.bf16.msra.mxu0 %v9239_v20  ;;  %v10755_v41 = vld [vmem:[#allocation8 + $0x40] sm:$0xff]  ;;  %v8911_v24 = vpop.f32.mrf.mxu0 }
 0x397   : > { %v8283_v1 = vpop.f32.mrf.mxu1  ;;  %v4334_v5 = vpack.c.bf16 %v10755_v41, %v10714_v8 }
 0x398   : > { %v4039_v27 = vadd.f32 %v8903_v3, %v3878_v47  ;;  %v8284_v44 = vadd.f32 %v8283_v1, %v8282_v45  ;;  %5104 = vmatprep.mubr.bf16.mxu0 %v4336_v7  ;;  %v4192_v60 = vmax.f32 %v4176_v38, %v4184_v50  ;;  %v4062_v38 = vpop.f32.mrf.mxu0 }
 0x399   : > { %v8285_v46 = vpop.f32.mrf.mxu1  ;;  %5105 = vmatmul.mubr.bf16.gmra.mxu0 %v4335_v2 }
 0x39a   : > { %4099 = vst [vmem:[#allocation3 + $0xb0] sm:$0xff] %v4039_v27  ;;  %v3881_v49 = vadd.f32 %v8284_v44, %v10548_v28  ;;  %v4207_v12 = vadd.f32 %v10601_v39, %v4192_v60  ;;  %v8912_v44 = vpop.f32.mrf.mxu0 }
 0x39b   : > { %v8286_v53 = vpop.f32.mrf.mxu1 }
 0x39c   : > { %v4042_v18 = vadd.f32 %v8904_v35, %v3881_v49  ;;  %v8287_v37 = vadd.f32 %v8286_v53, %v8285_v46  ;;  %v10746_v9 = vmax.f32 %v4207_v12, 0.0 }
 0x39d   : > { %v8288_v21 = vpop.f32.mrf.mxu1  ;;  %v4119_v42 = vld [vmem:[#allocation3 + $0xa0] ss:$2 sm:$0xff]  ;;  %v4135_v35 = vld [vmem:[#allocation3 + $0xa1] ss:$2 sm:$0xff] }
 0x39e   : > { %4100 = vst [vmem:[#allocation3 + $0xb8] sm:$0xff] %v4042_v18  ;;  %v3886_v17 = vadd.f32 %v8287_v37, %v10552_v10  ;;  %4245 = vst [vmem:[#allocation8 + $0x51] sm:$0xff] %v10746_v9  ;;  %v10751_v3 = vpack.c.bf16 %v10746_v9, %v4214_v15  ;;  %v4177_v16 = vmax.f32 %v4119_v42, %v4135_v35 }
 0x39f   : > { %v8289_v29 = vpop.f32.mrf.mxu1 }
 0x3a0   : > { %v4047_v28 = vadd.f32 %v4046_v63, %v3886_v17  ;;  %v8290_v58 = vadd.f32 %v8289_v29, %v8288_v21  ;;  %4982 = vmatprep.mubr.bf16.mxu1 %v10751_v3  ;;  %v4065_v63 = vpop.f32.mrf.mxu0 }
 0x3a1   : > { %v8291_v26 = vpop.f32.mrf.mxu1 }
 0x3a2   : > { %4101 = vst [vmem:[#allocation3 + $0xc0] sm:$0xff] %v4047_v28  ;;  %v3889_v0 = vadd.f32 %v8290_v58, %v10556_v23 }
 0x3a3   : > { %v8292_v13 = vpop.f32.mrf.mxu1 }
 0x3a4   : > { %v4050_v10 = vadd.f32 %v4049_v54, %v3889_v0  ;;  %v8293_v20 = vadd.f32 %v8292_v13, %v8291_v26 }
 0x3a5   : > { %v4151_v15 = vld [vmem:[#allocation3 + $0xb0] ss:$2 sm:$0xff]  ;;  %v4167_v62 = vld [vmem:[#allocation3 + $0xb1] ss:$2 sm:$0xff]  ;;  %v8294_v52 = vpop.f32.mrf.mxu1 }
 0x3a6   : > { %v10757_v48 = vld [vmem:[#allocation8 + $0x50] sm:$0xff]  ;;  %v4185_v57 = vmax.f32 %v4151_v15, %v4167_v62  ;;  %4102 = vst [vmem:[#allocation3 + $0xc8] sm:$0xff] %v4050_v10  ;;  %v3894_v11 = vadd.f32 %v8293_v20, %v10560_v32 }
 0x3a7   : > { %v10762_v23 = vpack.c.bf16 %v10757_v48, %v10755_v41  ;;  %v8295_v55 = vpop.f32.mrf.mxu1 }
 0x3a8   : > { %v4055_v61 = vadd.f32 %v8907_v33, %v3894_v11  ;;  %v8296_v34 = vadd.f32 %v8295_v55, %v8294_v52  ;;  %v4193_v40 = vmax.f32 %v4177_v16, %v4185_v57 }
 0x3a9   : > { %4983 = vmatmul.mubr.bf16.gmra.mxu1 %v10762_v23  ;;  %v8297_v45 = vpop.f32.mrf.mxu1 }
 0x3aa   : > { %4103 = vst [vmem:[#allocation3 + $0xd0] sm:$0xff] %v4055_v61  ;;  %v3897_v50 = vadd.f32 %v8296_v34, %v10564_v4  ;;  %v4208_v47 = vadd.f32 %v10601_v39, %v4193_v40 }
 0x3ab   : > { %v8298_v7 = vpop.f32.mrf.mxu1 }
 0x3ac   : > { %v4058_v1 = vadd.f32 %v8908_v19, %v3897_v50  ;;  %v8299_v32 = vadd.f32 %v8298_v7, %v8297_v45  ;;  %v4216_v2 = vmax.f32 %v4208_v47, 0.0  ;;  %v10769_v19 = vld [vmem:[#allocation8 + $0x52] sm:$0xff]  ;;  %v4265_v50 = vld [vmem:[#allocation8 + $0x2] sm:$0xff] }
 0x3ad   : > { %v8300_v27 = vpop.f32.mrf.mxu1  ;;  %v4121_v53 = vld [vmem:[#allocation3 + $0xc0] ss:$2 sm:$0xff]  ;;  %v4137_v18 = vld [vmem:[#allocation3 + $0xc1] ss:$2 sm:$0xff]  ;;  %v9229_v7 = vld [vmem:[%s11505_s3 + $0x1b8] sm:$0xff]  }
 0x3ae   : > { %4104 = vst [vmem:[#allocation3 + $0xd8] sm:$0xff] %v4058_v1  ;;  %v3902_v33 = vadd.f32 %v8299_v32, %v10568_v43  ;;  %4246 = vst [vmem:[#allocation8 + $0x61] sm:$0xff] %v4216_v2  ;;  %v4178_v26 = vmax.f32 %v4121_v53, %v4137_v18  ;;  %v4344_v35 = vpack.c.bf16 %v4216_v2, %v10746_v9  ;;  %v9231_v32 = vld [vmem:[%s11505_s3 + $0x1f0] sm:$0xff]   ;;  %v9245_v18 = vld [vmem:[%s11505_s3 + $0x188] sm:$0xff]  }
 0x3af   : > { %v8301_v60 = vpop.f32.mrf.mxu1  ;;  %v4324_v1 = vpack.c.bf16 %v10649_v56, %v4265_v50  ;;  %v9234_v56 = vld [vmem:[%s11505_s3 + $0x1e8] sm:$0xff]   ;;  %v4321_v53 = vld [vmem:[#allocation8 + $0x92] sm:$0xff] }
 0x3b0   : > { %v8302_v46 = vadd.f32 %v8301_v60, %v8300_v27  ;;  %v4063_v49 = vadd.f32 %v4062_v38, %v3902_v33  ;;  %v9237_v27 = vld [vmem:[%s11505_s3 + $0x1e0] sm:$0xff]   ;;  %v9240_v60 = vld [vmem:[%s11505_s3 + $0x1d8] sm:$0xff]   ;;  %v9278_v50 = vld [vmem:[%s11506_s4 + $0x88] sm:$0xff]  }
 0x3b1   : > { %v8303_v12 = vpop.f32.mrf.mxu1  ;;  %v9238_v33 = vld [vmem:[%s11505_s3 + $0x1a0] sm:$0xff]  }
 0x3b2   : > { %4105 = vst [vmem:[#allocation3 + $0xe0] sm:$0xff] %v4063_v49  ;;  %v3905_v4 = vadd.f32 %v8302_v46, %v10575_v25  ;;  %v9241_v46 = vld [vmem:[%s11505_s3 + $0x198] sm:$0xff]   ;;  %v4342_v49 = vpack.c.bf16 %v10769_v19, %v10739_v22  ;;  %v9244_v22 = vld [vmem:[%s11505_s3 + $0x1c8] sm:$0xff]  }
 0x3b3   : > { %v8304_v37 = vpop.f32.mrf.mxu1 }
 0x3b4   : > { %v8305_v21 = vadd.f32 %v8304_v37, %v8303_v12  ;;  %v4066_v17 = vadd.f32 %v4065_v63, %v3905_v4  ;;  %v9242_v12 = vld [vmem:[%s11505_s3 + $0x1d0] sm:$0xff]   ;;  %v9246_v37 = vld [vmem:[%s11505_s3 + $0x1c0] sm:$0xff]  }
 0x3b5   : > { %v4153_v29 = vld [vmem:[#allocation3 + $0xd0] ss:$2 sm:$0xff]  ;;  %v4169_v28 = vld [vmem:[#allocation3 + $0xd1] ss:$2 sm:$0xff]  ;;  %v8306_v58 = vpop.f32.mrf.mxu1  ;;  %v10771_v43 = vld [vmem:[#allocation8 + $0x62] sm:$0xff] }
 0x3b6   : > { %v4186_v0 = vmax.f32 %v4153_v29, %v4169_v28  ;;  %v3910_v54 = vadd.f32 %v8305_v21, %v10579_v59  ;;  %4106 = vst [vmem:[#allocation3 + $0xe8] sm:$0xff] %v4066_v17  ;;  %v4345_v25 = vpack.c.bf16 %v10771_v43, %v10769_v19  ;;  %v9243_v4 = vld [vmem:[%s11505_s3 + $0x190] sm:$0xff]   ;;  %v9247_v17 = vld [vmem:[%s11505_s3 + $0x180] sm:$0xff]  }
 0x3b7   : > { %v8307_v42 = vpop.f32.mrf.mxu1  ;;  %v4313_v19 = vld [vmem:[#allocation8 + $0x91] sm:$0xff] }
 0x3b8   : > { %v4071_v13 = vadd.f32 %v8911_v24, %v3910_v54  ;;  %v8308_v10 = vadd.f32 %v8307_v42, %v8306_v58  ;;  %5112 = vmatprep.mubr.bf16.mxu0 %v4345_v25  ;;  %v4194_v20 = vmax.f32 %v4178_v26, %v4186_v0  ;;  %v4255_v24 = vld [vmem:[#allocation8 + $0x60] sm:$0xff]  ;;  %v10854_v28 = vld [vmem:[#allocation7] sm:$0xff]  ;;  %v9253_v26 = vld [vmem:[%s11506_s4 + $0xf8] sm:$0xff]  }
 0x3b9   : > { %5113 = vmatmul.mubr.bf16.gmra.mxu0 %v4344_v35  ;;  %11601 = vst [vmem:[#allocation18_spill] sm:$0xff] %v10854_v28  ;;  %v9251_v58 = vld [vmem:[%s11506_s4 + $0x30] sm:$0xff]   ;;  %v9254_v0 = vld [vmem:[%s11506_s4 + $0x28] sm:$0xff]   ;;  %v9255_v54 = vld [vmem:[%s11506_s4 + $0xb8] sm:$0xff]   ;;  %8533 = vmatprep.subr.bf16.mxu0 %v9253_v26 }
 0x3ba   : > { %4107 = vst [vmem:[#allocation3 + $0xf0] sm:$0xff] %v4071_v13  ;;  %v3913_v15 = vadd.f32 %v8308_v10, %v10583_v36  ;;  %v4209_v62 = vadd.f32 %v10601_v39, %v4194_v20  ;;  %v9256_v25 = vld [vmem:[%s11506_s4 + $0x60] sm:$0xff]   ;;  %v9257_v42 = vld [vmem:[%s11506_s4 + $0xf0] sm:$0xff]   ;;  %v9260_v10 = vld [vmem:[%s11506_s4 + $0x58] sm:$0xff]  }
 0x3bb   : > { %v9258_v35 = vld [vmem:[%s11506_s4 + $0x20] sm:$0xff]   ;;  %v9259_v13 = vld [vmem:[%s11506_s4 + $0xb0] sm:$0xff]   ;;  %v9261_v20 = vld [vmem:[%s11506_s4 + $0xe8] sm:$0xff]  }
 0x3bc   : > { %v4074_v52 = vadd.f32 %v8912_v44, %v3913_v15  ;;  %v4217_v16 = vmax.f32 %v4209_v62, 0.0  ;;  %v4343_v44 = vpack.c.bf16 %v4255_v24, %v10757_v48  ;;  %v9262_v15 = vld [vmem:[%s11506_s4 + $0x18] sm:$0xff]   ;;  %v9263_v62 = vld [vmem:[%s11506_s4 + $0xa8] sm:$0xff]  }
 0x3bd   : > { %v4123_v57 = vld [vmem:[#allocation3 + $0xe0] ss:$2 sm:$0xff]  ;;  %v4139_v9 = vld [vmem:[#allocation3 + $0xe1] ss:$2 sm:$0xff] }
 0x3be   : > { %4108 = vst [vmem:[#allocation3 + $0xf8] sm:$0xff] %v4074_v52  ;;  %4247 = vst [vmem:[#allocation8 + $0x71] sm:$0xff] %v4217_v16  ;;  %v10779_v59 = vpack.c.bf16 %v4217_v16, %v4216_v2  ;;  %v4179_v34 = vmax.f32 %v4123_v57, %v4139_v9  ;;  %v9235_v2 = vld [vmem:[%s11505_s3 + $0x1a8] sm:$0xff]   ;;  %v9264_v52 = vld [vmem:[%s11506_s4 + $0x50] sm:$0xff]  }
 0x3bf   : > { %v9267_v57 = vld [vmem:[%s11506_s4 + $0xa0] sm:$0xff]   ;;  %v9268_v9 = vld [vmem:[%s11506_s4 + $0x48] sm:$0xff]  }
 0x3c0   : > { %4990 = vmatprep.mubr.bf16.mxu1 %v10779_v59 }
 0x3c5   : > { %v4155_v11 = vld [vmem:[#allocation3 + $0xf0] ss:$2 sm:$0xff]  ;;  %v4171_v55 = vld [vmem:[#allocation3 + $0xf1] ss:$2 sm:$0xff] }
 0x3c6   : > { %v4256_v61 = vld [vmem:[#allocation8 + $0x70] sm:$0xff]  ;;  %v4187_v40 = vmax.f32 %v4155_v11, %v4171_v55  ;;  %v9270_v11 = vld [vmem:[%s11506_s4 + $0x8] sm:$0xff]   ;;  %v9271_v55 = vld [vmem:[%s11506_s4 + $0x98] sm:$0xff]  }
 0x3c7   : > { %v10782_v45 = vpack.c.bf16 %v4256_v61, %v4255_v24  ;;  %v4295_v51 = vld [vmem:[#allocation8 + $0x72] sm:$0xff] }
 0x3c8   : > { %v4195_v36 = vmax.f32 %v4179_v34, %v4187_v40  ;;  %v4348_v63 = vpack.c.bf16 %v4295_v51, %v10771_v43  ;;  %v9252_v43 = vld [vmem:[%s11506_s4 + $0x68] sm:$0xff]   ;;  %v9269_v24 = vld [vmem:[%s11506_s4 + $0xd8] sm:$0xff]   ;;  %v9273_v34 = vld [vmem:[%s11506_s4 + $0xd0] sm:$0xff]  }
 0x3c9   : > { %4991 = vmatmul.mubr.bf16.gmra.mxu1 %v10782_v45  ;;  %v9274_v40 = vld [vmem:[%s11506_s4] sm:$0xff]  }
 0x3ca   : > { %5031 = vmatprep.mubr.bf16.mxu1 %v4325_v31  ;;  %v4210_v38 = vadd.f32 %v10601_v39, %v4195_v36  ;;  %v9232_v39 = vld [vmem:[%s11505_s3 + $0x1b0] sm:$0xff]   ;;  %v9276_v36 = vld [vmem:[%s11506_s4 + $0xc8] sm:$0xff]  }
 0x3cc   : > { %v10789_v47 = vmax.f32 %v4210_v38, 0.0  ;;  %v9277_v38 = vld [vmem:[%s11506_s4 + $0x178] sm:$0xff]  }
 0x3ce   : > { %4248 = vst [vmem:[#allocation8 + $0x81] sm:$0xff] %v10789_v47  ;;  %v4353_v41 = vpack.c.bf16 %v10789_v47, %v4217_v16  ;;  %v4356_v29 = vpack.c.bf16 %v4313_v19, %v10789_v47  ;;  %v9265_v16 = vld [vmem:[%s11506_s4 + $0xe0] sm:$0xff]  }
 0x3cf   : > { %v9280_v47 = vld [vmem:[%s11506_s4 + $0xc0] sm:$0xff]  }
 0x3d1   : > { %5032 = vmatmul.mubr.bf16.vlgmr.msra.gmra.mxu1 %v4324_v1 }
 0x3d2   : > { %8454 = vmatpush3.bf16.msra.mxu1 %v9229_v7  ;;  %5039 = vmatprep.mubr.bf16.mxu1 %v4334_v5  ;;  %v9282_v7 = vld [vmem:[%s11506_s4 + $0x80] sm:$0xff]  }
 0x3d3   : > { %8455 = vmatprep.subr.bf16.mxu1 %v9231_v32  ;;  %v9285_v32 = vld [vmem:[%s11506_s4 + $0x1f8] sm:$0xff]  }
 0x3d5   : > { %v4296_v31 = vld [vmem:[#allocation8 + $0x82] sm:$0xff] }
 0x3d6   : > { %8456 = vmatpush3.bf16.msra.mxu1 %v9232_v39  ;;  %v4354_v8 = vpack.c.bf16 %v4296_v31, %v4295_v51  ;;  %v4280_v48 = vld [vmem:[#allocation8 + $0x80] sm:$0xff]  ;;  %v4357_v21 = vpack.c.bf16 %v4321_v53, %v4296_v31 }
 0x3d7   : > { %8457 = vmatprep.subr.bf16.mxu1 %v9234_v56 }
 0x3d8   : > { %5120 = vmatprep.mubr.bf16.mxu0 %v4354_v8 }
 0x3d9   : > { %5040 = vmatmul.mubr.bf16.gmra.mxu1 %v10725_v30  ;;  %5121 = vmatmul.mubr.bf16.gmra.mxu0 %v4353_v41 }
 0x3da   : > { %8458 = vmatpush3.bf16.msra.mxu1 %v9235_v2  ;;  %5047 = vmatprep.mubr.bf16.mxu1 %v4343_v44 }
 0x3db   : > { %8929 = vmatprep.mubr.bf16.mxu0 %v10725_v30  ;;  %8459 = vmatprep.subr.bf16.mxu1 %v9237_v27  ;;  %v4352_v30 = vpack.c.bf16 %v4280_v48, %v4256_v61  ;;  %v9272_v61 = vld [vmem:[%s11506_s4 + $0x40] sm:$0xff]  }
 0x3de   : > { %8460 = vmatpush3.bf16.msra.mxu1 %v9238_v33 }
 0x3df   : > { %8461 = vmatprep.subr.bf16.mxu1 %v9240_v60 }
 0x3e1   : > { %5048 = vmatmul.mubr.bf16.gmra.mxu1 %v4342_v49  ;;  %8930 = vmatmul.mubr.bf16.vlgmr.msra.gmra.mxu0 %v4342_v49 }
 0x3e2   : > { %8462 = vmatpush3.bf16.msra.mxu1 %v9241_v46  ;;  %5055 = vmatprep.mubr.bf16.mxu1 %v4352_v30 }
 0x3e3   : > { %8933 = vmatprep.mubr.bf16.mxu0 %v4348_v63  ;;  %8463 = vmatprep.subr.bf16.mxu1 %v9242_v12 }
 0x3e4   : > { %8534 = vmatpush3.bf16.msra.mxu0 %v9255_v54 }
 0x3e5   : > { %8535 = vmatprep.subr.bf16.mxu0 %v9257_v42 }
 0x3e6   : > { %8464 = vmatpush3.bf16.msra.mxu1 %v9243_v4 }
 0x3e7   : > { %8465 = vmatprep.subr.bf16.mxu1 %v9244_v22 }
 0x3e8   : > { %8536 = vmatpush3.bf16.msra.mxu0 %v9259_v13 }
 0x3e9   : > { %5056 = vmatmul.mubr.bf16.gmra.mxu1 %v4348_v63  ;;  %8934 = vmatmul.mubr.bf16.gmra.mxu0 %v4357_v21 }
 0x3ea   : > { %8466 = vmatpush3.bf16.msra.mxu1 %v9245_v18  ;;  %5161 = vmatprep.mubr.bf16.mxu1 %v10695_v6  ;;  %v4355_v6 = vpack.c.bf16 %v10854_v28, %v4280_v48 }
 0x3eb   : > { %8467 = vmatprep.subr.bf16.mxu1 %v9246_v37  ;;  %8537 = vmatprep.subr.bf16.mxu0 %v9261_v20 }
 0x3ec   : > { %8538 = vmatpush3.bf16.msra.mxu0 %v9263_v62 }
 0x3ed   : > { %8539 = vmatprep.subr.bf16.mxu0 %v9265_v16 }
 0x3ee   : > { %8468 = vmatpush3.bf16.msra.mxu1 %v9247_v17 }
 0x3f0   : > { %8540 = vmatpush3.bf16.msra.mxu0 %v9267_v57 }
 0x3f1   : > { %5162 = vmatmul.mubr.bf16.vlgmr.msra.gmra.mxu1 %v10719_v14  ;;  %v9248_v14 = vld [vmem:[%s11506_s4 + $0x78] sm:$0xff]   ;;  %8541 = vmatprep.subr.bf16.mxu0 %v9269_v24 }
 0x3f2   : > { %5169 = vmatprep.mubr.bf16.mxu1 %v10751_v3  ;;  %v9249_v3 = vld [vmem:[%s11506_s4 + $0x38] sm:$0xff]   ;;  %8505 = vmatprep.subr.bf16.mxu1 %v9248_v14 }
 0x3f3   : > { %8506 = vmatpush3.bf16.msra.mxu1 %v9249_v3 }
 0x3f4   : > { %8542 = vmatpush3.bf16.msra.mxu0 %v9271_v55 }
 0x3f5   : > { %8543 = vmatprep.subr.bf16.mxu0 %v9273_v34 }
 0x3f9   : > { %5170 = vmatmul.mubr.bf16.gmra.mxu1 %v10762_v23  ;;  %v9250_v23 = vld [vmem:[%s11506_s4 + $0x70] sm:$0xff]  }
 0x3fa   : > { %5177 = vmatprep.mubr.bf16.mxu1 %v10779_v59  ;;  %8507 = vmatprep.subr.bf16.mxu1 %v9250_v23  ;;  %v9266_v59 = vld [vmem:[%s11506_s4 + $0x10] sm:$0xff]  }
 0x3fb   : > { %8508 = vmatpush3.bf16.msra.mxu1 %v9251_v58 }
 0x3fc   : > { %8509 = vmatprep.subr.bf16.mxu1 %v9252_v43 }
 0x3ff   : > { %8510 = vmatpush3.bf16.msra.mxu1 %v9254_v0 }
 0x400   : > { %8511 = vmatprep.subr.bf16.mxu1 %v9256_v25 }
 0x401   : > { %5178 = vmatmul.mubr.bf16.gmra.mxu1 %v10782_v45  ;;  %v9275_v45 = vld [vmem:[%s11506_s4 + $0x90] sm:$0xff]  }
 0x402   : > { %5185 = vmatprep.mubr.bf16.mxu1 %v4356_v29  ;;  %8544 = vmatpush3.bf16.msra.mxu0 %v9275_v45 }
 0x403   : > { %8512 = vmatpush3.bf16.msra.mxu1 %v9258_v35  ;;  %8545 = vmatprep.subr.bf16.mxu0 %v9276_v36 }
 0x404   : > { %8513 = vmatprep.subr.bf16.mxu1 %v9260_v10 }
 0x406   : > { %8546 = vmatpush3.bf16.msra.mxu0 %v9278_v50 }
 0x407   : > { %8514 = vmatpush3.bf16.msra.mxu1 %v9262_v15  ;;  %8547 = vmatprep.subr.bf16.mxu0 %v9280_v47 }
 0x408   : > { %8515 = vmatprep.subr.bf16.mxu1 %v9264_v52 }
 0x409   : > { %5186 = vmatmul.mubr.bf16.gmra.mxu1 %v4355_v6 }
 0x40a   : > { %8548 = vmatpush3.bf16.msra.mxu0 %v9282_v7 }
 0x40b   : > { %8516 = vmatpush3.bf16.msra.mxu1 %v9266_v59  ;;  %8589 = vmatprep.subr.bf16.mxu0 %v9285_v32 }
 0x40c   : > { %8517 = vmatprep.subr.bf16.mxu1 %v9268_v9 }
 0x40f   : > { %8518 = vmatpush3.bf16.msra.mxu1 %v9270_v11 }
 0x410   : > { %8519 = vmatprep.subr.bf16.mxu1 %v9272_v61 }
 0x413   : > { %8520 = vmatpush3.bf16.msra.mxu1 %v9274_v40 }
 0x414   : > { %8561 = vmatprep.subr.bf16.mxu1 %v9277_v38 }
 0x429   : > { %v8349_v1 = vpop.f32.mrf.mxu1 }
 0x42b   : > { %v8350_v5 = vpop.f32.mrf.mxu1 }
 0x42c   : > { %v8351_v57 = vadd.f32 %v8350_v5, %v8349_v1 }
 0x42d   : > { %v8352_v39 = vpop.f32.mrf.mxu1 }
 0x42f   : > { %v8353_v56 = vpop.f32.mrf.mxu1 }
 0x430   : > { %v8354_v34 = vadd.f32 %v8353_v56, %v8352_v39 }
 0x439   : > { %v8429_v2 = vpop.f32.mrf.mxu0 }
 0x43b   : > { %v8430_v41 = vpop.f32.mrf.mxu0 }
 0x43c   : > { %v8431_v40 = vadd.f32 %v8430_v41, %v8429_v2 }
 0x43d   : > { %v8432_v33 = vpop.f32.mrf.mxu0 }
 0x43f   : > { %v8433_v46 = vpop.f32.mrf.mxu0 }
 0x449   : > { %v8355_v51 = vpop.f32.mrf.mxu1 }
 0x44b   : > { %v8356_v31 = vpop.f32.mrf.mxu1 }
 0x44c   : > { %v8357_v32 = vadd.f32 %v8356_v31, %v8355_v51 }
 0x44d   : > { %v10959_v8 = vpop.f32.mrf.mxu1 }
 0x44f   : > { %v10961_v27 = vpop.f32.mrf.mxu1 }
 0x450   : > { %v8360_v56 = vadd.f32 %v10961_v27, %v10959_v8 }
 0x459   : > { %v8435_v48 = vpop.f32.mrf.mxu0 }
 0x45b   : > { %v8436_v12 = vpop.f32.mrf.mxu0 }
 0x45d   : > { %v10973_v4 = vpop.f32.mrf.mxu0 }
 0x45f   : > { %v10979_v18 = vpop.f32.mrf.mxu0 }
 0x469   : > { %v10963_v44 = vpop.f32.mrf.mxu1 }
 0x46b   : > { %v10965_v60 = vpop.f32.mrf.mxu1 }
 0x46d   : > { %v10967_v49 = vpop.f32.mrf.mxu1 }
 0x46f   : > { %v10969_v30 = vpop.f32.mrf.mxu1 }
 0x479   : > { %v10983_v21 = vpop.f32.mrf.mxu0 }
 0x47b   : > { %v10985_v29 = vpop.f32.mrf.mxu0 }
 0x47d   : > { %v10987_v3 = vpop.f32.mrf.mxu0 }
 0x47f   : > { %v10989_v43 = vpop.f32.mrf.mxu0 }
 0x489   : > { %v10971_v63 = vpop.f32.mrf.mxu1 }
 0x48b   : > { %v10975_v22 = vpop.f32.mrf.mxu1 }
 0x48d   : > { %v10977_v53 = vpop.f32.mrf.mxu1 }
 0x48f   : > { %v10981_v37 = vpop.f32.mrf.mxu1 }
 0x490   : > { %11602 = vst [vmem:[#allocation15_spill] sm:$0xff] %v10981_v37 }
 0x491   : > { %v8389_v17 = vpop.f32.mrf.mxu1 }
 0x493   : > { %v8390_v19 = vpop.f32.mrf.mxu1 }
 0x494   : > { %v8391_v16 = vadd.f32 %v8390_v19, %v8389_v17  ;;  %v8434_v17 = vadd.f32 %v8433_v46, %v8432_v33 }
 0x495   : > { %v8392_v6 = vpop.f32.mrf.mxu1 }
 0x496   : > { %v5034_v11 = vadd.f32 %v8391_v16, %v8351_v57 }
 0x497   : > { %v8393_v14 = vpop.f32.mrf.mxu1 }
 0x498   : > { %v8394_v55 = vadd.f32 %v8393_v14, %v8392_v6  ;;  %v5099_v47 = vadd.f32 %v8431_v40, %v5034_v11  ;;  %v8437_v14 = vadd.f32 %v8436_v12, %v8435_v48  ;;  %v8446_v40 = vadd.f32 %v10989_v43, %v10987_v3 }
 0x499   : > { %v8395_v23 = vpop.f32.mrf.mxu1  ;;  %v10991_v0 = vpop.f32.mrf.mxu0 }
 0x49a   : > { %v5037_v50 = vadd.f32 %v8394_v55, %v8354_v34 }
 0x49b   : > { %v8396_v58 = vpop.f32.mrf.mxu1  ;;  %v10993_v42 = vpop.f32.mrf.mxu0 }
 0x49c   : > { %v8397_v45 = vadd.f32 %v8396_v58, %v8395_v23  ;;  %v5102_v16 = vadd.f32 %v8434_v17, %v5037_v50 }
 0x49d   : > { %v8398_v26 = vpop.f32.mrf.mxu1  ;;  %v10995_v10 = vpop.f32.mrf.mxu0 }
 0x49e   : > { %11603 = vst [vmem:[#allocation16_spill] sm:$0xff] %v10995_v10 }
 0x49f   : > { %v8399_v54 = vpop.f32.mrf.mxu1  ;;  %v10997_v62 = vpop.f32.mrf.mxu0 }
 0x4a0   : > { %11604 = vst [vmem:[#allocation17_spill] sm:$0xff] %v10997_v62  ;;  %v5042_v62 = vadd.f32 %v8397_v45, %v8357_v32  ;;  %v8400_v10 = vadd.f32 %v8399_v54, %v8398_v26  ;;  %v8440_v26 = vadd.f32 %v10979_v18, %v10973_v4  ;;  %v8443_v4 = vadd.f32 %v10985_v29, %v10983_v21 }
 0x4a1   : > { %v8401_v25 = vpop.f32.mrf.mxu1  ;;  %v8931_v9 = vpop.f32.mrf.mxu0  ;;  %v8449_v32 = vadd.f32 %v10993_v42, %v10991_v0 }
 0x4a2   : > { %v5107_v23 = vadd.f32 %v8437_v14, %v5042_v62  ;;  %v5045_v31 = vadd.f32 %v8400_v10, %v8360_v56 }
 0x4a3   : > { %v8402_v35 = vpop.f32.mrf.mxu1  ;;  %v5228_v36 = vpop.f32.mrf.mxu0 }
 0x4a4   : > { %v8403_v33 = vadd.f32 %v8402_v35, %v8401_v25  ;;  %v5110_v62 = vadd.f32 %v8440_v26, %v5045_v31  ;;  %v8366_v25 = vadd.f32 %v10969_v30, %v10967_v49  ;;  %v8369_v49 = vadd.f32 %v10975_v22, %v10971_v63 }
 0x4a5   : > { %v8404_v13 = vpop.f32.mrf.mxu1  ;;  %v8932_v1 = vpop.f32.mrf.mxu0  ;;  %v11606_v42 = vld [vmem:[#allocation16_spill] sm:$0xff] }
 0x4a7   : > { %v8405_v20 = vpop.f32.mrf.mxu1  ;;  %v5231_v41 = vpop.f32.mrf.mxu0 }
 0x4a8   : > { %v8406_v12 = vadd.f32 %v8405_v20, %v8404_v13 }
 0x4a9   : > { %v8407_v15 = vpop.f32.mrf.mxu1  ;;  %v11009_v8 = vpop.f32.mrf.mxu0 }
 0x4ab   : > { %v8408_v52 = vpop.f32.mrf.mxu1  ;;  %v5244_v11 = vpop.f32.mrf.mxu0 }
 0x4ad   : > { %v10999_v59 = vpop.f32.mrf.mxu1 }
 0x4af   : > { %v11001_v24 = vpop.f32.mrf.mxu1 }
 0x4b0   : > { %v8412_v3 = vadd.f32 %v11001_v24, %v10999_v59 }
 0x4b1   : > { %v8469_v61 = vpop.f32.mrf.mxu1 }
 0x4b3   : > { %v8470_v38 = vpop.f32.mrf.mxu1 }
 0x4b4   : > { %v8471_v7 = vadd.f32 %v8470_v38, %v8469_v61  ;;  %v8936_v38 = vpop.f32.mrf.mxu0 }
 0x4b5   : > { %v8472_v28 = vpop.f32.mrf.mxu1 }
 0x4b6   : > { %v5164_v19 = vadd.f32 %v8471_v7, %v5099_v47  ;;  %v11022_v7 = vld [vmem:[%s11510_s8] ss:$0 sm:$0xff] }
 0x4b7   : > { %v8473_v5 = vpop.f32.mrf.mxu1 }
 0x4b8   : > { %v5229_v37 = vadd.f32 %v5228_v36, %v5164_v19  ;;  %v8474_v6 = vadd.f32 %v8473_v5, %v8472_v28  ;;  %v8363_v28 = vadd.f32 %v10965_v60, %v10963_v44  ;;  %v5053_v44 = vadd.f32 %v8406_v12, %v8366_v25  ;;  %v11605_v19 = vld [vmem:[#allocation15_spill] sm:$0xff] }
 0x4b9   : > { %v8475_v39 = vpop.f32.mrf.mxu1  ;;  %v8409_v60 = vadd.f32 %v8408_v52, %v8407_v15 }
 0x4ba   : > { %5259 = vst [vmem:[#allocation4] sm:$0xff] %v5229_v37  ;;  %v5167_v2 = vadd.f32 %v8474_v6, %v5102_v16  ;;  %v5050_v37 = vadd.f32 %v8403_v33, %v8363_v28  ;;  %v5118_v50 = vadd.f32 %v8446_v40, %v5053_v44  ;;  %v5247_v6 = vpop.f32.mrf.mxu0  ;;  %v11607_v33 = vld [vmem:[#allocation17_spill] sm:$0xff] }
 0x4bb   : > { %v8476_v51 = vpop.f32.mrf.mxu1  ;;  %v5058_v52 = vadd.f32 %v8409_v60, %v8369_v49  ;;  %v9283_v49 = vld [vmem:[%s11506_s4 + $0x130] sm:$0xff]  }
 0x4bc   : > { %v5232_v46 = vadd.f32 %v5231_v41, %v5167_v2  ;;  %v8477_v58 = vadd.f32 %v8476_v51, %v8475_v39  ;;  %v5115_v34 = vadd.f32 %v8443_v4, %v5050_v37 }
 0x4bd   : > { %v8478_v57 = vpop.f32.mrf.mxu1  ;;  %v5123_v56 = vadd.f32 %v8449_v32, %v5058_v52  ;;  %v9287_v32 = vld [vmem:[%s11506_s4 + $0x1b8] sm:$0xff]  }
 0x4be   : > { %5260 = vst [vmem:[#allocation4 + $0x8] sm:$0xff] %v5232_v46  ;;  %v5172_v48 = vadd.f32 %v8477_v58, %v5107_v23  ;;  %v8452_v46 = vadd.f32 %v11607_v33, %v11606_v42  ;;  %v9296_v33 = vld [vmem:[%s11506_s4 + $0x150] sm:$0xff]  }
 0x4bf   : > { %v8479_v27 = vpop.f32.mrf.mxu1 }
 0x4c0   : > { %v5237_v54 = vadd.f32 %v8931_v9, %v5172_v48  ;;  %v8480_v10 = vadd.f32 %v8479_v27, %v8478_v57 }
 0x4c1   : > { %v8481_v35 = vpop.f32.mrf.mxu1  ;;  %v5267_v13 = vld [vmem:[#allocation4] ss:$2 sm:$0xf]  ;;  %v5275_v20 = vld [vmem:[#allocation4 + $0x1] ss:$2 sm:$0xf] }
 0x4c2   : > { %5261 = vst [vmem:[#allocation4 + $0x10] sm:$0xff] %v5237_v54  ;;  %v5175_v18 = vadd.f32 %v8480_v10, %v5110_v62  ;;  %v5298_v29 = vmax.f32 %v5267_v13, %v5275_v20 }
 0x4c3   : > { %v8482_v55 = vpop.f32.mrf.mxu1 }
 0x4c4   : > { %v5240_v61 = vadd.f32 %v8932_v1, %v5175_v18  ;;  %v8483_v9 = vadd.f32 %v8482_v55, %v8481_v35  ;;  %v8372_v1 = vadd.f32 %v11605_v19, %v10977_v53  ;;  %v5347_v35 = vld [vmem:[#allocation9 + $0x1] sm:$0xff] }
 0x4c5   : > { %v5283_v30 = vld [vmem:[#allocation4 + $0x8] ss:$2 sm:$0xf]  ;;  %v5291_v45 = vld [vmem:[#allocation4 + $0x9] ss:$2 sm:$0xf]  ;;  %v8484_v21 = vpop.f32.mrf.mxu1 }
 0x4c6   : > { %v5302_v36 = vmax.f32 %v5283_v30, %v5291_v45  ;;  %5262 = vst [vmem:[#allocation4 + $0x18] sm:$0xff] %v5240_v61  ;;  %v5180_v15 = vadd.f32 %v8483_v9, %v5115_v34  ;;  %v5061_v59 = vadd.f32 %v8412_v3, %v8372_v1  ;;  %v11608_v55 = vld [vmem:[#allocation18_spill] sm:$0xff]  ;;  %v9281_v9 = vld [vmem:[%s11506_s4 + $0x170] sm:$0xff]  }
 0x4c7   : > { %v8485_v47 = vpop.f32.mrf.mxu1  ;;  %v9279_v34 = vld [vmem:[%s11506_s4 + $0x138] sm:$0xff]   ;;  %v9288_v19 = vld [vmem:[%s11506_s4 + $0x160] sm:$0xff]   ;;  %v9289_v1 = vld [vmem:[%s11506_s4 + $0x1f0] sm:$0xff]  }
 0x4c8   : > { %v5245_v63 = vadd.f32 %v5244_v11, %v5180_v15  ;;  %v8486_v22 = vadd.f32 %v8485_v47, %v8484_v21  ;;  %v5306_v43 = vmax.f32 %v5298_v29, %v5302_v36  ;;  %v5126_v48 = vadd.f32 %v8452_v46, %v5061_v59  ;;  %v9284_v29 = vld [vmem:[%s11506_s4 + $0x168] sm:$0xff]   ;;  %v9297_v46 = vld [vmem:[%s11506_s4 + $0x1e0] sm:$0xff]  }
 0x4c9   : > { %v8487_v17 = vpop.f32.mrf.mxu1  ;;  %v5269_v14 = vld [vmem:[#allocation4 + $0x10] ss:$2 sm:$0xf]  ;;  %v5277_v39 = vld [vmem:[#allocation4 + $0x11] ss:$2 sm:$0xf] }
 0x4ca   : > { %5263 = vst [vmem:[#allocation4 + $0x20] sm:$0xff] %v5245_v63  ;;  %v5183_v5 = vadd.f32 %v8486_v22, %v5118_v50  ;;  %v5317_v16 = vadd.f32 %v11022_v7, %v5306_v43  ;;  %v5299_v53 = vmax.f32 %v5269_v14, %v5277_v39  ;;  %v5351_v36 = vld [vmem:[#allocation9 + $0x2] sm:$0xff]  ;;  %v9291_v14 = vld [vmem:[%s11506_s4 + $0x1b0] sm:$0xff]  }
 0x4cb   : > { %v8488_v2 = vpop.f32.mrf.mxu1  ;;  %v9286_v43 = vld [vmem:[%s11506_s4 + $0x128] sm:$0xff]  }
 0x4cc   : > { %v5248_v24 = vadd.f32 %v5247_v6, %v5183_v5  ;;  %v8489_v41 = vadd.f32 %v8488_v2, %v8487_v17  ;;  %v5321_v23 = vmax.f32 %v5317_v16, 0.0  ;;  %v9290_v6 = vld [vmem:[%s11506_s4 + $0x120] sm:$0xff]  }
 0x4cd   : > { %v5285_v51 = vld [vmem:[#allocation4 + $0x18] ss:$2 sm:$0xf]  ;;  %v5293_v31 = vld [vmem:[#allocation4 + $0x19] ss:$2 sm:$0xf]  ;;  %v8490_v0 = vpop.f32.mrf.mxu1 }
 0x4ce   : > { %v5303_v58 = vmax.f32 %v5285_v51, %v5293_v31  ;;  %5264 = vst [vmem:[#allocation4 + $0x28] sm:$0xff] %v5248_v24  ;;  %v5188_v57 = vadd.f32 %v8489_v41, %v5123_v56  ;;  %5339 = vst [vmem:[#allocation9 + $0x11] sm:$0xf] %v5321_v23  ;;  %v9292_v56 = vld [vmem:[%s11506_s4 + $0x158] sm:$0xff]  }
 0x4cf   : > { %v8491_v26 = vpop.f32.mrf.mxu1  ;;  %v9294_v31 = vld [vmem:[%s11506_s4 + $0x118] sm:$0xff]  }
 0x4d0   : > { %v5253_v28 = vadd.f32 %v11009_v8, %v5188_v57  ;;  %v8492_v12 = vadd.f32 %v8491_v26, %v8490_v0  ;;  %v5307_v27 = vmax.f32 %v5299_v53, %v5303_v58  ;;  %v9295_v0 = vld [vmem:[%s11506_s4 + $0x1a8] sm:$0xff]   ;;  %v9298_v53 = vld [vmem:[%s11506_s4 + $0x110] sm:$0xff]   ;;  %v9299_v58 = vld [vmem:[%s11506_s4 + $0x1a0] sm:$0xff]  }
 0x4d1   : > { %v5271_v62 = vld [vmem:[#allocation4 + $0x20] ss:$2 sm:$0xf]  ;;  %v5279_v10 = vld [vmem:[#allocation4 + $0x21] ss:$2 sm:$0xf] }
 0x4d2   : > { %5265 = vst [vmem:[#allocation4 + $0x30] sm:$0xff] %v5253_v28  ;;  %v5191_v37 = vadd.f32 %v8492_v12, %v5126_v48  ;;  %v5318_v54 = vadd.f32 %v11022_v7, %v5307_v27  ;;  %v5300_v60 = vmax.f32 %v5271_v62, %v5279_v10  ;;  %v9300_v57 = vld [vmem:[%s11506_s4 + $0x148] sm:$0xff]   ;;  %v9301_v48 = vld [vmem:[%s11506_s4 + $0x1d8] sm:$0xff]   ;;  %v9304_v62 = vld [vmem:[%s11506_s4 + $0x140] sm:$0xff]  }
 0x4d3   : > { %v9305_v10 = vld [vmem:[%s11506_s4 + $0x1d0] sm:$0xff]  }
 0x4d4   : > { %v5256_v25 = vadd.f32 %v8936_v38, %v5191_v37  ;;  %v5322_v4 = vmax.f32 %v5318_v54, 0.0  ;;  %v9302_v37 = vld [vmem:[%s11506_s4 + $0x108] sm:$0xff]   ;;  %v9303_v54 = vld [vmem:[%s11506_s4 + $0x198] sm:$0xff]  }
 0x4d5   : > { %v5287_v18 = vld [vmem:[#allocation4 + $0x28] ss:$2 sm:$0xf]  ;;  %v5295_v44 = vld [vmem:[#allocation4 + $0x29] ss:$2 sm:$0xf] }
 0x4d6   : > { %v5304_v11 = vmax.f32 %v5287_v18, %v5295_v44  ;;  %5266 = vst [vmem:[#allocation4 + $0x38] sm:$0xff] %v5256_v25  ;;  %v11035_v13 = vld [vmem:[#allocation9 + $0x11] sm:$0xff]  ;;  %5340 = vst [vmem:[#allocation9 + $0x21] sm:$0xf] %v5322_v4  ;;  %v9306_v25 = vld [vmem:[%s11506_s4 + $0x100] sm:$0xff]  }
 0x4d7   : > { %v5344_v8 = vld [vmem:[#allocation9 + $0x10] sm:$0xff]  ;;  %v5381_v20 = vpack.c.bf16 %v11035_v13, %v5347_v35  ;;  %v9308_v4 = vld [vmem:[%s11506_s4 + $0x1c8] sm:$0xff]   ;;  %v9309_v18 = vld [vmem:[%s11506_s4 + $0x238] sm:$0xff]  }
 0x4d8   : > { %v5380_v61 = vpack.c.bf16 %v5344_v8, %v11608_v55  ;;  %v5308_v40 = vmax.f32 %v5300_v60, %v5304_v11  ;;  %v5352_v15 = vld [vmem:[#allocation9 + $0x12] sm:$0xff]  ;;  %v9310_v60 = vld [vmem:[%s11506_s4 + $0x188] sm:$0xff]  }
 0x4d9   : > { %6006 = vmatprep.mubr.bf16.mxu1 %v5381_v20  ;;  %v5273_v45 = vld [vmem:[#allocation4 + $0x30] ss:$2 sm:$0xf]  ;;  %v5281_v21 = vld [vmem:[#allocation4 + $0x31] ss:$2 sm:$0xf]  ;;  %v5382_v17 = vpack.c.bf16 %v5352_v15, %v5351_v36 }
 0x4da   : > { %6007 = vmatmul.mubr.bf16.vlgmr.msra.gmra.mxu1 %v5380_v61  ;;  %v5319_v30 = vadd.f32 %v11022_v7, %v5308_v40  ;;  %v5301_v47 = vmax.f32 %v5273_v45, %v5281_v21  ;;  %v9307_v35 = vld [vmem:[%s11506_s4 + $0x190] sm:$0xff]   ;;  %v9315_v45 = vld [vmem:[%s11506_s4 + $0x220] sm:$0xff]   ;;  %v9316_v21 = vld [vmem:[%s11506_s4 + $0x218] sm:$0xff]  }
 0x4db   : > { %8562 = vmatpush3.bf16.msra.mxu1 %v9279_v34  ;;  %v9312_v61 = vld [vmem:[%s11506_s4 + $0x230] sm:$0xff]   ;;  %v9313_v34 = vld [vmem:[%s11506_s4 + $0x180] sm:$0xff]  }
 0x4dc   : > { %8563 = vmatprep.subr.bf16.mxu1 %v9281_v9  ;;  %v5323_v52 = vmax.f32 %v5319_v30, 0.0  ;;  %v9314_v9 = vld [vmem:[%s11506_s4 + $0x228] sm:$0xff]   ;;  %v5375_v40 = vld [vmem:[#allocation9 + $0x51] sm:$0xff] }
 0x4dd   : > { %v5289_v38 = vld [vmem:[#allocation4 + $0x38] ss:$2 sm:$0xf]  ;;  %v5297_v50 = vld [vmem:[#allocation4 + $0x39] ss:$2 sm:$0xf] }
 0x4de   : > { %v5305_v3 = vmax.f32 %v5289_v38, %v5297_v50  ;;  %v5356_v63 = vld [vmem:[#allocation9 + $0x20] sm:$0xff]  ;;  %5341 = vst [vmem:[#allocation9 + $0x31] sm:$0xf] %v5323_v52  ;;  %v9317_v36 = vld [vmem:[%s11506_s4 + $0x210] sm:$0xff]   ;;  %v9320_v50 = vld [vmem:[%s11507_s5 + $0x78] sm:$0xff]  }
 0x4df   : > { %8564 = vmatpush3.bf16.msra.mxu1 %v9283_v49  ;;  %v5383_v22 = vpack.c.bf16 %v5356_v63, %v5344_v8  ;;  %v11071_v39 = vld [vmem:[#allocation9 + $0x21] sm:$0xff] }
 0x4e0   : > { %8565 = vmatprep.subr.bf16.mxu1 %v9284_v29  ;;  %v5309_v5 = vmax.f32 %v5301_v47, %v5305_v3  ;;  %v5364_v41 = vld [vmem:[#allocation9 + $0x22] sm:$0xff]  ;;  %v5384_v11 = vpack.c.bf16 %v11071_v39, %v11035_v13  ;;  %v9321_v47 = vld [vmem:[%s11507_s5 + $0xf8] sm:$0xff]  }
 0x4e1   : > { %6055 = vmatprep.mubr.bf16.mxu0 %v5383_v22  ;;  %v5385_v42 = vpack.c.bf16 %v5364_v41, %v5352_v15  ;;  %v9311_v8 = vld [vmem:[%s11506_s4 + $0x1c0] sm:$0xff]   ;;  %v9318_v15 = vld [vmem:[%s11506_s4 + $0x208] sm:$0xff]   ;;  %v9322_v3 = vld [vmem:[%s11507_s5 + $0x38] sm:$0xff]  }
 0x4e2   : > { %6056 = vmatmul.mubr.bf16.vlgmr.msra.gmra.mxu0 %v5382_v17  ;;  %v5320_v16 = vadd.f32 %v11022_v7, %v5309_v5  ;;  %v9293_v7 = vld [vmem:[%s11506_s4 + $0x1e8] sm:$0xff]   ;;  %v9319_v52 = vld [vmem:[%s11506_s4 + $0x200] sm:$0xff]   ;;  %v9324_v22 = vld [vmem:[%s11507_s5 + $0x70] sm:$0xff]  }
 0x4e3   : > { %8566 = vmatpush3.bf16.msra.mxu1 %v9286_v43  ;;  %8590 = vmatpush3.bf16.msra.mxu0 %v9287_v32  ;;  %v9325_v43 = vld [vmem:[%s11507_s5 + $0xf0] sm:$0xff]   ;;  %v9330_v5 = vld [vmem:[%s11507_s5 + $0x28] sm:$0xff]  }
 0x4e4   : > { %8567 = vmatprep.subr.bf16.mxu1 %v9288_v19  ;;  %8591 = vmatprep.subr.bf16.mxu0 %v9289_v1  ;;  %v5324_v2 = vmax.f32 %v5320_v16, 0.0  ;;  %v9326_v32 = vld [vmem:[%s11507_s5 + $0x30] sm:$0xff]   ;;  %v9328_v19 = vld [vmem:[%s11507_s5 + $0x68] sm:$0xff]  }
 0x4e5   : > { %v11079_v59 = vld [vmem:[#allocation9 + $0x31] sm:$0xff]  ;;  %v9329_v1 = vld [vmem:[%s11507_s5 + $0xe8] sm:$0xff]  }
 0x4e6   : > { %v5346_v24 = vld [vmem:[#allocation9 + $0x30] sm:$0xff]  ;;  %v5390_v23 = vpack.c.bf16 %v11079_v59, %v11071_v39  ;;  %5342 = vst [vmem:[#allocation9 + $0x41] sm:$0xf] %v5324_v2  ;;  %v9331_v16 = vld [vmem:[%s11507_s5 + $0xa8] sm:$0xff]   ;;  %v9334_v39 = vld [vmem:[%s11507_s5 + $0x20] sm:$0xff]  }
 0x4e7   : > { %v11083_v51 = vpack.c.bf16 %v5346_v24, %v5356_v63  ;;  %8568 = vmatpush3.bf16.msra.mxu1 %v9290_v6  ;;  %8592 = vmatpush3.bf16.msra.mxu0 %v9291_v14  ;;  %v5354_v26 = vld [vmem:[#allocation9 + $0x32] sm:$0xff]  ;;  %v9332_v6 = vld [vmem:[%s11507_s5 + $0x60] sm:$0xff]  }
 0x4e8   : > { %6014 = vmatprep.mubr.bf16.mxu1 %v5390_v23  ;;  %8569 = vmatprep.subr.bf16.mxu1 %v9292_v56  ;;  %v5391_v27 = vpack.c.bf16 %v5354_v26, %v5364_v41  ;;  %v9323_v63 = vld [vmem:[%s11507_s5 + $0xb8] sm:$0xff]   ;;  %v9327_v17 = vld [vmem:[%s11507_s5 + $0xb0] sm:$0xff]   ;;  %v9333_v14 = vld [vmem:[%s11507_s5 + $0xe0] sm:$0xff]  }
 0x4e9   : > { %8593 = vmatprep.subr.bf16.mxu0 %v9293_v7  ;;  %6015 = vmatmul.mubr.bf16.gmra.mxu1 %v11083_v51  ;;  %v9335_v56 = vld [vmem:[%s11507_s5 + $0xa0] sm:$0xff]   ;;  %v9336_v7 = vld [vmem:[%s11507_s5 + $0x58] sm:$0xff]   ;;  %v9340_v41 = vld [vmem:[%s11507_s5 + $0x50] sm:$0xff]  }
 0x4ea   : > { %6104 = vmatprep.mubr.bf16.mxu1 %v5385_v42  ;;  %v9337_v2 = vld [vmem:[%s11507_s5 + $0xd8] sm:$0xff]   ;;  %v9345_v42 = vld [vmem:[%s11507_s5 + $0xc8] sm:$0xff]  }
 0x4eb   : > { %8570 = vmatpush3.bf16.msra.mxu1 %v9294_v31  ;;  %8594 = vmatpush3.bf16.msra.mxu0 %v9295_v0  ;;  %v9343_v31 = vld [vmem:[%s11507_s5 + $0x90] sm:$0xff]   ;;  %v9344_v0 = vld [vmem:[%s11507_s5 + $0x48] sm:$0xff]  }
 0x4ec   : > { %8571 = vmatprep.subr.bf16.mxu1 %v9296_v33  ;;  %8595 = vmatprep.subr.bf16.mxu0 %v9297_v46  ;;  %v9346_v33 = vld [vmem:[%s11507_s5 + $0x8] sm:$0xff]  }
 0x4ed   : > { %v5358_v28 = vld [vmem:[#allocation9 + $0x40] sm:$0xff]  ;;  %v9347_v46 = vld [vmem:[%s11507_s5 + $0x88] sm:$0xff]  }
 0x4ee   : > { %v5392_v12 = vpack.c.bf16 %v5358_v28, %v5346_v24  ;;  %v5366_v44 = vld [vmem:[#allocation9 + $0x42] sm:$0xff]  ;;  %v5395_v29 = vpack.c.bf16 %v11608_v55, %v5358_v28  ;;  %v5379_v55 = vld [vmem:[#allocation9 + $0x52] sm:$0xff] }
 0x4ef   : > { %8572 = vmatpush3.bf16.msra.mxu1 %v9298_v53  ;;  %8596 = vmatpush3.bf16.msra.mxu0 %v9299_v58  ;;  %v5394_v20 = vpack.c.bf16 %v5366_v44, %v5354_v26  ;;  %v5362_v13 = vld [vmem:[#allocation9 + $0x41] sm:$0xff]  ;;  %v5397_v38 = vpack.c.bf16 %v5379_v55, %v5366_v44  ;;  %v9339_v24 = vld [vmem:[%s11507_s5 + $0x98] sm:$0xff]  }
 0x4f0   : > { %6063 = vmatprep.mubr.bf16.mxu0 %v5392_v12  ;;  %8573 = vmatprep.subr.bf16.mxu1 %v9300_v57  ;;  %v5393_v49 = vpack.c.bf16 %v5362_v13, %v11079_v59  ;;  %v5396_v30 = vpack.c.bf16 %v5375_v40, %v5362_v13  ;;  %v9338_v59 = vld [vmem:[%s11507_s5 + $0x18] sm:$0xff]   ;;  %v9348_v53 = vld [vmem:[%s11507_s5 + $0x40] sm:$0xff]  }
 0x4f1   : > { %8597 = vmatprep.subr.bf16.mxu0 %v9301_v48  ;;  %6064 = vmatmul.mubr.bf16.gmra.mxu0 %v5391_v27  ;;  %v9349_v58 = vld [vmem:[%s11507_s5 + $0xc0] sm:$0xff]   ;;  %v9352_v28 = vld [vmem:[%s11507_s5 + $0x178] sm:$0xff]  }
 0x4f2   : > { %6153 = vmatprep.mubr.bf16.mxu0 %v5390_v23  ;;  %v9341_v23 = vld [vmem:[%s11507_s5 + $0xd0] sm:$0xff]   ;;  %v9350_v57 = vld [vmem:[%s11507_s5] sm:$0xff]   ;;  %v9353_v48 = vld [vmem:[%s11507_s5 + $0x1f8] sm:$0xff]  }
 0x4f3   : > { %8574 = vmatpush3.bf16.msra.mxu1 %v9302_v37  ;;  %8598 = vmatpush3.bf16.msra.mxu0 %v9303_v54  ;;  %v9351_v26 = vld [vmem:[%s11507_s5 + $0x80] sm:$0xff]  }
 0x4f4   : > { %8575 = vmatprep.subr.bf16.mxu1 %v9304_v62  ;;  %8599 = vmatprep.subr.bf16.mxu0 %v9305_v10 }
 0x4f7   : > { %8576 = vmatpush3.bf16.msra.mxu1 %v9306_v25  ;;  %8600 = vmatpush3.bf16.msra.mxu0 %v9307_v35 }
 0x4f8   : > { %8601 = vmatprep.subr.bf16.mxu0 %v9308_v4  ;;  %8937 = vmatprep.subr.bf16.mxu1 %v9309_v18 }
 0x4fa   : > { %6105 = vmatmul.mubr.bf16.vlgmr.msra.gmra.mxu1 %v5384_v11 }
 0x4fb   : > { %6112 = vmatprep.mubr.bf16.mxu1 %v5394_v20  ;;  %8602 = vmatpush3.bf16.msra.mxu0 %v9310_v60 }
 0x4fc   : > { %8938 = vmatpush3.bf16.msra.mxu1 %v9309_v18  ;;  %8603 = vmatprep.subr.bf16.mxu0 %v9311_v8 }
 0x4fd   : > { %8939 = vmatprep.subr.bf16.mxu1 %v9312_v61 }
 0x4ff   : > { %8604 = vmatpush3.bf16.msra.mxu0 %v9313_v34 }
 0x500   : > { %8940 = vmatpush3.bf16.msra.mxu1 %v9312_v61  ;;  %8627 = vmatprep.subr.bf16.mxu0 %v9320_v50 }
 0x501   : > { %8941 = vmatprep.subr.bf16.mxu1 %v9314_v9 }
 0x502   : > { %6113 = vmatmul.mubr.bf16.gmra.mxu1 %v5393_v49  ;;  %6154 = vmatmul.mubr.bf16.vlgmr.msra.gmra.mxu0 %v11083_v51  ;;  %v9342_v51 = vld [vmem:[%s11507_s5 + $0x10] sm:$0xff]  }
 0x503   : > { %6161 = vmatprep.mubr.bf16.mxu0 %v5396_v30  ;;  %8953 = vmatprep.mubr.bf16.mxu1 %v5391_v27 }
 0x504   : > { %8942 = vmatpush3.bf16.msra.mxu1 %v9314_v9  ;;  %8628 = vmatpush3.bf16.msra.mxu0 %v9322_v3 }
 0x505   : > { %8943 = vmatprep.subr.bf16.mxu1 %v9315_v45  ;;  %8629 = vmatprep.subr.bf16.mxu0 %v9324_v22 }
 0x508   : > { %8944 = vmatpush3.bf16.msra.mxu1 %v9315_v45  ;;  %8630 = vmatpush3.bf16.msra.mxu0 %v9326_v32 }
 0x509   : > { %8945 = vmatprep.subr.bf16.mxu1 %v9316_v21  ;;  %8631 = vmatprep.subr.bf16.mxu0 %v9328_v19 }
 0x50a   : > { %6162 = vmatmul.mubr.bf16.gmra.mxu0 %v5395_v29 }
 0x50c   : > { %8946 = vmatpush3.bf16.msra.mxu1 %v9316_v21  ;;  %8632 = vmatpush3.bf16.msra.mxu0 %v9330_v5 }
 0x50d   : > { %8947 = vmatprep.subr.bf16.mxu1 %v9317_v36  ;;  %8633 = vmatprep.subr.bf16.mxu0 %v9332_v6 }
 0x510   : > { %8948 = vmatpush3.bf16.msra.mxu1 %v9317_v36  ;;  %8634 = vmatpush3.bf16.msra.mxu0 %v9334_v39 }
 0x511   : > { %8949 = vmatprep.subr.bf16.mxu1 %v9318_v15  ;;  %8635 = vmatprep.subr.bf16.mxu0 %v9336_v7 }
 0x514   : > { %8950 = vmatpush3.bf16.msra.mxu1 %v9318_v15  ;;  %8636 = vmatpush3.bf16.msra.mxu0 %v9338_v59 }
 0x515   : > { %8951 = vmatprep.subr.bf16.mxu1 %v9319_v52  ;;  %8637 = vmatprep.subr.bf16.mxu0 %v9340_v41 }
 0x518   : > { %8952 = vmatpush3.bf16.msra.mxu1 %v9319_v52  ;;  %8638 = vmatpush3.bf16.msra.mxu0 %v9342_v51 }
 0x519   : > { %8649 = vmatprep.subr.bf16.mxu1 %v9321_v47  ;;  %8639 = vmatprep.subr.bf16.mxu0 %v9344_v0 }
 0x51b   : > { %8954 = vmatmul.mubr.bf16.vlgmr.msra.gmra.mxu1 %v5397_v38 }
 0x51c   : > { %8650 = vmatpush3.bf16.msra.mxu1 %v9323_v63  ;;  %8640 = vmatpush3.bf16.msra.mxu0 %v9346_v33 }
 0x51d   : > { %8651 = vmatprep.subr.bf16.mxu1 %v9325_v43  ;;  %8641 = vmatprep.subr.bf16.mxu0 %v9348_v53 }
 0x520   : > { %8652 = vmatpush3.bf16.msra.mxu1 %v9327_v17  ;;  %8642 = vmatpush3.bf16.msra.mxu0 %v9350_v57 }
 0x521   : > { %8653 = vmatprep.subr.bf16.mxu1 %v9329_v1  ;;  %8671 = vmatprep.subr.bf16.mxu0 %v9352_v28 }
 0x524   : > { %8654 = vmatpush3.bf16.msra.mxu1 %v9331_v16 }
 0x525   : > { %8655 = vmatprep.subr.bf16.mxu1 %v9333_v14 }
 0x528   : > { %8656 = vmatpush3.bf16.msra.mxu1 %v9335_v56 }
 0x529   : > { %8657 = vmatprep.subr.bf16.mxu1 %v9337_v2 }
 0x52c   : > { %8658 = vmatpush3.bf16.msra.mxu1 %v9339_v24 }
 0x52d   : > { %8659 = vmatprep.subr.bf16.mxu1 %v9341_v23 }
 0x530   : > { %8660 = vmatpush3.bf16.msra.mxu1 %v9343_v31 }
 0x531   : > { %8661 = vmatprep.subr.bf16.mxu1 %v9345_v42 }
 0x534   : > { %8662 = vmatpush3.bf16.msra.mxu1 %v9347_v46 }
 0x535   : > { %8663 = vmatprep.subr.bf16.mxu1 %v9349_v58 }
 0x538   : > { %8664 = vmatpush3.bf16.msra.mxu1 %v9351_v26 }
 0x539   : > { %8693 = vmatprep.subr.bf16.mxu1 %v9353_v48 }
 0x59a   : > { %v8521_v12 = vpop.f32.mrf.mxu1 }
 0x59c   : > { %v8522_v27 = vpop.f32.mrf.mxu1 }
 0x59d   : > { %v8523_v32 = vadd.f32 %v8522_v27, %v8521_v12 }
 0x59e   : > { %v8524_v37 = vpop.f32.mrf.mxu1 }
 0x5a0   : > { %v8525_v62 = vpop.f32.mrf.mxu1 }
 0x5a1   : > { %v8526_v2 = vadd.f32 %v8525_v62, %v8524_v37 }
 0x5a2   : > { %v8549_v54 = vpop.f32.mrf.mxu0 }
 0x5a4   : > { %v8550_v10 = vpop.f32.mrf.mxu0 }
 0x5a5   : > { %v8551_v47 = vadd.f32 %v8550_v10, %v8549_v54 }
 0x5a6   : > { %v8552_v35 = vpop.f32.mrf.mxu0 }
 0x5a7   : > { %v6058_v14 = vadd.f32 %v8551_v47, %v8523_v32  ;;  %v9355_v32 = vld [vmem:[%s11507_s5 + $0x1b8] sm:$0xff]  }
 0x5a8   : > { %v8553_v18 = vpop.f32.mrf.mxu0 }
 0x5a9   : > { %v8527_v25 = vpop.f32.mrf.mxu1  ;;  %v8554_v5 = vadd.f32 %v8553_v18, %v8552_v35 }
 0x5ab   : > { %v8528_v4 = vpop.f32.mrf.mxu1  ;;  %v6061_v31 = vadd.f32 %v8554_v5, %v8526_v2  ;;  %v9357_v5 = vld [vmem:[%s11507_s5 + $0x1f0] sm:$0xff]   ;;  %v9362_v2 = vld [vmem:[%s11507_s5 + $0x128] sm:$0xff]  }
 0x5ac   : > { %v8529_v3 = vadd.f32 %v8528_v4, %v8527_v25 }
 0x5ad   : > { %v8530_v44 = vpop.f32.mrf.mxu1 }
 0x5af   : > { %v8531_v11 = vpop.f32.mrf.mxu1 }
 0x5b0   : > { %v8532_v16 = vadd.f32 %v8531_v11, %v8530_v44  ;;  %v7710_v11 = vld [vmem:[%s11511_s9] ss:$0 sm:$0xff] }
 0x5b1   : > { %v8555_v60 = vpop.f32.mrf.mxu0 }
 0x5b3   : > { %v8556_v8 = vpop.f32.mrf.mxu0 }
 0x5b4   : > { %v8557_v38 = vadd.f32 %v8556_v8, %v8555_v60 }
 0x5b5   : > { %v8558_v61 = vpop.f32.mrf.mxu0 }
 0x5b6   : > { %v6066_v17 = vadd.f32 %v8557_v38, %v8529_v3  ;;  %v11280_v3 = vld [vmem:[#allocation7] sm:$0xff] }
 0x5b7   : > { %v8559_v13 = vpop.f32.mrf.mxu0 }
 0x5b8   : > { %v8560_v22 = vadd.f32 %v8559_v13, %v8558_v61 }
 0x5ba   : > { %v8577_v20 = vpop.f32.mrf.mxu1  ;;  %v6069_v59 = vadd.f32 %v8560_v22, %v8532_v16 }
 0x5bc   : > { %v8578_v34 = vpop.f32.mrf.mxu1 }
 0x5bd   : > { %v8579_v19 = vadd.f32 %v8578_v34, %v8577_v20 }
 0x5be   : > { %v8580_v9 = vpop.f32.mrf.mxu1 }
 0x5bf   : > { %v6107_v24 = vadd.f32 %v8579_v19, %v6058_v14  ;;  %v9358_v14 = vld [vmem:[%s11507_s5 + $0x130] sm:$0xff]  }
 0x5c0   : > { %v8581_v30 = vpop.f32.mrf.mxu1 }
 0x5c1   : > { %v8582_v41 = vadd.f32 %v8581_v30, %v8580_v9 }
 0x5c2   : > { %v8605_v40 = vpop.f32.mrf.mxu0  ;;  %v8583_v29 = vpop.f32.mrf.mxu1 }
 0x5c3   : > { %v6110_v57 = vadd.f32 %v8582_v41, %v6061_v31  ;;  %v9365_v41 = vld [vmem:[%s11507_s5 + $0x1e0] sm:$0xff]   ;;  %v9368_v31 = vld [vmem:[%s11507_s5 + $0x158] sm:$0xff]  }
 0x5c4   : > { %v8606_v49 = vpop.f32.mrf.mxu0  ;;  %v8584_v15 = vpop.f32.mrf.mxu1 }
 0x5c5   : > { %v8585_v63 = vadd.f32 %v8584_v15, %v8583_v29  ;;  %v8607_v56 = vadd.f32 %v8606_v49, %v8605_v40  ;;  %v6271_v29 = vld [vmem:[#allocation10 + $0x2] sm:$0xff]  ;;  %v6283_v15 = vld [vmem:[#allocation10 + $0x31] sm:$0xff] }
 0x5c6   : > { %v8608_v45 = vpop.f32.mrf.mxu0  ;;  %v8586_v55 = vpop.f32.mrf.mxu1 }
 0x5c7   : > { %v6115_v39 = vadd.f32 %v8585_v63, %v6066_v17  ;;  %v6156_v53 = vadd.f32 %v8607_v56, %v6107_v24  ;;  %v9360_v56 = vld [vmem:[%s11507_s5 + $0x168] sm:$0xff]   ;;  %v9364_v24 = vld [vmem:[%s11507_s5 + $0x160] sm:$0xff]  }
 0x5c8   : > { %v8609_v21 = vpop.f32.mrf.mxu0  ;;  %v8587_v43 = vpop.f32.mrf.mxu1 }
 0x5c9   : > { %v8588_v7 = vadd.f32 %v8587_v43, %v8586_v55  ;;  %v8610_v33 = vadd.f32 %v8609_v21, %v8608_v45  ;;  %v6269_v21 = vld [vmem:[#allocation10 + $0x1] sm:$0xff]  ;;  %v9354_v43 = vld [vmem:[%s11507_s5 + $0x138] sm:$0xff]  }
 0x5ca   : > { %v8611_v36 = vpop.f32.mrf.mxu0 }
 0x5cb   : > { %v6118_v42 = vadd.f32 %v8588_v7, %v6069_v59  ;;  %v6159_v27 = vadd.f32 %v8610_v33, %v6110_v57  ;;  %v9361_v7 = vld [vmem:[%s11507_s5 + $0x1e8] sm:$0xff]   ;;  %v9371_v33 = vld [vmem:[%s11507_s5 + $0x198] sm:$0xff]   ;;  %v9375_v57 = vld [vmem:[%s11507_s5 + $0x190] sm:$0xff]  }
 0x5cc   : > { %v8612_v52 = vpop.f32.mrf.mxu0  ;;  %v9363_v59 = vld [vmem:[%s11507_s5 + $0x1a8] sm:$0xff]  }
 0x5cd   : > { %v8613_v1 = vadd.f32 %v8612_v52, %v8611_v36 }
 0x5ce   : > { %v8614_v50 = vpop.f32.mrf.mxu0 }
 0x5cf   : > { %v6164_v51 = vadd.f32 %v8613_v1, %v6115_v39  ;;  %v9356_v1 = vld [vmem:[%s11507_s5 + $0x170] sm:$0xff]  }
 0x5d0   : > { %v8615_v6 = vpop.f32.mrf.mxu0  ;;  %v9359_v39 = vld [vmem:[%s11507_s5 + $0x1b0] sm:$0xff]  }
 0x5d1   : > { %v8616_v23 = vadd.f32 %v8615_v6, %v8614_v50 }
 0x5d3   : > { %v6167_v28 = vadd.f32 %v8616_v23, %v6118_v42  ;;  %v9366_v23 = vld [vmem:[%s11507_s5 + $0x120] sm:$0xff]   ;;  %v9370_v42 = vld [vmem:[%s11507_s5 + $0x118] sm:$0xff]  }
 0x5db   : > { %v8955_v0 = vpop.f32.mrf.mxu1 }
 0x5dc   : > { %v6213_v46 = vadd.f32 %v8955_v0, %v6164_v51  ;;  %v9367_v51 = vld [vmem:[%s11507_s5 + $0x1a0] sm:$0xff]   ;;  %v9369_v0 = vld [vmem:[%s11507_s5 + $0x1d8] sm:$0xff]  }
 0x5dd   : > { %v6204_v58 = vpop.f32.mrf.mxu1 }
 0x5de   : > { %6221 = vst [vmem:[#allocation5 + $0x10] sm:$0xff] %v6213_v46  ;;  %v6205_v26 = vadd.f32 %v6204_v58, %v6156_v53  ;;  %v9372_v46 = vld [vmem:[%s11507_s5 + $0x150] sm:$0xff]  }
 0x5df   : > { %v8956_v48 = vpop.f32.mrf.mxu1  ;;  %v9373_v53 = vld [vmem:[%s11507_s5 + $0x1d0] sm:$0xff]  }
 0x5e0   : > { %6219 = vst [vmem:[#allocation5] sm:$0xff] %v6205_v26  ;;  %v6216_v12 = vadd.f32 %v8956_v48, %v6167_v28  ;;  %v9374_v58 = vld [vmem:[%s11507_s5 + $0x110] sm:$0xff]   ;;  %v9376_v26 = vld [vmem:[%s11507_s5 + $0x148] sm:$0xff]  }
 0x5e1   : > { %v6207_v37 = vpop.f32.mrf.mxu1  ;;  %v9377_v28 = vld [vmem:[%s11507_s5 + $0x1c8] sm:$0xff]  }
 0x5e2   : > { %6222 = vst [vmem:[#allocation5 + $0x18] sm:$0xff] %v6216_v12  ;;  %v6208_v54 = vadd.f32 %v6207_v37, %v6159_v27  ;;  %v9378_v48 = vld [vmem:[%s11507_s5 + $0x108] sm:$0xff]   ;;  %v9380_v27 = vld [vmem:[%s11507_s5 + $0x140] sm:$0xff]  }
 0x5e3   : > { %v9379_v12 = vld [vmem:[%s11507_s5 + $0x188] sm:$0xff]   ;;  %v9381_v37 = vld [vmem:[%s11507_s5 + $0x1c0] sm:$0xff]  }
 0x5e4   : > { %6220 = vst [vmem:[#allocation5 + $0x8] sm:$0xff] %v6208_v54  ;;  %v9382_v54 = vld [vmem:[%s11507_s5 + $0x100] sm:$0xff]  }
 0x5e5   : > { %v6225_v62 = vld [vmem:[#allocation5 + $0x10] ss:$2 sm:$0x3]  ;;  %v6229_v10 = vld [vmem:[#allocation5 + $0x11] ss:$2 sm:$0x3] }
 0x5e6   : > { %v6239_v44 = vmax.f32 %v6225_v62, %v6229_v10  ;;  %v9383_v62 = vld [vmem:[%s11507_s5 + $0x180] sm:$0xff]   ;;  %v9384_v10 = vld [vmem:[%s11507_s5 + $0x238] sm:$0xff]  }
 0x5e7   : > { %v6223_v25 = vld [vmem:[#allocation5] ss:$2 sm:$0x3]  ;;  %v6227_v35 = vld [vmem:[#allocation5 + $0x1] ss:$2 sm:$0x3] }
 0x5e8   : > { %v6238_v61 = vmax.f32 %v6223_v25, %v6227_v35 }
 0x5e9   : > { %v6233_v4 = vld [vmem:[#allocation5 + $0x18] ss:$2 sm:$0x3]  ;;  %v6237_v18 = vld [vmem:[#allocation5 + $0x19] ss:$2 sm:$0x3] }
 0x5ea   : > { %v6241_v60 = vmax.f32 %v6233_v4, %v6237_v18  ;;  %v9385_v4 = vld [vmem:[%s11507_s5 + $0x230] sm:$0xff]   ;;  %v9386_v18 = vld [vmem:[%s11507_s5 + $0x228] sm:$0xff]  }
 0x5eb   : > { %v6231_v8 = vld [vmem:[#allocation5 + $0x8] ss:$2 sm:$0x3]  ;;  %v6235_v20 = vld [vmem:[#allocation5 + $0x9] ss:$2 sm:$0x3] }
 0x5ec   : > { %v6243_v34 = vmax.f32 %v6239_v44, %v6241_v60  ;;  %v6240_v13 = vmax.f32 %v6231_v8, %v6235_v20  ;;  %v9387_v44 = vld [vmem:[%s11507_s5 + $0x220] sm:$0xff]   ;;  %v9388_v60 = vld [vmem:[%s11507_s5 + $0x218] sm:$0xff]   ;;  %v9390_v8 = vld [vmem:[%s11507_s5 + $0x208] sm:$0xff]  }
 0x5ed   : > { %v9391_v20 = vld [vmem:[%s11507_s5 + $0x200] sm:$0xff]  }
 0x5ee   : > { %v6242_v9 = vmax.f32 %v6238_v61, %v6240_v13  ;;  %v6252_v40 = vadd.f32 %v7710_v11, %v6243_v34  ;;  %v6285_v61 = vld [vmem:[#allocation10 + $0x32] sm:$0xff] }
 0x5ef   : > { %v9392_v13 = vld [vmem:[%s11513_s11 + $0x38] sm:$0xff]  }
 0x5f0   : > { %v6251_v49 = vadd.f32 %v7710_v11, %v6242_v9  ;;  %v6254_v30 = vmax.f32 %v6252_v40, 0.0  ;;  %v9389_v11 = vld [vmem:[%s11507_s5 + $0x210] sm:$0xff]   ;;  %v9394_v40 = vld [vmem:[%s11513_s11 + $0x28] sm:$0xff]  }
 0x5f1   : > { %v9393_v9 = vld [vmem:[%s11513_s11 + $0x30] sm:$0xff]  }
 0x5f2   : > { %v6253_v45 = vmax.f32 %v6251_v49, 0.0  ;;  %6266 = vst [vmem:[#allocation10 + $0x21] sm:$0x3] %v6254_v30  ;;  %v9395_v49 = vld [vmem:[%s11513_s11 + $0x20] sm:$0xff]   ;;  %v9396_v30 = vld [vmem:[%s11513_s11 + $0x18] sm:$0xff]  }
 0x5f4   : > { %6265 = vst [vmem:[#allocation10 + $0x11] sm:$0x3] %v6253_v45  ;;  %v9397_v45 = vld [vmem:[%s11513_s11 + $0x10] sm:$0xff]  }
 0x5f9   : > { %v11274_v36 = vld [vmem:[#allocation10 + $0x20] sm:$0xff] }
 0x5fa   : > { %v11289_v17 = vld [vmem:[#allocation10 + $0x21] sm:$0xff]  ;;  %v6292_v35 = vpack.c.bf16 %v11280_v3, %v11274_v36 }
 0x5fb   : > { %v11276_v52 = vld [vmem:[#allocation10 + $0x11] sm:$0xff]  ;;  %v11291_v19 = vld [vmem:[#allocation10 + $0x22] sm:$0xff]  ;;  %v6293_v6 = vpack.c.bf16 %v6283_v15, %v11289_v17 }
 0x5fc   : > { %v6273_v55 = vld [vmem:[#allocation10 + $0x10] sm:$0xff]  ;;  %v6287_v50 = vpack.c.bf16 %v11276_v52, %v6269_v21  ;;  %v6290_v25 = vpack.c.bf16 %v11289_v17, %v11276_v52  ;;  %v6294_v34 = vpack.c.bf16 %v6285_v61, %v11291_v19  ;;  %v9398_v21 = vld [vmem:[%s11513_s11 + $0x8] sm:$0xff]  }
 0x5fd   : > { %v6272_v38 = vld [vmem:[#allocation10 + $0x12] sm:$0xff]  ;;  %v6289_v47 = vpack.c.bf16 %v11274_v36, %v6273_v55  ;;  %v6286_v63 = vpack.c.bf16 %v6273_v55, %v11280_v3 }
 0x5fe   : > { %v6288_v22 = vpack.c.bf16 %v6272_v38, %v6271_v29  ;;  %6903 = vmatprep.mubr.bf16.mxu0 %v6287_v50  ;;  %v6291_v16 = vpack.c.bf16 %v11291_v19, %v6272_v38  ;;  %v9399_v29 = vld [vmem:[%s11513_s11] sm:$0xff]  }
 0x5ff   : > { %6944 = vmatprep.mubr.bf16.mxu1 %v6289_v47  ;;  %6904 = vmatmul.mubr.bf16.vlgmr.msra.gmra.mxu0 %v6286_v63 }
 0x600   : > { %6945 = vmatmul.mubr.bf16.vlgmr.msra.gmra.mxu1 %v6288_v22  ;;  %8672 = vmatpush3.bf16.msra.mxu0 %v9354_v43 }
 0x601   : > { %8694 = vmatpush3.bf16.msra.mxu1 %v9355_v32  ;;  %6985 = vmatprep.mubr.bf16.mxu0 %v6291_v16 }
 0x602   : > { %7026 = vmatprep.mubr.bf16.mxu1 %v6293_v6  ;;  %8673 = vmatprep.subr.bf16.mxu0 %v9356_v1 }
 0x603   : > { %8695 = vmatprep.subr.bf16.mxu1 %v9357_v5 }
 0x604   : > { %8674 = vmatpush3.bf16.msra.mxu0 %v9358_v14 }
 0x605   : > { %8696 = vmatpush3.bf16.msra.mxu1 %v9359_v39  ;;  %8675 = vmatprep.subr.bf16.mxu0 %v9360_v56 }
 0x606   : > { %8697 = vmatprep.subr.bf16.mxu1 %v9361_v7 }
 0x608   : > { %8676 = vmatpush3.bf16.msra.mxu0 %v9362_v2 }
 0x609   : > { %8698 = vmatpush3.bf16.msra.mxu1 %v9363_v59  ;;  %8677 = vmatprep.subr.bf16.mxu0 %v9364_v24 }
 0x60a   : > { %8699 = vmatprep.subr.bf16.mxu1 %v9365_v41 }
 0x60c   : > { %8678 = vmatpush3.bf16.msra.mxu0 %v9366_v23 }
 0x60d   : > { %8700 = vmatpush3.bf16.msra.mxu1 %v9367_v51  ;;  %8679 = vmatprep.subr.bf16.mxu0 %v9368_v31 }
 0x60e   : > { %8701 = vmatprep.subr.bf16.mxu1 %v9369_v0 }
 0x610   : > { %8680 = vmatpush3.bf16.msra.mxu0 %v9370_v42 }
 0x611   : > { %8702 = vmatpush3.bf16.msra.mxu1 %v9371_v33  ;;  %8681 = vmatprep.subr.bf16.mxu0 %v9372_v46 }
 0x612   : > { %8703 = vmatprep.subr.bf16.mxu1 %v9373_v53 }
 0x614   : > { %8682 = vmatpush3.bf16.msra.mxu0 %v9374_v58 }
 0x615   : > { %8704 = vmatpush3.bf16.msra.mxu1 %v9375_v57  ;;  %8683 = vmatprep.subr.bf16.mxu0 %v9376_v26 }
 0x616   : > { %8705 = vmatprep.subr.bf16.mxu1 %v9377_v28 }
 0x618   : > { %8684 = vmatpush3.bf16.msra.mxu0 %v9378_v48 }
 0x619   : > { %8706 = vmatpush3.bf16.msra.mxu1 %v9379_v12  ;;  %8685 = vmatprep.subr.bf16.mxu0 %v9380_v27 }
 0x61a   : > { %8707 = vmatprep.subr.bf16.mxu1 %v9381_v37 }
 0x61c   : > { %8686 = vmatpush3.bf16.msra.mxu0 %v9382_v54  ;;  %v7088_v54 = vld [vmem:[%s11512_s10] sm:$0x1] }
 0x61d   : > { %8708 = vmatpush3.bf16.msra.mxu1 %v9383_v62  ;;  %8957 = vmatprep.subr.bf16.mxu0 %v11280_v3 }
 0x61e   : > { %8977 = vmatprep.subr.bf16.mxu1 %v11280_v3 }
 0x61f   : > { %6986 = vmatmul.mubr.bf16.vlgmr.msra.gmra.mxu0 %v6290_v25 }
 0x620   : > { %7027 = vmatmul.mubr.bf16.vlgmr.msra.gmra.mxu1 %v6292_v35  ;;  %8958 = vmatpush3.bf16.msra.mxu0 %v9384_v10 }
 0x621   : > { %8973 = vmatprep.mubr.msk.bf16.mxu0 %vm9468_vm1, %v11280_v3  ;;  %8959 = vmatprep.subr.bf16.mxu0 %v11280_v3 }
 0x622   : > { %8993 = vmatprep.mubr.msk.bf16.mxu1 %vm9468_vm1, %v11280_v3  ;;  %8978 = vmatpush3.bf16.msra.mxu1 %v9392_v13 }
 0x623   : > { %8979 = vmatprep.subr.bf16.mxu1 %v11280_v3 }
 0x624   : > { %8960 = vmatpush3.bf16.msra.mxu0 %v9385_v4  ;;  %v7108_v4 = vld [vmem:[%s11514_s12] sm:$0x1] }
 0x625   : > { %8961 = vmatprep.subr.bf16.mxu0 %v11280_v3 }
 0x626   : > { %8980 = vmatpush3.bf16.msra.mxu1 %v9393_v9 }
 0x627   : > { %8981 = vmatprep.subr.bf16.mxu1 %v11280_v3 }
 0x628   : > { %8962 = vmatpush3.bf16.msra.mxu0 %v9386_v18 }
 0x629   : > { %8963 = vmatprep.subr.bf16.mxu0 %v11280_v3 }
 0x62a   : > { %8982 = vmatpush3.bf16.msra.mxu1 %v9394_v40 }
 0x62b   : > { %8983 = vmatprep.subr.bf16.mxu1 %v11280_v3 }
 0x62c   : > { %8964 = vmatpush3.bf16.msra.mxu0 %v9387_v44 }
 0x62d   : > { %8965 = vmatprep.subr.bf16.mxu0 %v11280_v3 }
 0x62e   : > { %8984 = vmatpush3.bf16.msra.mxu1 %v9395_v49 }
 0x62f   : > { %8985 = vmatprep.subr.bf16.mxu1 %v11280_v3 }
 0x630   : > { %8966 = vmatpush3.bf16.msra.mxu0 %v9388_v60 }
 0x631   : > { %8967 = vmatprep.subr.bf16.mxu0 %v11280_v3 }
 0x632   : > { %8986 = vmatpush3.bf16.msra.mxu1 %v9396_v30 }
 0x633   : > { %8987 = vmatprep.subr.bf16.mxu1 %v11280_v3 }
 0x634   : > { %8968 = vmatpush3.bf16.msra.mxu0 %v9389_v11 }
 0x635   : > { %8969 = vmatprep.subr.bf16.mxu0 %v11280_v3 }
 0x636   : > { %8988 = vmatpush3.bf16.msra.mxu1 %v9397_v45 }
 0x637   : > { %8989 = vmatprep.subr.bf16.mxu1 %v11280_v3 }
 0x638   : > { %8970 = vmatpush3.bf16.msra.mxu0 %v9390_v8 }
 0x639   : > { %8971 = vmatprep.subr.bf16.mxu0 %v11280_v3 }
 0x63a   : > { %8990 = vmatpush3.bf16.msra.mxu1 %v9398_v21 }
 0x63b   : > { %8991 = vmatprep.subr.bf16.mxu1 %v11280_v3 }
 0x63c   : > { %8972 = vmatpush3.bf16.msra.mxu0 %v9391_v20 }
 0x63e   : > { %8992 = vmatpush3.bf16.msra.mxu1 %v9399_v29 }
 0x63f   : > { %8974 = vmatmul.mubr.bf16.vlgmr.msra.gmra.mxu0 %v6294_v34 }
 0x6bf   : > { %v8643_v36 = vpop.f32.mrf.mxu0 }
 0x6c0   : > { %v8665_v52 = vpop.f32.mrf.mxu1 }
 0x6c1   : > { %v8644_v15 = vpop.f32.mrf.mxu0 }
 0x6c2   : > { %v8666_v38 = vpop.f32.mrf.mxu1  ;;  %v8645_v19 = vadd.f32 %v8644_v15, %v8643_v36 }
 0x6c3   : > { %v8646_v55 = vpop.f32.mrf.mxu0  ;;  %v8667_v1 = vadd.f32 %v8666_v38, %v8665_v52 }
 0x6c4   : > { %v8668_v47 = vpop.f32.mrf.mxu1 }
 0x6c5   : > { %v8647_v50 = vpop.f32.mrf.mxu0  ;;  %v6947_v14 = vadd.f32 %v8667_v1, %v8645_v19 }
 0x6c6   : > { %v8669_v22 = vpop.f32.mrf.mxu1  ;;  %v8648_v3 = vadd.f32 %v8647_v50, %v8646_v55 }
 0x6c7   : > { %v8670_v39 = vadd.f32 %v8669_v22, %v8668_v47 }
 0x6c9   : > { %v6950_v59 = vadd.f32 %v8670_v39, %v8648_v3 }
 0x6df   : > { %v8687_v63 = vpop.f32.mrf.mxu0 }
 0x6e0   : > { %v8709_v32 = vpop.f32.mrf.mxu1 }
 0x6e1   : > { %v8688_v43 = vpop.f32.mrf.mxu0 }
 0x6e2   : > { %v8710_v5 = vpop.f32.mrf.mxu1  ;;  %v8689_v16 = vadd.f32 %v8688_v43, %v8687_v63 }
 0x6e3   : > { %v8690_v17 = vpop.f32.mrf.mxu0  ;;  %v8711_v24 = vadd.f32 %v8710_v5, %v8709_v32 }
 0x6e4   : > { %v8712_v56 = vpop.f32.mrf.mxu1  ;;  %v6988_v7 = vadd.f32 %v8689_v16, %v6947_v14 }
 0x6e5   : > { %v8691_v6 = vpop.f32.mrf.mxu0 }
 0x6e6   : > { %v8692_v2 = vadd.f32 %v8691_v6, %v8690_v17  ;;  %v8713_v41 = vpop.f32.mrf.mxu1  ;;  %v7029_v51 = vadd.f32 %v8711_v24, %v6988_v7 }
 0x6e7   : > { %v8714_v0 = vadd.f32 %v8713_v41, %v8712_v56 }
 0x6e8   : > { %v6991_v23 = vadd.f32 %v8692_v2, %v6950_v59 }
 0x6ea   : > { %v7032_v46 = vadd.f32 %v8714_v0, %v6991_v23 }
 0x6ff   : > { %v7069_v31 = vpop.f32.mrf.mxu0 }
 0x700   : > { %v7070_v42 = vadd.f32 %v7069_v31, %v7029_v51 }
 0x701   : > { %v8975_v33 = vpop.f32.mrf.mxu0 }
 0x702   : > { %7076 = vst [vmem:[#allocation6] sm:$0xff] %v7070_v42 }
 0x703   : > { %v7072_v53 = vpop.f32.mrf.mxu0 }
 0x704   : > { %v7073_v58 = vadd.f32 %v7072_v53, %v7032_v46 }
 0x705   : > { %v8976_v57 = vpop.f32.mrf.mxu0 }
 0x706   : > { %7077 = vst [vmem:[#allocation6 + $0x8] sm:$0xff] %v7073_v58 }
 0x709   : > { %v7078_v26 = vld [vmem:[#allocation6] ss:$2 sm:$0x1]  ;;  %v7080_v28 = vld [vmem:[#allocation6 + $0x1] ss:$2 sm:$0x1] }
 0x70a   : > { %v7085_v27 = vmax.f32 %v7078_v26, %v7080_v28 }
 0x70d   : > { %v7082_v48 = vld [vmem:[#allocation6 + $0x8] ss:$2 sm:$0x1]  ;;  %v7084_v12 = vld [vmem:[#allocation6 + $0x9] ss:$2 sm:$0x1] }
 0x70e   : > { %v7086_v37 = vmax.f32 %v7082_v48, %v7084_v12 }
 0x710   : > { %v7087_v62 = vmax.f32 %v7085_v27, %v7086_v37 }
 0x712   : > { %v7089_v10 = vadd.f32 %v7088_v54, %v7087_v62 }
 0x714   : > { %v7090_v25 = vmax.f32 %v7089_v10, 0.0 }
 0x716   : > { %v7091_v35 = vpack.c.bf16 %v7090_v25, %v7090_v25 }
 0x718   : > { %8994 = vmatmul.mubr.bf16.vlgmr.msra.gmra.mxu1 %v7091_v35 }
 0x7d8   : > { %v7191_v18 = vpop.f32.mrf.mxu1 }
 0x7d9   : > { %v7192_v44 = vadd.f32 %v7191_v18, %v7108_v4 }
 0x7da   : > { %v8995_v60 = vpop.f32.mrf.mxu1 }
 0x7db   : > { %7197 = vst [vmem:[%s432_s21] sm:$0x1] %v7192_v44 }
 0x7dc   : > { %v7194_v11 = vpop.f32.mrf.mxu1 }
 0x7dd   : > { %9417 = shalt.err (!%p9414_p3)
}
 0x7de   : > { %s9418_s20 = scalar_lea.hbm %s11461_s0, 16  ;;  %s9422_s23 = scalar_lea.hbm %s11515_s13, 32 }
 0x7df   : > { %p9419_p4 = scmp.ne.s32.totalorder %s11461_s0, %s9418_s20  ;;  %p9423_p9 = scmp.lt.s32.totalorder %s11461_s0, %s11515_s13 }
 0x7e0   : > { %p9424_p10 = scmp.lt.s32.totalorder %s9422_s23, %s9418_s20 }
 0x7e1   : > { %p9420_p7 = pnand %p9419_p4, %p9578_p5 }
 0x7e2   : > { %p9425_p11 = por %p9424_p10, %p9423_p9 }
 0x7e3   : > { %p9421_p8 = pneg %p9420_p7 }
 0x7e5   : > { %p9426_p12 = pnand %p9425_p11, %p9421_p8 }
 0x7e7   : > { %9429 = shalt.err (!%p9426_p12)
}
 0x7e8   : > { %8997 = dma.vmem_to_hbm [thread:$0]  (%p9578_p5), %s11463_s17, 16, %s11461_s0, %s7199_s24   ;;  %v8996_v8 = vpop.f32.mrf.mxu1 }
 0x7e9 PF: > { %p9003_p13 = scmp.ge.s32.totalorder %s9464_s28, 2  ;;  %s7223_s15 = sand.u32 1, %s9452_s25  }
 0x7ea   : > { %s7224_s1 = scalar_lea.sflag [#allocation12], %s7223_s15 }
 0x7eb   : > { %p9000_p0 = pnand %p9003_p13, %p9582_p6 }
 0x7ed   : > { %p9001_p1 = pneg %p9000_p0 }
 0x7ef   : > { %9447 = dma.done.wait (%p9001_p1), %s7224_s1, 16  }
 0x7f0   : > { %9449 = vsyncadd (%p9001_p1), %s7224_s1, 4294967280  ;;  %s11609_s18 = sld [smem:[#allocation14_spill]]  ;;  %p23_p2 = scmp.ge.s32.totalorder %s9565_s14, 4  }
 0x7f1   : > { %s11610_s25 = smov %s9456_s26  ;;  %s11611_s26 = smov %s9460_s27 }
 0x7f2   : > { %s11613_s28 = smov %s9565_s14  ;;  %25 = sbr.rel (!%p23_p2) target bundleno = 6 (0x6), region = 302 }
 0x7f6   : > { %s11612_s27 = smov %s11609_s18 }
 0x7f7   :  { %7228 = vsyncpa [#allocation12], 1 }
 0x7f8   :  { %7230 = vsyncpa [#allocation12 + $0x1], 1 }

</bundles_post_ra>
